<compile_context>
chip_gen: v6e
topology: v6e:2x2x1
jax: 0.10.0
libtpu: 0.0.40
codegen_flags: <defaults>
</compile_context>

<pallas_src>
import functools

import jax
import jax.numpy as jnp
from jax.experimental import pallas as pl
from jax.experimental.pallas import tpu as pltpu


def _conv_bn_relu_kernel(xp_ref, w_ref, gb_ref, out_ref, patch_ref, *,
                         N, Cin, KH, KW, Ho, Wo, stride, eps):
    """Single-step fused Conv2d + BatchNorm2d (batch stats) + ReLU.

    xp_ref   : (N, Cin, Hp, Wp)        zero-padded NCHW input, f32
    w_ref    : (Cout, KH*KW*Cin)       weight, K ordered (kh, kw, ci), f32
    gb_ref   : (Cout, 2)               [:, 0] = gamma, [:, 1] = beta, f32
    out_ref  : (N, Cout, Ho*Wo)        flattened-NCHW output, f32
    patch_ref: (KH*KW*Cin, N*Ho*Wo)    im2col patch matrix (VMEM scratch), f32
    """
    HW = Ho * Wo

    # ---- im2col: build the (KK, N*HW) patch matrix, lane dim = N*HW --------
    for n in range(N):
        for kh in range(KH):
            rsel = pl.ds(kh, Ho) if stride == 1 else pl.ds(kh, Ho, stride)
            for kw in range(KW):
                csel = pl.ds(kw, Wo) if stride == 1 else pl.ds(kw, Wo, stride)
                tap = kh * KW + kw
                piece = xp_ref[n, :, rsel, csel]              # (Cin, Ho, Wo)
                patch_ref[pl.ds(tap * Cin, Cin), pl.ds(n * HW, HW)] = (
                    piece.reshape(Cin, HW))

    # ---- one MXU matmul: (Cout, KK) x (KK, N*HW) -> (Cout, N*HW), f32 acc --
    conv = jnp.dot(w_ref[...], patch_ref[...],
                   preferred_element_type=jnp.float32)        # (Cout, N*HW)

    # ---- BatchNorm (batch mean, biased variance) + ReLU --------------------
    inv_cnt = 1.0 / float(N * HW)
    mean = jnp.sum(conv, axis=1, keepdims=True) * inv_cnt     # (Cout, 1)
    centered = conv - mean
    var = jnp.sum(centered * centered, axis=1, keepdims=True) * inv_cnt
    gamma = gb_ref[:, 0:1]                                    # (Cout, 1)
    beta = gb_ref[:, 1:2]                                     # (Cout, 1)
    scale = gamma * jax.lax.rsqrt(var + eps)
    y = jnp.maximum(centered * scale + beta, 0.0)             # (Cout, N*HW)

    # ---- store per image: (Cout, HW) rows of the (N, Cout, HW) output ------
    for n in range(N):
        out_ref[n] = y[:, n * HW:(n + 1) * HW]


def cnn_bn_forward(x_nchw, weight_oihw, gamma, beta, *,
                   stride=1, padding=1, groups=1, eps=1e-5):
    """Pallas implementation of cnn_bn.forward (Conv2d -> BatchNorm2d -> ReLU)."""
    if groups != 1:
        # TODO(synk): grouped / depthwise conv (groups > 1) path not implemented.
        raise NotImplementedError("only groups=1 (default) is implemented")

    N, Cin, H, W = x_nchw.shape
    Cout, _, KH, KW = weight_oihw.shape
    Ho = (H + 2 * padding - KH) // stride + 1
    Wo = (W + 2 * padding - KW) // stride + 1
    Hp, Wp = H + 2 * padding, W + 2 * padding
    HW = Ho * Wo
    KK = KH * KW * Cin

    # Glue (plain JAX, layout plumbing only): zero-pad in NCHW, im2col weight
    # as (Cout, KH*KW*Cin) with K ordered (kh, kw, ci), fold gamma/beta.
    xp = jnp.pad(x_nchw.astype(jnp.float32),
                 ((0, 0), (0, 0), (padding, padding), (padding, padding)))
    w2 = jnp.transpose(weight_oihw.astype(jnp.float32),
                       (0, 2, 3, 1)).reshape(Cout, KK)
    gb = jnp.stack([gamma.astype(jnp.float32),
                    beta.astype(jnp.float32)], axis=1)         # (Cout, 2)

    flops = 2 * Cout * KK * N * HW + 8 * Cout * N * HW
    bytes_accessed = (N * Cin * Hp * Wp * 4 + Cout * KK * 4
                      + Cout * 2 * 4 + N * Cout * HW * 4)

    kernel = functools.partial(
        _conv_bn_relu_kernel, N=N, Cin=Cin, KH=KH, KW=KW, Ho=Ho, Wo=Wo,
        stride=stride, eps=float(eps))

    out = pl.pallas_call(
        kernel,
        out_shape=jax.ShapeDtypeStruct((N, Cout, HW), jnp.float32),
        grid=(1,),
        in_specs=[
            pl.BlockSpec((N, Cin, Hp, Wp), lambda i: (0, 0, 0, 0)),
            pl.BlockSpec((Cout, KK), lambda i: (0, 0)),
            pl.BlockSpec((Cout, 2), lambda i: (0, 0)),
        ],
        out_specs=pl.BlockSpec((N, Cout, HW), lambda i: (0, 0, 0)),
        scratch_shapes=[pltpu.VMEM((KK, N * HW), jnp.float32)],
        compiler_params=pltpu.CompilerParams(
            dimension_semantics=("arbitrary",)),
        cost_estimate=pl.CostEstimate(
            flops=int(flops), transcendentals=int(Cout),
            bytes_accessed=int(bytes_accessed)),
    )(xp, w2, gb)

    # (N, Cout, Ho*Wo) is flattened NCHW already: just un-flatten spatial dims.
    return out.reshape(N, Cout, Ho, Wo)


if __name__ == "__main__":
    key = jax.random.PRNGKey(0)
    k_x, k_w, k_g, k_b = jax.random.split(key, 4)

    # cnn_bn(in_channels=4, out_channels=8, kernel_size=3, stride=1, padding=1)
    N, Cin, H, W = 2, 4, 16, 16
    Cout, K, stride, pad = 8, 3, 1, 1

    x = jax.random.normal(k_x, (N, Cin, H, W), jnp.float32)
    weight = jax.random.normal(k_w, (Cout, Cin, K, K), jnp.float32) \
        * (1.0 / (Cin * K * K) ** 0.5)
    gamma = 1.0 + 0.1 * jax.random.normal(k_g, (Cout,), jnp.float32)
    beta = 0.1 * jax.random.normal(k_b, (Cout,), jnp.float32)

    out = cnn_bn_forward(x, weight, gamma, beta, stride=stride, padding=pad)
    out = jax.block_until_ready(out)

    # Pure-JAX reference (PyTorch training-mode BN: batch mean, biased variance).
    conv_ref = jax.lax.conv_general_dilated(
        x, weight, (stride, stride), [(pad, pad), (pad, pad)],
        dimension_numbers=("NCHW", "OIHW", "NCHW"),
        precision=jax.lax.Precision.HIGHEST)
    mean = conv_ref.mean(axis=(0, 2, 3), keepdims=True)
    var = conv_ref.var(axis=(0, 2, 3), keepdims=True)
    ref = jnp.maximum(
        (conv_ref - mean) / jnp.sqrt(var + 1e-5)
        * gamma.reshape(1, -1, 1, 1) + beta.reshape(1, -1, 1, 1), 0.0)

    assert out.shape == ref.shape == (N, Cout, H, W)
    max_err = float(jnp.max(jnp.abs(out - ref)))
    # f32 MXU operands vs f32 HIGHEST reference; margin covers default MXU
    # precision passes on real hardware.
    assert jnp.allclose(out, ref, atol=2e-2, rtol=2e-2), f"max_err={max_err}"
    print("KERNEL_OK")
</pallas_src>

<mosaic_0001>
module attributes {stable_mosaic.version = 11 : i64} {
  func.func @_conv_bn_relu_kernel(%arg0: i32, %arg1: memref<2x4x18x18xf32, #tpu.memory_space<vmem>>, %arg2: memref<8x36xf32, #tpu.memory_space<vmem>>, %arg3: memref<8x2xf32, #tpu.memory_space<vmem>>, %arg4: memref<2x8x256xf32, #tpu.memory_space<vmem>>, %arg5: memref<36x512xf32, #tpu.memory_space<vmem>>) attributes {dimension_semantics = [#tpu.dimension_semantics<arbitrary>], iteration_bounds = array<i64: 1>, scalar_prefetch = 0 : i64, scratch_operands = 1 : i64, tpu.core_type = #tpu.core_type<tc>, window_params = [{pipeline_mode = #tpu.pipeline_mode<synchronous>, transform_indices = @transform_0, window_bounds = array<i64: 2, 4, 18, 18>}, {pipeline_mode = #tpu.pipeline_mode<synchronous>, transform_indices = @transform_1, window_bounds = array<i64: 8, 36>}, {pipeline_mode = #tpu.pipeline_mode<synchronous>, transform_indices = @transform_2, window_bounds = array<i64: 8, 2>}, {pipeline_mode = #tpu.pipeline_mode<synchronous>, transform_indices = @transform_3, window_bounds = array<i64: 2, 8, 256>}]} {
    %c0 = arith.constant 0 : index
    %c0_0 = arith.constant 0 : index
    %c0_1 = arith.constant 0 : index
    %c0_2 = arith.constant 0 : index
    %0 = vector.load %arg1[%c0, %c0_0, %c0_1, %c0_2] : memref<2x4x18x18xf32, #tpu.memory_space<vmem>>, vector<1x4x16x16xf32>
    %1 = vector.shape_cast %0 : vector<1x4x16x16xf32> to vector<4x16x16xf32>
    %2 = vector.shape_cast %1 : vector<4x16x16xf32> to vector<4x256xf32>
    %c0_3 = arith.constant 0 : index
    %c0_4 = arith.constant 0 : index
    %3 = vector.load %arg5[%c0_3, %c0_4] : memref<36x512xf32, #tpu.memory_space<vmem>>, vector<4x256xf32>
    tpu.vector_store %arg5[%c0_3, %c0_4], %2 {strides = array<i32>} : memref<36x512xf32, #tpu.memory_space<vmem>>, vector<4x256xf32>,
    %c0_5 = arith.constant 0 : index
    %c0_6 = arith.constant 0 : index
    %c0_7 = arith.constant 0 : index
    %c1 = arith.constant 1 : index
    %4 = vector.load %arg1[%c0_5, %c0_6, %c0_7, %c1] : memref<2x4x18x18xf32, #tpu.memory_space<vmem>>, vector<1x4x16x16xf32>
    %5 = vector.shape_cast %4 : vector<1x4x16x16xf32> to vector<4x16x16xf32>
    %6 = vector.shape_cast %5 : vector<4x16x16xf32> to vector<4x256xf32>
    %c4 = arith.constant 4 : index
    %c0_8 = arith.constant 0 : index
    %7 = vector.load %arg5[%c4, %c0_8] : memref<36x512xf32, #tpu.memory_space<vmem>>, vector<4x256xf32>
    tpu.vector_store %arg5[%c4, %c0_8], %6 {strides = array<i32>} : memref<36x512xf32, #tpu.memory_space<vmem>>, vector<4x256xf32>,
    %c0_9 = arith.constant 0 : index
    %c0_10 = arith.constant 0 : index
    %c0_11 = arith.constant 0 : index
    %c2 = arith.constant 2 : index
    %8 = vector.load %arg1[%c0_9, %c0_10, %c0_11, %c2] : memref<2x4x18x18xf32, #tpu.memory_space<vmem>>, vector<1x4x16x16xf32>
    %9 = vector.shape_cast %8 : vector<1x4x16x16xf32> to vector<4x16x16xf32>
    %10 = vector.shape_cast %9 : vector<4x16x16xf32> to vector<4x256xf32>
    %c8 = arith.constant 8 : index
    %c0_12 = arith.constant 0 : index
    %11 = vector.load %arg5[%c8, %c0_12] : memref<36x512xf32, #tpu.memory_space<vmem>>, vector<4x256xf32>
    tpu.vector_store %arg5[%c8, %c0_12], %10 {strides = array<i32>} : memref<36x512xf32, #tpu.memory_space<vmem>>, vector<4x256xf32>,
    %c0_13 = arith.constant 0 : index
    %c0_14 = arith.constant 0 : index
    %c1_15 = arith.constant 1 : index
    %c0_16 = arith.constant 0 : index
    %12 = vector.load %arg1[%c0_13, %c0_14, %c1_15, %c0_16] : memref<2x4x18x18xf32, #tpu.memory_space<vmem>>, vector<1x4x16x16xf32>
    %13 = vector.shape_cast %12 : vector<1x4x16x16xf32> to vector<4x16x16xf32>
    %14 = vector.shape_cast %13 : vector<4x16x16xf32> to vector<4x256xf32>
    %c12 = arith.constant 12 : index
    %c0_17 = arith.constant 0 : index
    %15 = vector.load %arg5[%c12, %c0_17] : memref<36x512xf32, #tpu.memory_space<vmem>>, vector<4x256xf32>
    tpu.vector_store %arg5[%c12, %c0_17], %14 {strides = array<i32>} : memref<36x512xf32, #tpu.memory_space<vmem>>, vector<4x256xf32>,
    %c0_18 = arith.constant 0 : index
    %c0_19 = arith.constant 0 : index
    %c1_20 = arith.constant 1 : index
    %c1_21 = arith.constant 1 : index
    %16 = vector.load %arg1[%c0_18, %c0_19, %c1_20, %c1_21] : memref<2x4x18x18xf32, #tpu.memory_space<vmem>>, vector<1x4x16x16xf32>
    %17 = vector.shape_cast %16 : vector<1x4x16x16xf32> to vector<4x16x16xf32>
    %18 = vector.shape_cast %17 : vector<4x16x16xf32> to vector<4x256xf32>
    %c16 = arith.constant 16 : index
    %c0_22 = arith.constant 0 : index
    %19 = vector.load %arg5[%c16, %c0_22] : memref<36x512xf32, #tpu.memory_space<vmem>>, vector<4x256xf32>
    tpu.vector_store %arg5[%c16, %c0_22], %18 {strides = array<i32>} : memref<36x512xf32, #tpu.memory_space<vmem>>, vector<4x256xf32>,
    %c0_23 = arith.constant 0 : index
    %c0_24 = arith.constant 0 : index
    %c1_25 = arith.constant 1 : index
    %c2_26 = arith.constant 2 : index
    %20 = vector.load %arg1[%c0_23, %c0_24, %c1_25, %c2_26] : memref<2x4x18x18xf32, #tpu.memory_space<vmem>>, vector<1x4x16x16xf32>
    %21 = vector.shape_cast %20 : vector<1x4x16x16xf32> to vector<4x16x16xf32>
    %22 = vector.shape_cast %21 : vector<4x16x16xf32> to vector<4x256xf32>
    %c20 = arith.constant 20 : index
    %c0_27 = arith.constant 0 : index
    %23 = vector.load %arg5[%c20, %c0_27] : memref<36x512xf32, #tpu.memory_space<vmem>>, vector<4x256xf32>
    tpu.vector_store %arg5[%c20, %c0_27], %22 {strides = array<i32>} : memref<36x512xf32, #tpu.memory_space<vmem>>, vector<4x256xf32>,
    %c0_28 = arith.constant 0 : index
    %c0_29 = arith.constant 0 : index
    %c2_30 = arith.constant 2 : index
    %c0_31 = arith.constant 0 : index
    %24 = vector.load %arg1[%c0_28, %c0_29, %c2_30, %c0_31] : memref<2x4x18x18xf32, #tpu.memory_space<vmem>>, vector<1x4x16x16xf32>
    %25 = vector.shape_cast %24 : vector<1x4x16x16xf32> to vector<4x16x16xf32>
    %26 = vector.shape_cast %25 : vector<4x16x16xf32> to vector<4x256xf32>
    %c24 = arith.constant 24 : index
    %c0_32 = arith.constant 0 : index
    %27 = vector.load %arg5[%c24, %c0_32] : memref<36x512xf32, #tpu.memory_space<vmem>>, vector<4x256xf32>
    tpu.vector_store %arg5[%c24, %c0_32], %26 {strides = array<i32>} : memref<36x512xf32, #tpu.memory_space<vmem>>, vector<4x256xf32>,
    %c0_33 = arith.constant 0 : index
    %c0_34 = arith.constant 0 : index
    %c2_35 = arith.constant 2 : index
    %c1_36 = arith.constant 1 : index
    %28 = vector.load %arg1[%c0_33, %c0_34, %c2_35, %c1_36] : memref<2x4x18x18xf32, #tpu.memory_space<vmem>>, vector<1x4x16x16xf32>
    %29 = vector.shape_cast %28 : vector<1x4x16x16xf32> to vector<4x16x16xf32>
    %30 = vector.shape_cast %29 : vector<4x16x16xf32> to vector<4x256xf32>
    %c28 = arith.constant 28 : index
    %c0_37 = arith.constant 0 : index
    %31 = vector.load %arg5[%c28, %c0_37] : memref<36x512xf32, #tpu.memory_space<vmem>>, vector<4x256xf32>
    tpu.vector_store %arg5[%c28, %c0_37], %30 {strides = array<i32>} : memref<36x512xf32, #tpu.memory_space<vmem>>, vector<4x256xf32>,
    %c0_38 = arith.constant 0 : index
    %c0_39 = arith.constant 0 : index
    %c2_40 = arith.constant 2 : index
    %c2_41 = arith.constant 2 : index
    %32 = vector.load %arg1[%c0_38, %c0_39, %c2_40, %c2_41] : memref<2x4x18x18xf32, #tpu.memory_space<vmem>>, vector<1x4x16x16xf32>
    %33 = vector.shape_cast %32 : vector<1x4x16x16xf32> to vector<4x16x16xf32>
    %34 = vector.shape_cast %33 : vector<4x16x16xf32> to vector<4x256xf32>
    %c32 = arith.constant 32 : index
    %c0_42 = arith.constant 0 : index
    %35 = vector.load %arg5[%c32, %c0_42] : memref<36x512xf32, #tpu.memory_space<vmem>>, vector<4x256xf32>
    tpu.vector_store %arg5[%c32, %c0_42], %34 {strides = array<i32>} : memref<36x512xf32, #tpu.memory_space<vmem>>, vector<4x256xf32>,
    %c1_43 = arith.constant 1 : index
    %c0_44 = arith.constant 0 : index
    %c0_45 = arith.constant 0 : index
    %c0_46 = arith.constant 0 : index
    %36 = vector.load %arg1[%c1_43, %c0_44, %c0_45, %c0_46] : memref<2x4x18x18xf32, #tpu.memory_space<vmem>>, vector<1x4x16x16xf32>
    %37 = vector.shape_cast %36 : vector<1x4x16x16xf32> to vector<4x16x16xf32>
    %38 = vector.shape_cast %37 : vector<4x16x16xf32> to vector<4x256xf32>
    %c0_47 = arith.constant 0 : index
    %c256 = arith.constant 256 : index
    %39 = vector.load %arg5[%c0_47, %c256] : memref<36x512xf32, #tpu.memory_space<vmem>>, vector<4x256xf32>
    tpu.vector_store %arg5[%c0_47, %c256], %38 {strides = array<i32>} : memref<36x512xf32, #tpu.memory_space<vmem>>, vector<4x256xf32>,
    %c1_48 = arith.constant 1 : index
    %c0_49 = arith.constant 0 : index
    %c0_50 = arith.constant 0 : index
    %c1_51 = arith.constant 1 : index
    %40 = vector.load %arg1[%c1_48, %c0_49, %c0_50, %c1_51] : memref<2x4x18x18xf32, #tpu.memory_space<vmem>>, vector<1x4x16x16xf32>
    %41 = vector.shape_cast %40 : vector<1x4x16x16xf32> to vector<4x16x16xf32>
    %42 = vector.shape_cast %41 : vector<4x16x16xf32> to vector<4x256xf32>
    %c4_52 = arith.constant 4 : index
    %c256_53 = arith.constant 256 : index
    %43 = vector.load %arg5[%c4_52, %c256_53] : memref<36x512xf32, #tpu.memory_space<vmem>>, vector<4x256xf32>
    tpu.vector_store %arg5[%c4_52, %c256_53], %42 {strides = array<i32>} : memref<36x512xf32, #tpu.memory_space<vmem>>, vector<4x256xf32>,
    %c1_54 = arith.constant 1 : index
    %c0_55 = arith.constant 0 : index
    %c0_56 = arith.constant 0 : index
    %c2_57 = arith.constant 2 : index
    %44 = vector.load %arg1[%c1_54, %c0_55, %c0_56, %c2_57] : memref<2x4x18x18xf32, #tpu.memory_space<vmem>>, vector<1x4x16x16xf32>
    %45 = vector.shape_cast %44 : vector<1x4x16x16xf32> to vector<4x16x16xf32>
    %46 = vector.shape_cast %45 : vector<4x16x16xf32> to vector<4x256xf32>
    %c8_58 = arith.constant 8 : index
    %c256_59 = arith.constant 256 : index
    %47 = vector.load %arg5[%c8_58, %c256_59] : memref<36x512xf32, #tpu.memory_space<vmem>>, vector<4x256xf32>
    tpu.vector_store %arg5[%c8_58, %c256_59], %46 {strides = array<i32>} : memref<36x512xf32, #tpu.memory_space<vmem>>, vector<4x256xf32>,
    %c1_60 = arith.constant 1 : index
    %c0_61 = arith.constant 0 : index
    %c1_62 = arith.constant 1 : index
    %c0_63 = arith.constant 0 : index
    %48 = vector.load %arg1[%c1_60, %c0_61, %c1_62, %c0_63] : memref<2x4x18x18xf32, #tpu.memory_space<vmem>>, vector<1x4x16x16xf32>
    %49 = vector.shape_cast %48 : vector<1x4x16x16xf32> to vector<4x16x16xf32>
    %50 = vector.shape_cast %49 : vector<4x16x16xf32> to vector<4x256xf32>
    %c12_64 = arith.constant 12 : index
    %c256_65 = arith.constant 256 : index
    %51 = vector.load %arg5[%c12_64, %c256_65] : memref<36x512xf32, #tpu.memory_space<vmem>>, vector<4x256xf32>
    tpu.vector_store %arg5[%c12_64, %c256_65], %50 {strides = array<i32>} : memref<36x512xf32, #tpu.memory_space<vmem>>, vector<4x256xf32>,
    %c1_66 = arith.constant 1 : index
    %c0_67 = arith.constant 0 : index
    %c1_68 = arith.constant 1 : index
    %c1_69 = arith.constant 1 : index
    %52 = vector.load %arg1[%c1_66, %c0_67, %c1_68, %c1_69] : memref<2x4x18x18xf32, #tpu.memory_space<vmem>>, vector<1x4x16x16xf32>
    %53 = vector.shape_cast %52 : vector<1x4x16x16xf32> to vector<4x16x16xf32>
    %54 = vector.shape_cast %53 : vector<4x16x16xf32> to vector<4x256xf32>
    %c16_70 = arith.constant 16 : index
    %c256_71 = arith.constant 256 : index
    %55 = vector.load %arg5[%c16_70, %c256_71] : memref<36x512xf32, #tpu.memory_space<vmem>>, vector<4x256xf32>
    tpu.vector_store %arg5[%c16_70, %c256_71], %54 {strides = array<i32>} : memref<36x512xf32, #tpu.memory_space<vmem>>, vector<4x256xf32>,
    %c1_72 = arith.constant 1 : index
    %c0_73 = arith.constant 0 : index
    %c1_74 = arith.constant 1 : index
    %c2_75 = arith.constant 2 : index
    %56 = vector.load %arg1[%c1_72, %c0_73, %c1_74, %c2_75] : memref<2x4x18x18xf32, #tpu.memory_space<vmem>>, vector<1x4x16x16xf32>
    %57 = vector.shape_cast %56 : vector<1x4x16x16xf32> to vector<4x16x16xf32>
    %58 = vector.shape_cast %57 : vector<4x16x16xf32> to vector<4x256xf32>
    %c20_76 = arith.constant 20 : index
    %c256_77 = arith.constant 256 : index
    %59 = vector.load %arg5[%c20_76, %c256_77] : memref<36x512xf32, #tpu.memory_space<vmem>>, vector<4x256xf32>
    tpu.vector_store %arg5[%c20_76, %c256_77], %58 {strides = array<i32>} : memref<36x512xf32, #tpu.memory_space<vmem>>, vector<4x256xf32>,
    %c1_78 = arith.constant 1 : index
    %c0_79 = arith.constant 0 : index
    %c2_80 = arith.constant 2 : index
    %c0_81 = arith.constant 0 : index
    %60 = vector.load %arg1[%c1_78, %c0_79, %c2_80, %c0_81] : memref<2x4x18x18xf32, #tpu.memory_space<vmem>>, vector<1x4x16x16xf32>
    %61 = vector.shape_cast %60 : vector<1x4x16x16xf32> to vector<4x16x16xf32>
    %62 = vector.shape_cast %61 : vector<4x16x16xf32> to vector<4x256xf32>
    %c24_82 = arith.constant 24 : index
    %c256_83 = arith.constant 256 : index
    %63 = vector.load %arg5[%c24_82, %c256_83] : memref<36x512xf32, #tpu.memory_space<vmem>>, vector<4x256xf32>
    tpu.vector_store %arg5[%c24_82, %c256_83], %62 {strides = array<i32>} : memref<36x512xf32, #tpu.memory_space<vmem>>, vector<4x256xf32>,
    %c1_84 = arith.constant 1 : index
    %c0_85 = arith.constant 0 : index
    %c2_86 = arith.constant 2 : index
    %c1_87 = arith.constant 1 : index
    %64 = vector.load %arg1[%c1_84, %c0_85, %c2_86, %c1_87] : memref<2x4x18x18xf32, #tpu.memory_space<vmem>>, vector<1x4x16x16xf32>
    %65 = vector.shape_cast %64 : vector<1x4x16x16xf32> to vector<4x16x16xf32>
    %66 = vector.shape_cast %65 : vector<4x16x16xf32> to vector<4x256xf32>
    %c28_88 = arith.constant 28 : index
    %c256_89 = arith.constant 256 : index
    %67 = vector.load %arg5[%c28_88, %c256_89] : memref<36x512xf32, #tpu.memory_space<vmem>>, vector<4x256xf32>
    tpu.vector_store %arg5[%c28_88, %c256_89], %66 {strides = array<i32>} : memref<36x512xf32, #tpu.memory_space<vmem>>, vector<4x256xf32>,
    %c1_90 = arith.constant 1 : index
    %c0_91 = arith.constant 0 : index
    %c2_92 = arith.constant 2 : index
    %c2_93 = arith.constant 2 : index
    %68 = vector.load %arg1[%c1_90, %c0_91, %c2_92, %c2_93] : memref<2x4x18x18xf32, #tpu.memory_space<vmem>>, vector<1x4x16x16xf32>
    %69 = vector.shape_cast %68 : vector<1x4x16x16xf32> to vector<4x16x16xf32>
    %70 = vector.shape_cast %69 : vector<4x16x16xf32> to vector<4x256xf32>
    %c32_94 = arith.constant 32 : index
    %c256_95 = arith.constant 256 : index
    %71 = vector.load %arg5[%c32_94, %c256_95] : memref<36x512xf32, #tpu.memory_space<vmem>>, vector<4x256xf32>
    tpu.vector_store %arg5[%c32_94, %c256_95], %70 {strides = array<i32>} : memref<36x512xf32, #tpu.memory_space<vmem>>, vector<4x256xf32>,
    %c0_96 = arith.constant 0 : index
    %c0_97 = arith.constant 0 : index
    %72 = vector.load %arg2[%c0_96, %c0_97] : memref<8x36xf32, #tpu.memory_space<vmem>>, vector<8x36xf32>
    %c0_98 = arith.constant 0 : index
    %c0_99 = arith.constant 0 : index
    %73 = vector.load %arg5[%c0_98, %c0_99] : memref<36x512xf32, #tpu.memory_space<vmem>>, vector<36x512xf32>
    %cst = arith.constant dense<0.000000e+00> : vector<8x512xf32>
    %74 = tpu.matmul %72, %73, %cst {dimension_numbers = #tpu.dot_dimension_numbers<[1], [0], [0], [1], [0, 0, 1, 1], [], []>} : vector<8x36xf32>, vector<36x512xf32>, vector<8x512xf32> -> vector<8x512xf32>
    %cst_100 = arith.constant dense<0.000000e+00> : vector<8xf32>
    %75 = vector.multi_reduction <add>, %74, %cst_100 [1] : vector<8x512xf32> to vector<8xf32>
    %76 = vector.shape_cast %75 : vector<8xf32> to vector<8x1xf32>
    %cst_101 = arith.constant 0.001953125 : f32
    %77 = vector.broadcast %cst_101 : f32 to vector<8x1xf32>
    %78 = arith.mulf %76, %77 : vector<8x1xf32>
    %79 = vector.broadcast %78 : vector<8x1xf32> to vector<8x512xf32>
    %80 = arith.subf %74, %79 : vector<8x512xf32>
    %81 = arith.mulf %80, %80 : vector<8x512xf32>
    %cst_102 = arith.constant dense<0.000000e+00> : vector<8xf32>
    %82 = vector.multi_reduction <add>, %81, %cst_102 [1] : vector<8x512xf32> to vector<8xf32>
    %83 = vector.shape_cast %82 : vector<8xf32> to vector<8x1xf32>
    %cst_103 = arith.constant 0.001953125 : f32
    %84 = vector.broadcast %cst_103 : f32 to vector<8x1xf32>
    %85 = arith.mulf %83, %84 : vector<8x1xf32>
    %c0_104 = arith.constant 0 : index
    %c0_105 = arith.constant 0 : index
    %86 = vector.load %arg3[%c0_104, %c0_105] : memref<8x2xf32, #tpu.memory_space<vmem>>, vector<8x1xf32>
    %c0_106 = arith.constant 0 : index
    %c1_107 = arith.constant 1 : index
    %87 = vector.load %arg3[%c0_106, %c1_107] : memref<8x2xf32, #tpu.memory_space<vmem>>, vector<8x1xf32>
    %cst_108 = arith.constant 9.99999974E-6 : f32
    %88 = vector.broadcast %cst_108 : f32 to vector<8x1xf32>
    %89 = arith.addf %85, %88 : vector<8x1xf32>
    %90 = math.rsqrt %89 : vector<8x1xf32>
    %91 = arith.mulf %86, %90 : vector<8x1xf32>
    %92 = vector.broadcast %91 : vector<8x1xf32> to vector<8x512xf32>
    %93 = arith.mulf %80, %92 : vector<8x512xf32>
    %94 = vector.broadcast %87 : vector<8x1xf32> to vector<8x512xf32>
    %95 = arith.addf %93, %94 : vector<8x512xf32>
    %cst_109 = arith.constant 0.000000e+00 : f32
    %96 = vector.broadcast %cst_109 : f32 to vector<8x512xf32>
    %97 = arith.maximumf %95, %96 : vector<8x512xf32>
    %98 = vector.extract_strided_slice %97 {offsets = [0, 0], sizes = [8, 256], strides = [1, 1]} : vector<8x512xf32> to vector<8x256xf32>
    %c0_110 = arith.constant 0 : index
    %c0_111 = arith.constant 0 : index
    %c0_112 = arith.constant 0 : index
    %99 = vector.load %arg4[%c0_110, %c0_111, %c0_112] : memref<2x8x256xf32, #tpu.memory_space<vmem>>, vector<1x8x256xf32>
    %100 = vector.shape_cast %99 : vector<1x8x256xf32> to vector<8x256xf32>
    %101 = vector.shape_cast %98 : vector<8x256xf32> to vector<1x8x256xf32>
    tpu.vector_store %arg4[%c0_110, %c0_111, %c0_112], %101 {strides = array<i32>} : memref<2x8x256xf32, #tpu.memory_space<vmem>>, vector<1x8x256xf32>,
    %102 = vector.extract_strided_slice %97 {offsets = [0, 256], sizes = [8, 256], strides = [1, 1]} : vector<8x512xf32> to vector<8x256xf32>
    %c1_113 = arith.constant 1 : index
    %c0_114 = arith.constant 0 : index
    %c0_115 = arith.constant 0 : index
    %103 = vector.load %arg4[%c1_113, %c0_114, %c0_115] : memref<2x8x256xf32, #tpu.memory_space<vmem>>, vector<1x8x256xf32>
    %104 = vector.shape_cast %103 : vector<1x8x256xf32> to vector<8x256xf32>
    %105 = vector.shape_cast %102 : vector<8x256xf32> to vector<1x8x256xf32>
    tpu.vector_store %arg4[%c1_113, %c0_114, %c0_115], %105 {strides = array<i32>} : memref<2x8x256xf32, #tpu.memory_space<vmem>>, vector<1x8x256xf32>,
    return
  }
  func.func @transform_0(%arg0: i32) -> (i32, i32, i32, i32) {
    %c0_i32 = arith.constant 0 : i32
    %c0_i32_0 = arith.constant 0 : i32
    %c0_i32_1 = arith.constant 0 : i32
    %c0_i32_2 = arith.constant 0 : i32
    %c0_i32_3 = arith.constant 0 : i32
    return %c0_i32, %c0_i32_0, %c0_i32_1, %c0_i32_2 : i32, i32, i32, i32
  }
  func.func @transform_1(%arg0: i32) -> (i32, i32) {
    %c0_i32 = arith.constant 0 : i32
    %c0_i32_0 = arith.constant 0 : i32
    %c0_i32_1 = arith.constant 0 : i32
    return %c0_i32, %c0_i32_0 : i32, i32
  }
  func.func @transform_2(%arg0: i32) -> (i32, i32) {
    %c0_i32 = arith.constant 0 : i32
    %c0_i32_0 = arith.constant 0 : i32
    %c0_i32_1 = arith.constant 0 : i32
    return %c0_i32, %c0_i32_0 : i32, i32
  }
  func.func @transform_3(%arg0: i32) -> (i32, i32, i32) {
    %c0_i32 = arith.constant 0 : i32
    %c0_i32_0 = arith.constant 0 : i32
    %c0_i32_1 = arith.constant 0 : i32
    %c0_i32_2 = arith.constant 0 : i32
    return %c0_i32, %c0_i32_0, %c0_i32_1 : i32, i32, i32
  }
}

</mosaic_0001>

<bundles_post_ra>
// kernel: tpu_custom_call.1
= control target key start
LH: loop header
LB: loop body
LE: loop exit
PB: predicated region body
PF: predicated region fallthrough
CT: control target
= control target key end

     0   :  { %v28_v3 = vlaneseq  ;;  %v4771_v5 = vmov 1983009808   ;;  %v7856_v8 = vmov 0.0   ;;  %v4773_v11 = vmov 1934713408   ;;  %s7848_s0 = inlined_call_operand.vmem [shape: f32[2,4,18,18], index: 0, kind: input, shape index: {}]   ;;  %s7849_s1 = inlined_call_operand.vmem [shape: f32[8,36], index: 1, kind: input, shape index: {}]   ;;  %s7850_s2 = inlined_call_operand.vmem [shape: f32[8,2], index: 2, kind: input, shape index: {}]   ;;  %s7851_s3 = inlined_call_operand.hbm [shape: f32[2,8,256], index: 3, kind: output, shape index: {}]  }
   0x1   :  { %v4810_v0 = vld [vmem:[%s7848_s0] sm:$0xff]  ;;  %v4815_v1 = vld [vmem:[%s7848_s0 + $0x18] sm:$0xff]  ;;  %v4820_v2 = vld [vmem:[%s7848_s0 + $0x30] sm:$0xff]  ;;  %v26_v6 = vunpack.c.l.s4 %v4771_v5  ;;  %4445 = vmatprep.mubr.f32.mxu0 %v7856_v8  ;;  %4516 = vmatprep.mubr.f32.mxu1 %v7856_v8  ;;  %v58_v12 = vunpack.c.l.s4 %v4773_v11 }
   0x2   :  { %v4825_v4 = vld [vmem:[%s7848_s0 + $0x48] sm:$0xff]  ;;  %v24_v9 = vcombine.high %v4810_v0, %v4820_v2  ;;  %v29_v10 = vshrl.u32 %v28_v3, 7  ;;  %v4839_v13 = vld [vmem:[%s7848_s0 + $0x20] sm:$0xff]  ;;  %v4844_v14 = vld [vmem:[%s7848_s0 + $0x38] sm:$0xff]  ;;  %v23_v18 = vcombine.low %v4810_v0, %v4820_v2 }
   0x3   :  { %v4830_v7 = vld [vmem:[%s7848_s0 + $0x8] sm:$0xff]  ;;  %v4849_v15 = vld [vmem:[%s7848_s0 + $0x50] sm:$0xff]  ;;  %v27_v16 = vunpack.c.0.s8 %v26_v6  ;;  %v40_v17 = vcombine.high %v4815_v1, %v4825_v4  ;;  %v39_v19 = vcombine.low %v4815_v1, %v4825_v4  ;;  %v59_v20 = vunpack.c.0.s8 %v58_v12 }
   0x4   :  { %v91_v21 = vcombine.low %v4830_v7, %v4844_v14  ;;  %v107_v22 = vcombine.low %v4839_v13, %v4849_v15 }
   0x5   :  { %v4861_v23 = vsub.s32 %v27_v16, %v29_v10  ;;  %v4863_v24 = vsub.s32 %v59_v20, %v29_v10 }
   0x7   :  { %v38_v25 = vrot.slane %v24_v9, %v4861_v23  ;;  %v54_v26 = vrot.slane %v40_v17, %v4861_v23  ;;  %v31_v27 = vrot.slane %v23_v18, %v4861_v23  ;;  %v47_v28 = vrot.slane %v39_v19, %v4861_v23 }
   0x8   :  { %v99_v29 = vrot.slane %v91_v21, %v4861_v23  ;;  %v115_v30 = vrot.slane %v107_v22, %v4861_v23 }
   0x9   :  { %v71_v31 = vcombine.low %v38_v25, %v54_v26  ;;  %v56_v32 = vcombine.high %v31_v27, %v47_v28  ;;  %v55_v33 = vcombine.low %v31_v27, %v47_v28  ;;  %v72_v34 = vcombine.high %v38_v25, %v54_v26 }
   0xb   :  { %v79_v35 = vrot.slane %v71_v31, %v4863_v24  ;;  %v70_v36 = vrot.slane %v56_v32, %v4863_v24  ;;  %v4874_v37 = vrot.slane %v55_v33, %v4863_v24 }
   0xc   :  { %8 = vsyncpa [#allocation4], 0  ;;  %v92_v38 = vcombine.high %v4830_v7, %v4844_v14  ;;  %v108_v39 = vcombine.high %v4839_v13, %v4849_v15  ;;  %s4774_s28 = smov 64   ;;  %s4775_s29 = smov 32   ;;  %v86_v40 = vrot.slane %v72_v34, %v4863_v24  ;;  %v123_v42 = vcombine.low %v99_v29, %v115_v30  ;;  %v4928_v59 = vld [vmem:[%s7848_s0 + $0x1] sm:$0xff]  ;;  %v4933_v60 = vld [vmem:[%s7848_s0 + $0x19] sm:$0xff] }
   0xd   :  { %172 = vrot.lane.b32.xlu1 %v79_v35, %s4774_s28  ;;  %164 = vrot.lane.b32.xlu0 %v70_v36, %s4775_s29  ;;  %v87_v41 = vcombine.high %v4874_v37, %v7856_v8  ;;  %v124_v43 = vcombine.high %v99_v29, %v115_v30  ;;  %v89_v46 = vcombine.high %v79_v35, %v7856_v8  ;;  %s4776_s30 = smov 96   ;;  %s4777_s4 = smov 16   ;;  %v4938_v61 = vld [vmem:[%s7848_s0 + $0x31] sm:$0xff]  ;;  %v4943_v62 = vld [vmem:[%s7848_s0 + $0x49] sm:$0xff]  ;;  %vm215_vm0 = vcmask 130048  }
   0xe   :  { %v106_v44 = vrot.slane %v92_v38, %v4861_v23  ;;  %v122_v45 = vrot.slane %v108_v39, %v4861_v23  ;;  %v88_v47 = vcombine.high %v70_v36, %v7856_v8  ;;  %v4892_v48 = vrot.slane %v123_v42, %v4863_v24  ;;  %s4778_s5 = smov 48   ;;  %s4779_s6 = smov 80  }
   0xf   :  { %v90_v51 = vcombine.high %v86_v40, %v7856_v8  ;;  %v138_v52 = vrot.slane %v124_v43, %v4863_v24  ;;  %s4780_s7 = smov 112   ;;  %s4781_s8 = smov 127   ;;  %v748_v63 = vcombine.low %v4928_v59, %v4938_v61  ;;  %v764_v3 = vcombine.low %v4933_v60, %v4943_v62 }
  0x10   :  { %v139_v49 = vcombine.low %v106_v44, %v122_v45  ;;  %v155_v50 = vcombine.high %v4892_v48, %v7856_v8  ;;  %v140_v55 = vcombine.high %v106_v44, %v122_v45  ;;  %s4782_s17 = smov 126   ;;  %v749_v10 = vcombine.high %v4928_v59, %v4938_v61 }
  0x11   :  { %180 = vrot.lane.b32.xlu1 %v86_v40, %s4776_s30  ;;  %160 = vrot.lane.b32.xlu0 %v87_v41, %s4777_s4  ;;  %v156_v53 = vcombine.high %v138_v52, %v7856_v8  ;;  %v756_v5 = vrot.slane %v748_v63, %v4861_v23  ;;  %v772_v6 = vrot.slane %v764_v3, %v4861_v23  ;;  %vm217_vm1 = vcmask 261120  }
  0x12   :  { %v147_v54 = vrot.slane %v139_v49, %v4863_v24  ;;  %v154_v57 = vrot.slane %v140_v55, %v4863_v24  ;;  %v763_v12 = vrot.slane %v749_v10, %v4861_v23  ;;  %vm219_vm2 = vcmask 392192  }
  0x13   :  { %v780_v9 = vcombine.low %v756_v5, %v772_v6  ;;  %v781_v11 = vcombine.high %v756_v5, %v772_v6  ;;  %vm221_vm3 = vcmask 523264   ;;  %vm223_vm4 = vcmask 654336  }
  0x14   :  { %v157_v56 = vcombine.high %v147_v54, %v7856_v8  ;;  %v158_v58 = vcombine.high %v154_v57, %v7856_v8  ;;  %vm225_vm5 = vcmask 785408   ;;  %vm227_vm6 = vcmask 916480  }
  0x15   :  { %168 = vrot.lane.b32.xlu1 %v88_v47, %s4778_s5  ;;  %176 = vrot.lane.b32.xlu0 %v89_v46, %s4779_s6  ;;  %vm4368_vm7 = vcmask 1043456   ;;  %vm4364_vm8 = vcmask 293888  }
  0x19   :  { %188 = vrot.lane.b32.xlu1 %v155_v50, %s4777_s4  ;;  %184 = vrot.lane.b32.xlu0 %v90_v51, %s4780_s7 }
  0x1d   :  { %196 = vrot.lane.b32.xlu1 %v156_v53, %s4778_s5  ;;  %192 = vrot.lane.b32.xlu0 %v138_v52, %s4775_s29 }
  0x21   :  { %204 = vrot.lane.b32.xlu1 %v157_v56, %s4779_s6  ;;  %200 = vrot.lane.b32.xlu0 %v147_v54, %s4774_s28 }
  0x25   :  { %212 = vrot.lane.b32.xlu1 %v158_v58, %s4780_s7  ;;  %208 = vrot.lane.b32.xlu0 %v154_v57, %s4776_s30 }
  0x29   :  { %256 = vrot.lane.b32.xlu1 %v4830_v7, %s4781_s8  ;;  %254 = vrot.lane.b32.xlu0 %v4810_v0, %s4781_s8 }
  0x2d   :  { %260 = vrot.lane.b32.xlu1 %v4839_v13, %s4781_s8  ;;  %258 = vrot.lane.b32.xlu0 %v4815_v1, %s4781_s8 }
  0x31   :  { %264 = vrot.lane.b32.xlu1 %v4844_v14, %s4781_s8  ;;  %262 = vrot.lane.b32.xlu0 %v4820_v2, %s4781_s8 }
  0x35   :  { %268 = vrot.lane.b32.xlu1 %v4849_v15, %s4781_s8  ;;  %266 = vrot.lane.b32.xlu0 %v4825_v4, %s4781_s8 }
  0x39   :  { %510 = vrot.lane.b32.xlu1 %v4830_v7, %s4782_s17  ;;  %508 = vrot.lane.b32.xlu0 %v4810_v0, %s4782_s17  ;;  %v765_v7 = vcombine.high %v4933_v60, %v4943_v62  ;;  %v4972_v0 = vrot.slane %v780_v9, %v4863_v24 }
  0x3d   :  { %514 = vrot.lane.b32.xlu1 %v4839_v13, %s4782_s17  ;;  %512 = vrot.lane.b32.xlu0 %v4815_v1, %s4782_s17  ;;  %v779_v1 = vrot.slane %v765_v7, %v4861_v23  ;;  %v795_v13 = vrot.slane %v781_v11, %v4863_v24 }
  0x3f   :  { %v796_v16 = vcombine.low %v763_v12, %v779_v1  ;;  %v813_v17 = vcombine.high %v795_v13, %v7856_v8  ;;  %v797_v18 = vcombine.high %v763_v12, %v779_v1 }
  0x41   :  { %518 = vrot.lane.b32.xlu1 %v4844_v14, %s4782_s17  ;;  %516 = vrot.lane.b32.xlu0 %v4820_v2, %s4782_s17  ;;  %v812_v14 = vcombine.high %v4972_v0, %v7856_v8  ;;  %v804_v2 = vrot.slane %v796_v16, %v4863_v24 }
  0x45   :  { %522 = vrot.lane.b32.xlu1 %v4849_v15, %s4782_s17  ;;  %520 = vrot.lane.b32.xlu0 %v4825_v4, %s4782_s17  ;;  %v4990_v4 = vrot.slane %v797_v18, %v4863_v24  ;;  %v814_v15 = vcombine.high %v804_v2, %v7856_v8 }
  0x49   :  { %889 = vrot.lane.b32.xlu1 %v795_v13, %s4775_s29  ;;  %885 = vrot.lane.b32.xlu0 %v812_v14, %s4777_s4 }
  0x4d   :  { %897 = vrot.lane.b32.xlu1 %v804_v2, %s4774_s28  ;;  %893 = vrot.lane.b32.xlu0 %v813_v17, %s4778_s5 }
  0x51   :  { %905 = vrot.lane.b32.xlu1 %v4990_v4, %s4776_s30  ;;  %901 = vrot.lane.b32.xlu0 %v814_v15, %s4779_s6 }
  0x7f   :  { %v173_v19 = vpop.permute.xlu1 %172  ;;  %v165_v20 = vpop.permute.xlu0 %164 }
  0x83   :  { %v181_v21 = vpop.permute.xlu1 %180  ;;  %v161_v22 = vpop.permute.xlu0 %160 }
  0x84   :  { %v216_v25 = vsel %vm215_vm0, %v4874_v37, %v161_v22 }
  0x85   :  { %v218_v27 = vsel %vm217_vm1, %v216_v25, %v165_v20 }
  0x87   :  { %v169_v26 = vpop.permute.xlu1 %168  ;;  %v177_v28 = vpop.permute.xlu0 %176 }
  0x88   :  { %v220_v29 = vsel %vm219_vm2, %v218_v27, %v169_v26 }
  0x89   :  { %v222_v30 = vsel %vm221_vm3, %v220_v29, %v173_v19 }
  0x8a   :  { %v224_v31 = vsel %vm223_vm4, %v222_v30, %v177_v28 }
  0x8b   :  { %v189_v32 = vpop.permute.xlu1 %188  ;;  %v226_v33 = vsel %vm225_vm5, %v224_v31, %v181_v21  ;;  %v185_v34 = vpop.permute.xlu0 %184 }
  0x8c   :  { %v228_v35 = vsel %vm227_vm6, %v226_v33, %v185_v34  ;;  %v229_v36 = vsel %vm215_vm0, %v4892_v48, %v189_v32 }
  0x8d   :  { %236 = vst [vmem:[#allocation2] sm:$0xf] %v228_v35 }
  0x8f   :  { %v197_v37 = vpop.permute.xlu1 %196  ;;  %v193_v38 = vpop.permute.xlu0 %192 }
  0x90   :  { %v230_v39 = vsel %vm217_vm1, %v229_v36, %v193_v38 }
  0x91   :  { %v231_v41 = vsel %vm219_vm2, %v230_v39, %v197_v37 }
  0x93   :  { %v205_v40 = vpop.permute.xlu1 %204  ;;  %v201_v42 = vpop.permute.xlu0 %200 }
  0x94   :  { %v232_v43 = vsel %vm221_vm3, %v231_v41, %v201_v42 }
  0x95   :  { %v233_v45 = vsel %vm223_vm4, %v232_v43, %v205_v40 }
  0x97   :  { %v213_v44 = vpop.permute.xlu1 %212  ;;  %v209_v46 = vpop.permute.xlu0 %208 }
  0x98   :  { %v234_v47 = vsel %vm225_vm5, %v233_v45, %v209_v46 }
  0x99   :  { %v235_v49 = vsel %vm227_vm6, %v234_v47, %v213_v44 }
  0x9a   :  { %237 = vst [vmem:[#allocation2 + $0x68] sm:$0xf] %v235_v49 }
  0x9b   :  { %v257_v48 = vpop.permute.xlu1 %256  ;;  %v255_v50 = vpop.permute.xlu0 %254 }
  0x9f   :  { %v261_v51 = vpop.permute.xlu1 %260  ;;  %v259_v52 = vpop.permute.xlu0 %258 }
  0xa3   :  { %v265_v53 = vpop.permute.xlu1 %264  ;;  %v263_v54 = vpop.permute.xlu0 %262 }
  0xa4   :  { %v346_v55 = vcombine.low %v257_v48, %v265_v53  ;;  %v278_v56 = vcombine.low %v255_v50, %v263_v54  ;;  %v347_v57 = vcombine.high %v257_v48, %v265_v53  ;;  %v279_v7 = vcombine.high %v255_v50, %v263_v54 }
  0xa6   :  { %v5013_v10 = vrot.slane %v346_v55, %v4861_v23  ;;  %v5016_v11 = vrot.slane %v278_v56, %v4861_v23  ;;  %v361_v17 = vrot.slane %v347_v57, %v4861_v23  ;;  %v293_v19 = vrot.slane %v279_v7, %v4861_v23 }
  0xa7   :  { %v269_v58 = vpop.permute.xlu1 %268  ;;  %v267_v63 = vpop.permute.xlu0 %266 }
  0xa8   :  { %v362_v3 = vcombine.low %v261_v51, %v269_v58  ;;  %v363_v5 = vcombine.high %v261_v51, %v269_v58  ;;  %v294_v6 = vcombine.low %v259_v52, %v267_v63  ;;  %v295_v9 = vcombine.high %v259_v52, %v267_v63 }
  0xaa   :  { %v5019_v12 = vrot.slane %v362_v3, %v4861_v23  ;;  %v377_v1 = vrot.slane %v363_v5, %v4861_v23  ;;  %v5023_v13 = vrot.slane %v294_v6, %v4861_v23  ;;  %v309_v14 = vrot.slane %v295_v9, %v4861_v23 }
  0xab   :  { %v511_v16 = vpop.permute.xlu1 %510  ;;  %v509_v2 = vpop.permute.xlu0 %508 }
  0xac   :  { %v379_v18 = vcombine.high %v5013_v10, %v5019_v12  ;;  %v311_v15 = vcombine.high %v5016_v11, %v5023_v13  ;;  %v394_v22 = vcombine.low %v361_v17, %v377_v1  ;;  %v326_v27 = vcombine.low %v293_v19, %v309_v14 }
  0xad   :  { %v395_v29 = vcombine.high %v361_v17, %v377_v1  ;;  %v327_v33 = vcombine.high %v293_v19, %v309_v14  ;;  %v378_v3 = vcombine.low %v5013_v10, %v5019_v12  ;;  %v310_v5 = vcombine.low %v5016_v11, %v5023_v13 }
  0xae   :  { %v5033_v20 = vrot.slane %v379_v18, %v4863_v24  ;;  %v5036_v21 = vrot.slane %v311_v15, %v4863_v24  ;;  %v5043_v28 = vrot.slane %v394_v22, %v4863_v24  ;;  %v334_v32 = vrot.slane %v326_v27, %v4863_v24 }
  0xaf   :  { %v515_v25 = vpop.permute.xlu1 %514  ;;  %v513_v26 = vpop.permute.xlu0 %512  ;;  %v409_v36 = vrot.slane %v395_v29, %v4863_v24  ;;  %v341_v41 = vrot.slane %v327_v33, %v4863_v24  ;;  %v5079_v10 = vrot.slane %v378_v3, %v4863_v24  ;;  %v5193_v3 = vld [vmem:[%s7848_s0 + $0x3a] sm:$0xff] }
  0xb0   :  { %447 = vrot.lane.b32.xlu0 %v5033_v20, %s4775_s29  ;;  %419 = vrot.lane.b32.xlu1 %v5036_v21, %s4775_s29  ;;  %v343_v13 = vcombine.high %v5036_v21, %v7856_v8  ;;  %v411_v17 = vcombine.high %v5033_v20, %v7856_v8  ;;  %v344_v19 = vcombine.high %v334_v32, %v7856_v8  ;;  %v5106_v20 = vld [vmem:[%s7848_s0 + $0x21] sm:$0xff]  ;;  %v5113_v21 = vld [vmem:[%s7848_s0 + $0x39] sm:$0xff] }
  0xb1   :  { %v410_v12 = vcombine.high %v5079_v10, %v7856_v8  ;;  %v412_v22 = vcombine.high %v5043_v28, %v7856_v8  ;;  %v345_v27 = vcombine.high %v341_v41, %v7856_v8 }
  0xb3   :  { %v519_v30 = vpop.permute.xlu1 %518  ;;  %v517_v31 = vpop.permute.xlu0 %516 }
  0xb4   :  { %455 = vrot.lane.b32.xlu0 %v5043_v28, %s4774_s28  ;;  %v600_v34 = vcombine.low %v511_v16, %v519_v30  ;;  %v532_v35 = vcombine.low %v509_v2, %v517_v31  ;;  %427 = vrot.lane.b32.xlu1 %v334_v32, %s4774_s28  ;;  %v601_v37 = vcombine.high %v511_v16, %v519_v30 }
  0xb5   :  { %v533_v38 = vcombine.high %v509_v2, %v517_v31  ;;  %v5076_v2 = vrot.slane %v310_v5, %v4863_v24  ;;  %v413_v28 = vcombine.high %v409_v36, %v7856_v8  ;;  %v5198_v5 = vld [vmem:[%s7848_s0 + $0x22] sm:$0xff] }
  0xb6   :  { %v608_v46 = vrot.slane %v600_v34, %v4861_v23  ;;  %v540_v47 = vrot.slane %v532_v35, %v4861_v23  ;;  %v615_v52 = vrot.slane %v601_v37, %v4861_v23 }
  0xb7   :  { %v523_v39 = vpop.permute.xlu1 %522  ;;  %v521_v40 = vpop.permute.xlu0 %520  ;;  %v547_v53 = vrot.slane %v533_v38, %v4861_v23  ;;  %v342_v11 = vcombine.high %v5076_v2, %v7856_v8 }
  0xb8   :  { %v616_v42 = vcombine.low %v515_v25, %v523_v39  ;;  %v617_v43 = vcombine.high %v515_v25, %v523_v39  ;;  %v548_v44 = vcombine.low %v513_v26, %v521_v40  ;;  %v549_v45 = vcombine.high %v513_v26, %v521_v40  ;;  %463 = vrot.lane.b32.xlu0 %v409_v36, %s4776_s30  ;;  %v5101_v25 = vld [vmem:[%s7848_s0 + $0x9] sm:$0xff]  ;;  %v5118_v26 = vld [vmem:[%s7848_s0 + $0x51] sm:$0xff] }
  0xb9   :  { %435 = vrot.lane.b32.xlu1 %v341_v41, %s4776_s30  ;;  %v816_v31 = vcombine.low %v5101_v25, %v5113_v21  ;;  %v832_v32 = vcombine.low %v5106_v20, %v5118_v26  ;;  %v817_v40 = vcombine.high %v5101_v25, %v5113_v21  ;;  %v833_v41 = vcombine.high %v5106_v20, %v5118_v26 }
  0xba   :  { %v624_v49 = vrot.slane %v616_v42, %v4861_v23  ;;  %v631_v48 = vrot.slane %v617_v43, %v4861_v23  ;;  %v556_v50 = vrot.slane %v548_v44, %v4861_v23  ;;  %v563_v51 = vrot.slane %v549_v45, %v4861_v23 }
  0xbb   :  { %v824_v35 = vrot.slane %v816_v31, %v4861_v23  ;;  %v840_v36 = vrot.slane %v832_v32, %v4861_v23 }
  0xbc   :  { %v633_v54 = vcombine.high %v608_v46, %v624_v49  ;;  %v565_v55 = vcombine.high %v540_v47, %v556_v50  ;;  %v648_v58 = vcombine.low %v615_v52, %v631_v48  ;;  %v580_v63 = vcombine.low %v547_v53, %v563_v51 }
  0xbd   :  { %v649_v7 = vcombine.high %v615_v52, %v631_v48  ;;  %v581_v1 = vcombine.high %v547_v53, %v563_v51  ;;  %v632_v18 = vcombine.low %v608_v46, %v624_v49  ;;  %v564_v15 = vcombine.low %v540_v47, %v556_v50 }
  0xbe   :  { %v647_v56 = vrot.slane %v633_v54, %v4863_v24  ;;  %v579_v57 = vrot.slane %v565_v55, %v4863_v24  ;;  %v656_v6 = vrot.slane %v648_v58, %v4863_v24  ;;  %v588_v9 = vrot.slane %v580_v63, %v4863_v24  ;;  %v5184_v63 = vld [vmem:[%s7848_s0 + $0xa] sm:$0xff] }
  0xbf   :  { %v663_v14 = vrot.slane %v649_v7, %v4863_v24  ;;  %v595_v16 = vrot.slane %v581_v1, %v4863_v24  ;;  %v5123_v29 = vrot.slane %v632_v18, %v4863_v24  ;;  %v5126_v30 = vrot.slane %v564_v15, %v4863_v24  ;;  %v5229_v7 = vld [vmem:[%s7848_s0 + $0x32] sm:$0xff]  ;;  %v5234_v1 = vld [vmem:[%s7848_s0 + $0x1a] sm:$0xff] }
  0xc0   :  { %701 = vrot.lane.b32.xlu0 %v647_v56, %s4775_s29  ;;  %673 = vrot.lane.b32.xlu1 %v579_v57, %s4775_s29  ;;  %v665_v37 = vcombine.high %v647_v56, %v7856_v8  ;;  %v597_v38 = vcombine.high %v579_v57, %v7856_v8  ;;  %v848_v39 = vcombine.low %v824_v35, %v840_v36 }
  0xc1   :  { %v664_v33 = vcombine.high %v5123_v29, %v7856_v8  ;;  %v596_v34 = vcombine.high %v5126_v30, %v7856_v8  ;;  %v666_v42 = vcombine.high %v656_v6, %v7856_v8  ;;  %v598_v43 = vcombine.high %v588_v9, %v7856_v8 }
  0xc2   :  { %v5153_v44 = vrot.slane %v848_v39, %v4863_v24  ;;  %v849_v45 = vcombine.high %v824_v35, %v840_v36  ;;  %v831_v46 = vrot.slane %v817_v40, %v4861_v23  ;;  %v847_v47 = vrot.slane %v833_v41, %v4861_v23 }
  0xc3   :  { %v667_v49 = vcombine.high %v663_v14, %v7856_v8  ;;  %v599_v48 = vcombine.high %v595_v16, %v7856_v8  ;;  %v815_v50 = vcombine.high %v4990_v4, %v7856_v8 }
  0xc4   :  { %709 = vrot.lane.b32.xlu0 %v656_v6, %s4774_s28  ;;  %681 = vrot.lane.b32.xlu1 %v588_v9, %s4774_s28  ;;  %v880_v51 = vcombine.high %v5153_v44, %v7856_v8  ;;  %v863_v52 = vrot.slane %v849_v45, %v4863_v24  ;;  %v864_v53 = vcombine.low %v831_v46, %v847_v47  ;;  %v5207_v6 = vld [vmem:[%s7848_s0 + $0x52] sm:$0xff]  ;;  %v5220_v9 = vld [vmem:[%s7848_s0 + $0x2] sm:$0xff] }
  0xc5   :  { %v865_v56 = vcombine.high %v831_v46, %v847_v47 }
  0xc6   :  { %v881_v54 = vcombine.high %v863_v52, %v7856_v8  ;;  %v872_v55 = vrot.slane %v864_v53, %v4863_v24 }
  0xc7   :  { %v879_v57 = vrot.slane %v865_v56, %v4863_v24 }
  0xc8   :  { %717 = vrot.lane.b32.xlu0 %v663_v14, %s4776_s30  ;;  %689 = vrot.lane.b32.xlu1 %v595_v16, %s4776_s30  ;;  %v882_v4 = vcombine.high %v872_v55, %v7856_v8  ;;  %v5240_v14 = vpop.permute.xlu1 %889  ;;  %v5242_v16 = vpop.permute.xlu0 %885 }
  0xc9   :  { %v883_v58 = vcombine.high %v879_v57, %v7856_v8 }
  0xcc   :  { %415 = vrot.lane.b32.xlu0 %v342_v11, %s4777_s4  ;;  %443 = vrot.lane.b32.xlu1 %v410_v12, %s4777_s4  ;;  %v5247_v11 = vld [vmem:[%s7848_s0 + $0x4a] sm:$0xff]  ;;  %v5253_v12 = vpop.permute.xlu1 %897 }
  0xd0   :  { %423 = vrot.lane.b32.xlu0 %v343_v13, %s4778_s5  ;;  %451 = vrot.lane.b32.xlu1 %v411_v17, %s4778_s5  ;;  %v5255_v13 = vpop.permute.xlu0 %893  ;;  %v5265_v17 = vpop.permute.xlu1 %905 }
  0xd4   :  { %431 = vrot.lane.b32.xlu0 %v344_v19, %s4779_s6  ;;  %459 = vrot.lane.b32.xlu1 %v412_v22, %s4779_s6  ;;  %v5267_v18 = vpop.permute.xlu0 %901 }
  0xd8   :  { %439 = vrot.lane.b32.xlu0 %v345_v27, %s4780_s7  ;;  %467 = vrot.lane.b32.xlu1 %v413_v28, %s4780_s7 }
  0xdc   :  { %697 = vrot.lane.b32.xlu1 %v664_v33, %s4777_s4  ;;  %669 = vrot.lane.b32.xlu0 %v596_v34, %s4777_s4 }
  0xe0   :  { %705 = vrot.lane.b32.xlu1 %v665_v37, %s4778_s5  ;;  %677 = vrot.lane.b32.xlu0 %v597_v38, %s4778_s5 }
  0xe4   :  { %713 = vrot.lane.b32.xlu1 %v666_v42, %s4779_s6  ;;  %685 = vrot.lane.b32.xlu0 %v598_v43, %s4779_s6 }
  0xe8   :  { %721 = vrot.lane.b32.xlu1 %v667_v49, %s4780_s7  ;;  %693 = vrot.lane.b32.xlu0 %v599_v48, %s4780_s7 }
  0xec   :  { %913 = vrot.lane.b32.xlu1 %v880_v51, %s4777_s4  ;;  %909 = vrot.lane.b32.xlu0 %v815_v50, %s4780_s7 }
  0xf0   :  { %921 = vrot.lane.b32.xlu1 %v881_v54, %s4778_s5  ;;  %917 = vrot.lane.b32.xlu0 %v863_v52, %s4775_s29  ;;  %v4646_v52 = vld [vmem:[%s7848_s0 + $0x62] sm:$0xff] }
  0xf4   :  { %929 = vrot.lane.b32.xlu1 %v882_v4, %s4779_s6  ;;  %925 = vrot.lane.b32.xlu0 %v872_v55, %s4774_s28 }
  0xf8   :  { %937 = vrot.lane.b32.xlu1 %v883_v58, %s4780_s7  ;;  %933 = vrot.lane.b32.xlu0 %v879_v57, %s4776_s30  ;;  %v4652_v58 = vld [vmem:[%s7848_s0 + $0xaa] sm:$0xff] }
  0xfc   :  { %1698 = vrot.lane.b32.xlu1 %v5184_v63, %s4781_s8  ;;  %978 = vrot.lane.b32.xlu0 %v4928_v59, %s4781_s8 }
 0x100   :  { %1706 = vrot.lane.b32.xlu1 %v5193_v3, %s4781_s8  ;;  %1702 = vrot.lane.b32.xlu0 %v5198_v5, %s4781_s8 }
 0x104   :  { %1952 = vrot.lane.b32.xlu1 %v5184_v63, %s4782_s17  ;;  %1710 = vrot.lane.b32.xlu0 %v5207_v6, %s4781_s8 }
 0x108   :  { %1960 = vrot.lane.b32.xlu1 %v5193_v3, %s4782_s17  ;;  %1956 = vrot.lane.b32.xlu0 %v5198_v5, %s4782_s17 }
 0x10c   :  { %1696 = vrot.lane.b32.xlu1 %v5220_v9, %s4781_s8  ;;  %1964 = vrot.lane.b32.xlu0 %v5207_v6, %s4782_s17 }
 0x110   :  { %1704 = vrot.lane.b32.xlu1 %v5229_v7, %s4781_s8  ;;  %1700 = vrot.lane.b32.xlu0 %v5234_v1, %s4781_s8 }
 0x114   :  { %1950 = vrot.lane.b32.xlu1 %v5220_v9, %s4782_s17  ;;  %1708 = vrot.lane.b32.xlu0 %v5247_v11, %s4781_s8 }
 0x118   :  { %1958 = vrot.lane.b32.xlu1 %v5229_v7, %s4782_s17  ;;  %1954 = vrot.lane.b32.xlu0 %v5234_v1, %s4782_s17 }
 0x11c   :  { %1228 = vrot.lane.b32.xlu1 %v5101_v25, %s4782_s17  ;;  %1962 = vrot.lane.b32.xlu0 %v5247_v11, %s4782_s17 }
 0x120   :  { %1236 = vrot.lane.b32.xlu1 %v5113_v21, %s4782_s17  ;;  %1232 = vrot.lane.b32.xlu0 %v5106_v20, %s4782_s17 }
 0x122   :  { %v420_v15 = vpop.permute.xlu1 %419  ;;  %v448_v19 = vpop.permute.xlu0 %447 }
 0x124   :  { %1226 = vrot.lane.b32.xlu1 %v4928_v59, %s4782_s17  ;;  %1240 = vrot.lane.b32.xlu0 %v5118_v26, %s4782_s17  ;;  %v4647_v59 = vld [vmem:[%s7848_s0 + $0x6a] sm:$0xff] }
 0x126   :  { %v428_v22 = vpop.permute.xlu1 %427  ;;  %v456_v27 = vpop.permute.xlu0 %455 }
 0x128   :  { %1234 = vrot.lane.b32.xlu1 %v4938_v61, %s4782_s17  ;;  %1230 = vrot.lane.b32.xlu0 %v4933_v60, %s4782_s17 }
 0x12a   :  { %v464_v31 = vpop.permute.xlu0 %463 }
 0x12b   :  { %v436_v28 = vpop.permute.xlu1 %435 }
 0x12c   :  { %980 = vrot.lane.b32.xlu1 %v5101_v25, %s4781_s8  ;;  %1238 = vrot.lane.b32.xlu0 %v4943_v62, %s4782_s17  ;;  %v4651_v25 = vld [vmem:[%s7848_s0 + $0x9a] sm:$0xff] }
 0x130   :  { %988 = vrot.lane.b32.xlu1 %v5113_v21, %s4781_s8  ;;  %984 = vrot.lane.b32.xlu0 %v5106_v20, %s4781_s8  ;;  %v4649_v20 = vld [vmem:[%s7848_s0 + $0x82] sm:$0xff] }
 0x132   :  { %v5292_v32 = vpop.permute.xlu1 %673  ;;  %v702_v33 = vpop.permute.xlu0 %701 }
 0x134   :  { %3859 = vrot.lane.b32.xlu1 %v4647_v59, %s4781_s8  ;;  %992 = vrot.lane.b32.xlu0 %v5118_v26, %s4781_s8  ;;  %v4653_v26 = vld [vmem:[%s7848_s0 + $0xb2] sm:$0xff] }
 0x136   :  { %v5303_v21 = vpop.permute.xlu1 %681  ;;  %v5305_v34 = vpop.permute.xlu0 %709 }
 0x138   :  { %3867 = vrot.lane.b32.xlu1 %v4651_v25, %s4781_s8  ;;  %3863 = vrot.lane.b32.xlu0 %v4649_v20, %s4781_s8 }
 0x13a   :  { %v5312_v35 = vpop.permute.xlu1 %689  ;;  %v5314_v36 = vpop.permute.xlu0 %717 }
 0x13c   :  { %4113 = vrot.lane.b32.xlu1 %v4647_v59, %s4782_s17  ;;  %3871 = vrot.lane.b32.xlu0 %v4653_v26, %s4781_s8 }
 0x13e   :  { %v444_v37 = vpop.permute.xlu1 %443  ;;  %v416_v38 = vpop.permute.xlu0 %415 }
 0x13f   :  { %v477_v39 = vsel %vm215_vm0, %v5079_v10, %v444_v37  ;;  %v470_v40 = vsel %vm215_vm0, %v5076_v2, %v416_v38 }
 0x140   :  { %4121 = vrot.lane.b32.xlu1 %v4651_v25, %s4782_s17  ;;  %4117 = vrot.lane.b32.xlu0 %v4649_v20, %s4782_s17  ;;  %v478_v42 = vsel %vm217_vm1, %v477_v39, %v448_v19  ;;  %v471_v43 = vsel %vm217_vm1, %v470_v40, %v420_v15  ;;  %v4650_v15 = vld [vmem:[%s7848_s0 + $0x92] sm:$0xff] }
 0x142   :  { %v452_v41 = vpop.permute.xlu1 %451  ;;  %v424_v45 = vpop.permute.xlu0 %423 }
 0x143   :  { %v479_v46 = vsel %vm219_vm2, %v478_v42, %v452_v41  ;;  %v472_v47 = vsel %vm219_vm2, %v471_v43, %v424_v45 }
 0x144   :  { %982 = vrot.lane.b32.xlu1 %v4933_v60, %s4781_s8  ;;  %4125 = vrot.lane.b32.xlu0 %v4653_v26, %s4782_s17  ;;  %v480_v10 = vsel %vm221_vm3, %v479_v46, %v456_v27  ;;  %v473_v49 = vsel %vm221_vm3, %v472_v47, %v428_v22  ;;  %v4648_v60 = vld [vmem:[%s7848_s0 + $0x7a] sm:$0xff]  ;;  %v940_v27 = vsel %vm215_vm0, %v4972_v0, %v5242_v16 }
 0x145   :  { %v941_v59 = vsel %vm217_vm1, %v940_v27, %v5240_v14 }
 0x146   :  { %v460_v2 = vpop.permute.xlu1 %459  ;;  %v432_v48 = vpop.permute.xlu0 %431 }
 0x147   :  { %v481_v50 = vsel %vm223_vm4, %v480_v10, %v460_v2  ;;  %v474_v51 = vsel %vm223_vm4, %v473_v49, %v432_v48  ;;  %v4632_v48 = vld [vmem:[%s7848_s0 + $0x79] sm:$0xff] }
 0x148   :  { %990 = vrot.lane.b32.xlu1 %v4943_v62, %s4781_s8  ;;  %986 = vrot.lane.b32.xlu0 %v4938_v61, %s4781_s8  ;;  %v482_v54 = vsel %vm225_vm5, %v481_v50, %v464_v31  ;;  %v475_v55 = vsel %vm225_vm5, %v474_v51, %v436_v28  ;;  %v4630_v50 = vld [vmem:[%s7848_s0 + $0x61] sm:$0xff] }
 0x14a   :  { %v468_v53 = vpop.permute.xlu1 %467  ;;  %v440_v56 = vpop.permute.xlu0 %439 }
 0x14b   :  { %v483_v4 = vsel %vm227_vm6, %v482_v54, %v468_v53  ;;  %v476_v62 = vsel %vm227_vm6, %v475_v55, %v440_v56  ;;  %v4636_v53 = vld [vmem:[%s7848_s0 + $0xa9] sm:$0xff]  ;;  %v4634_v54 = vld [vmem:[%s7848_s0 + $0x91] sm:$0xff] }
 0x14c   :  { %v487_v57 = vrot.slane %v483_v4, 4  ;;  %v486_v61 = vrot.slane %v476_v62, 4  ;;  %3861 = vrot.lane.b32.xlu1 %v4648_v60, %s4781_s8  ;;  %3857 = vrot.lane.b32.xlu0 %v4646_v52, %s4781_s8 }
 0x14e   :  { %491 = vst [vmem:[#allocation2 + $0x68] sm:$0xf0] %v487_v57  ;;  %490 = vst [vmem:[#allocation2] sm:$0xf0] %v486_v61  ;;  %v698_v19 = vpop.permute.xlu1 %697  ;;  %v670_v22 = vpop.permute.xlu0 %669 }
 0x14f   :  { %v731_v28 = vsel %vm215_vm0, %v5123_v29, %v698_v19  ;;  %v724_v31 = vsel %vm215_vm0, %v5126_v30, %v670_v22  ;;  %v942_v30 = vsel %vm219_vm2, %v941_v59, %v5255_v13  ;;  %v4633_v13 = vld [vmem:[%s7848_s0 + $0x81] sm:$0xff] }
 0x150   :  { %3869 = vrot.lane.b32.xlu1 %v4652_v58, %s4781_s8  ;;  %3865 = vrot.lane.b32.xlu0 %v4650_v15, %s4781_s8  ;;  %v732_v20 = vsel %vm217_vm1, %v731_v28, %v702_v33  ;;  %v725_v26 = vsel %vm217_vm1, %v724_v31, %v5292_v32  ;;  %v943_v40 = vsel %vm221_vm3, %v942_v30, %v5253_v12  ;;  %v4603_v30 = vld [vmem:[%s7848_s0 + $0x98] sm:$0xff] }
 0x151   :  { %v944_v43 = vsel %vm223_vm4, %v943_v40, %v5267_v18 }
 0x152   :  { %v706_v25 = vpop.permute.xlu1 %705  ;;  %v678_v0 = vpop.permute.xlu0 %677  ;;  %v945_v18 = vsel %vm225_vm5, %v944_v43, %v5265_v17 }
 0x153   :  { %v733_v16 = vsel %vm219_vm2, %v732_v20, %v706_v25  ;;  %v726_v29 = vsel %vm219_vm2, %v725_v26, %v678_v0  ;;  %v4601_v20 = vld [vmem:[%s7848_s0 + $0x80] sm:$0xff]  ;;  %v4599_v26 = vld [vmem:[%s7848_s0 + $0x68] sm:$0xff] }
 0x154   :  { %4115 = vrot.lane.b32.xlu1 %v4648_v60, %s4782_s17  ;;  %4111 = vrot.lane.b32.xlu0 %v4646_v52, %s4782_s17  ;;  %v734_v14 = vsel %vm221_vm3, %v733_v16, %v5305_v34  ;;  %v727_v33 = vsel %vm221_vm3, %v726_v29, %v5303_v21  ;;  %v4631_v21 = vld [vmem:[%s7848_s0 + $0x69] sm:$0xff] }
 0x155   :  { %v4605_v29 = vld [vmem:[%s7848_s0 + $0xb0] sm:$0xff] }
 0x156   :  { %v714_v37 = vpop.permute.xlu1 %713  ;;  %v686_v32 = vpop.permute.xlu0 %685 }
 0x157   :  { %v735_v38 = vsel %vm223_vm4, %v734_v14, %v714_v37  ;;  %v728_v39 = vsel %vm223_vm4, %v727_v33, %v686_v32 }
 0x158   :  { %4123 = vrot.lane.b32.xlu1 %v4652_v58, %s4782_s17  ;;  %4119 = vrot.lane.b32.xlu0 %v4650_v15, %s4782_s17  ;;  %v736_v41 = vsel %vm225_vm5, %v735_v38, %v5314_v36  ;;  %v729_v42 = vsel %vm225_vm5, %v728_v39, %v5312_v35  ;;  %v4637_v36 = vld [vmem:[%s7848_s0 + $0xb1] sm:$0xff]  ;;  %v4635_v35 = vld [vmem:[%s7848_s0 + $0x99] sm:$0xff] }
 0x15a   :  { %v722_v34 = vpop.permute.xlu1 %721  ;;  %v694_v12 = vpop.permute.xlu0 %693 }
 0x15b   :  { %v737_v45 = vsel %vm227_vm6, %v736_v41, %v722_v34  ;;  %v730_v46 = vsel %vm227_vm6, %v729_v42, %v694_v12 }
 0x15c   :  { %739 = vst [vmem:[#allocation2 + $0x28] sm:$0xf] %v737_v45  ;;  %738 = vst [vmem:[#allocation2 + $0x10] sm:$0xf] %v730_v46  ;;  %3393 = vrot.lane.b32.xlu1 %v4633_v13, %s4782_s17  ;;  %3389 = vrot.lane.b32.xlu0 %v4631_v21, %s4782_s17  ;;  %v4604_v46 = vld [vmem:[%s7848_s0 + $0xa8] sm:$0xff] }
 0x15e   :  { %v914_v47 = vpop.permute.xlu1 %913  ;;  %v910_v2 = vpop.permute.xlu0 %909 }
 0x15f   :  { %v946_v10 = vsel %vm227_vm6, %v945_v18, %v910_v2  ;;  %v947_v51 = vsel %vm215_vm0, %v5153_v44, %v914_v47 }
 0x160   :  { %v956_v49 = vrot.slane %v946_v10, 4  ;;  %3401 = vrot.lane.b32.xlu1 %v4637_v36, %s4782_s17  ;;  %3397 = vrot.lane.b32.xlu0 %v4635_v35, %s4782_s17 }
 0x162   :  { %960 = vst [vmem:[#allocation2 + $0x10] sm:$0xf0] %v956_v49  ;;  %v922_v17 = vpop.permute.xlu1 %921  ;;  %v918_v60 = vpop.permute.xlu0 %917 }
 0x163   :  { %v948_v52 = vsel %vm217_vm1, %v947_v51, %v918_v60 }
 0x164   :  { %3391 = vrot.lane.b32.xlu1 %v4632_v48, %s4782_s17  ;;  %3387 = vrot.lane.b32.xlu0 %v4630_v50, %s4782_s17  ;;  %v949_v44 = vsel %vm219_vm2, %v948_v52, %v922_v17 }
 0x166   :  { %v930_v55 = vpop.permute.xlu1 %929  ;;  %v926_v56 = vpop.permute.xlu0 %925 }
 0x167   :  { %v950_v4 = vsel %vm221_vm3, %v949_v44, %v926_v56  ;;  %v1556_v56 = vcombine.low %v5198_v5, %v5207_v6 }
 0x168   :  { %3399 = vrot.lane.b32.xlu1 %v4636_v53, %s4782_s17  ;;  %3395 = vrot.lane.b32.xlu0 %v4634_v54, %s4782_s17  ;;  %v951_v57 = vsel %vm223_vm4, %v950_v4, %v930_v55 }
 0x16a   :  { %v938_v62 = vpop.permute.xlu1 %937  ;;  %v934_v61 = vpop.permute.xlu0 %933 }
 0x16b   :  { %v952_v58 = vsel %vm225_vm5, %v951_v57, %v934_v61 }
 0x16c   :  { %v953_v15 = vsel %vm227_vm6, %v952_v58, %v938_v62  ;;  %3145 = vrot.lane.b32.xlu1 %v4633_v13, %s4781_s8  ;;  %3141 = vrot.lane.b32.xlu0 %v4631_v21, %s4781_s8  ;;  %v4600_v13 = vld [vmem:[%s7848_s0 + $0x78] sm:$0xff]  ;;  %v4598_v21 = vld [vmem:[%s7848_s0 + $0x60] sm:$0xff] }
 0x16d   :  { %v957_v19 = vrot.slane %v953_v15, 4 }
 0x16e   :  { %v5440_v22 = vpop.permute.xlu1 %1698  ;;  %v5442_v27 = vpop.permute.xlu0 %978 }
 0x16f   :  { %961 = vst [vmem:[#allocation2 + $0x28] sm:$0xf0] %v957_v19 }
 0x170   :  { %3153 = vrot.lane.b32.xlu1 %v4637_v36, %s4781_s8  ;;  %3149 = vrot.lane.b32.xlu0 %v4635_v35, %s4781_s8  ;;  %v4602_v36 = vld [vmem:[%s7848_s0 + $0x90] sm:$0xff] }
 0x172   :  { %v5446_v28 = vpop.permute.xlu1 %1706  ;;  %v5448_v31 = vpop.permute.xlu0 %1702 }
 0x173   :  { %v1788_v12 = vcombine.low %v5440_v22, %v5446_v28 }
 0x174   :  { %3143 = vrot.lane.b32.xlu1 %v4632_v48, %s4781_s8  ;;  %3139 = vrot.lane.b32.xlu0 %v4630_v50, %s4781_s8 }
 0x175   :  { %v1796_v10 = vrot.slane %v1788_v12, %v4861_v23 }
 0x176   :  { %v5452_v59 = vpop.permute.xlu1 %1952  ;;  %v5454_v25 = vpop.permute.xlu0 %1710 }
 0x177   :  { %v1804_v40 = vcombine.low %v5448_v31, %v5454_v25 }
 0x178   :  { %3151 = vrot.lane.b32.xlu1 %v4636_v53, %s4781_s8  ;;  %3147 = vrot.lane.b32.xlu0 %v4634_v54, %s4781_s8  ;;  %v1540_v54 = vcombine.low %v5184_v63, %v5193_v3 }
 0x179   :  { %v1812_v45 = vrot.slane %v1804_v40, %v4861_v23 }
 0x17a   :  { %v5464_v0 = vpop.permute.xlu1 %1960  ;;  %v5466_v16 = vpop.permute.xlu0 %1956 }
 0x17b   :  { %v2042_v43 = vcombine.low %v5452_v59, %v5464_v0  ;;  %v1820_v50 = vcombine.low %v1796_v10, %v1812_v45  ;;  %v1821_v40 = vcombine.high %v1796_v10, %v1812_v45 }
 0x17c   :  { %2421 = vrot.lane.b32.xlu1 %v4601_v20, %s4781_s8  ;;  %2417 = vrot.lane.b32.xlu0 %v4599_v26, %s4781_s8 }
 0x17d   :  { %v2050_v49 = vrot.slane %v2042_v43, %v4861_v23  ;;  %v5558_v4 = vrot.slane %v1820_v50, %v4863_v24 }
 0x17e   :  { %v5476_v37 = vpop.permute.xlu1 %1696  ;;  %v5478_v14 = vpop.permute.xlu0 %1964 }
 0x17f   :  { %v2058_v34 = vcombine.low %v5466_v16, %v5478_v14  ;;  %7916 = vst [vmem:[#allocation6_spill] sm:$0xff] %v5558_v4 }
 0x180   :  { %2429 = vrot.lane.b32.xlu1 %v4605_v29, %s4781_s8  ;;  %2425 = vrot.lane.b32.xlu0 %v4603_v30, %s4781_s8 }
 0x181   :  { %v5522_v35 = vrot.slane %v2058_v34, %v4861_v23 }
 0x182   :  { %v5482_v33 = vpop.permute.xlu1 %1704  ;;  %v5484_v32 = vpop.permute.xlu0 %1700 }
 0x183   :  { %v1720_v48 = vcombine.low %v5476_v37, %v5482_v33  ;;  %v2074_v51 = vcombine.low %v2050_v49, %v5522_v35  ;;  %v2075_v50 = vcombine.high %v2050_v49, %v5522_v35 }
 0x184   :  { %2675 = vrot.lane.b32.xlu1 %v4601_v20, %s4782_s17  ;;  %2671 = vrot.lane.b32.xlu0 %v4599_v26, %s4782_s17  ;;  %v5573_v20 = vrot.slane %v1540_v54, %v4861_v23 }
 0x185   :  { %v5549_v55 = vrot.slane %v1720_v48, %v4861_v23  ;;  %v5568_v15 = vrot.slane %v2074_v51, %v4863_v24  ;;  %v1835_v48 = vrot.slane %v1821_v40, %v4863_v24 }
 0x186   :  { %v5488_v38 = vpop.permute.xlu1 %1950  ;;  %v5490_v39 = vpop.permute.xlu0 %1708 }
 0x187   :  { %v1736_v47 = vcombine.low %v5484_v32, %v5490_v39  ;;  %7917 = vst [vmem:[#allocation7_spill] sm:$0xff] %v5568_v15 }
 0x188   :  { %2683 = vrot.lane.b32.xlu1 %v4605_v29, %s4782_s17  ;;  %2679 = vrot.lane.b32.xlu0 %v4603_v30, %s4782_s17  ;;  %v5583_v30 = vrot.slane %v1556_v56, %v4861_v23 }
 0x189   :  { %v5538_v17 = vrot.slane %v1736_v47, %v4861_v23 }
 0x18a   :  { %v5504_v41 = vpop.permute.xlu1 %1958  ;;  %v5506_v42 = vpop.permute.xlu0 %1954  ;;  %v1572_v45 = vcombine.low %v5573_v20, %v5583_v30 }
 0x18b   :  { %v1974_v44 = vcombine.low %v5488_v38, %v5504_v41  ;;  %v1752_v62 = vcombine.low %v5549_v55, %v5538_v17 }
 0x18c   :  { %2419 = vrot.lane.b32.xlu1 %v4600_v13, %s4781_s8  ;;  %2415 = vrot.lane.b32.xlu0 %v4598_v21, %s4781_s8 }
 0x18d   :  { %v5576_v26 = vrot.slane %v1974_v44, %v4861_v23 }
 0x18e   :  { %v5526_v18 = vpop.permute.xlu1 %1228  ;;  %v5528_v2 = vpop.permute.xlu0 %1962 }
 0x18f   :  { %v1990_v60 = vcombine.low %v5506_v42, %v5528_v2 }
 0x190   :  { %2427 = vrot.lane.b32.xlu1 %v4604_v46, %s4781_s8  ;;  %2423 = vrot.lane.b32.xlu0 %v4602_v36, %s4781_s8 }
 0x191   :  { %v5563_v57 = vrot.slane %v1990_v60, %v4861_v23 }
 0x192   :  { %v5542_v52 = vpop.permute.xlu1 %1236  ;;  %v5544_v53 = vpop.permute.xlu0 %1232 }
 0x193   :  { %v1318_v29 = vcombine.low %v5526_v18, %v5542_v52 }
 0x194   :  { %2673 = vrot.lane.b32.xlu1 %v4600_v13, %s4782_s17  ;;  %2669 = vrot.lane.b32.xlu0 %v4598_v21, %s4782_s17  ;;  %v1852_v13 = vcombine.high %v5558_v4, %v7856_v8  ;;  %v2006_v21 = vcombine.low %v5576_v26, %v5563_v57 }
 0x195   :  { %v5598_v47 = vrot.slane %v1318_v29, %v4861_v23 }
 0x196   :  { %v1227_v61 = vpop.permute.xlu1 %1226  ;;  %v5565_v58 = vpop.permute.xlu0 %1240  ;;  %v5613_v56 = vrot.slane %v2006_v21, %v4863_v24  ;;  %v2089_v21 = vrot.slane %v2075_v50, %v4863_v24 }
 0x197   :  { %v1334_v19 = vcombine.low %v5544_v53, %v5565_v58 }
 0x198   :  { %2681 = vrot.lane.b32.xlu1 %v4604_v46, %s4782_s17  ;;  %2677 = vrot.lane.b32.xlu0 %v4602_v36, %s4782_s17  ;;  %v2106_v46 = vcombine.high %v5568_v15, %v7856_v8  ;;  %v5595_v36 = vrot.slane %v1752_v62, %v4863_v24  ;;  %7919 = vst [vmem:[#allocation9_spill] sm:$0xff] %v5613_v56 }
 0x199   :  { %v5590_v34 = vrot.slane %v1334_v19, %v4861_v23  ;;  %v5618_v19 = vrot.slane %v1572_v45, %v4863_v24 }
 0x19a   :  { %v1235_v12 = vpop.permute.xlu1 %1234  ;;  %v1231_v43 = vpop.permute.xlu0 %1230  ;;  %7918 = vst [vmem:[#allocation8_spill] sm:$0xff] %v5595_v36  ;;  %v1784_v44 = vcombine.high %v5595_v36, %v7856_v8 }
 0x19b   :  { %v1251_v10 = vcombine.high %v1227_v61, %v1235_v12  ;;  %v1350_v51 = vcombine.low %v5598_v47, %v5590_v34  ;;  %7920 = vst [vmem:[#allocation10_spill] sm:$0xff] %v5618_v19  ;;  %v1604_v50 = vcombine.high %v5618_v19, %v7856_v8 }
 0x19c   :  { %1885 = vrot.lane.b32.xlu0 %v1852_v13, %s4777_s4  ;;  %2139 = vrot.lane.b32.xlu1 %v2106_v46, %s4777_s4  ;;  %v2038_v46 = vcombine.high %v5613_v56, %v7856_v8 }
 0x19d   :  { %v5621_v35 = vrot.slane %v1251_v10, %v4861_v23  ;;  %v1472_v10 = vcombine.low %v5220_v9, %v5229_v7 }
 0x19e   :  { %v5608_v60 = vpop.permute.xlu1 %980  ;;  %v1239_v54 = vpop.permute.xlu0 %1238 }
 0x19f   :  { %v1267_v62 = vcombine.high %v1231_v43, %v1239_v54  ;;  %v1266_v29 = vcombine.low %v1231_v43, %v1239_v54  ;;  %v1488_v43 = vcombine.low %v5234_v1, %v5247_v11  ;;  %v1250_v54 = vcombine.low %v1227_v61, %v1235_v12 }
 0x1a0   :  { %1889 = vrot.lane.b32.xlu1 %v1835_v48, %s4775_s29  ;;  %1857 = vrot.lane.b32.xlu0 %v1784_v44, %s4777_s4  ;;  %v5634_v44 = vrot.slane %v1350_v51, %v4863_v24 }
 0x1a1   :  { %v5624_v49 = vrot.slane %v1267_v62, %v4861_v23  ;;  %v1753_v62 = vcombine.high %v5549_v55, %v5538_v17  ;;  %v5651_v45 = vrot.slane %v1266_v29, %v4861_v23  ;;  %v5662_v19 = vrot.slane %v1488_v43, %v4861_v23 }
 0x1a2   :  { %v5626_v40 = vpop.permute.xlu1 %988  ;;  %v5628_v13 = vpop.permute.xlu0 %984  ;;  %7921 = vst [vmem:[#allocation11_spill] sm:$0xff] %v5634_v44  ;;  %v1382_v61 = vcombine.high %v5634_v44, %v7856_v8  ;;  %v5665_v15 = vrot.slane %v1250_v54, %v4861_v23  ;;  %v2007_v29 = vcombine.high %v5576_v26, %v5563_v57  ;;  %v1805_v57 = vcombine.high %v5448_v31, %v5454_v25 }
 0x1a3   :  { %v1071_v51 = vcombine.high %v5608_v60, %v5626_v40  ;;  %v7923_v44 = vmov 0.0   ;;  %v1789_v31 = vcombine.high %v5440_v22, %v5446_v28  ;;  %v2059_v28 = vcombine.high %v5466_v16, %v5478_v14 }
 0x1a4   :  { %2143 = vrot.lane.b32.xlu1 %v2089_v21, %s4775_s29  ;;  %2111 = vrot.lane.b32.xlu0 %v2038_v46, %s4777_s4  ;;  %v5659_v46 = vrot.slane %v1472_v10, %v4861_v23  ;;  %v1282_v10 = vcombine.low %v5665_v15, %v5651_v45  ;;  %v2021_v4 = vrot.slane %v2007_v29, %v4863_v24 }
 0x1a5   :  { %v5670_v17 = vrot.slane %v1071_v51, %v4861_v23  ;;  %v5727_v22 = vrot.slane %v1805_v57, %v4861_v23  ;;  %v2043_v14 = vcombine.high %v5452_v59, %v5464_v0  ;;  %v5764_v0 = vrot.slane %v2059_v28, %v4861_v23 }
 0x1a6   :  { %v5653_v56 = vpop.permute.xlu1 %3859  ;;  %v993_v36 = vpop.permute.xlu0 %992 }
 0x1a7   :  { %v1087_v12 = vcombine.high %v5628_v13, %v993_v36  ;;  %7922 = vst [vmem:[#allocation12_spill] sm:$0xff] %v5670_v17  ;;  %v5706_v17 = vrot.slane %v1282_v10, %v4863_v24 }
 0x1a8   :  { %1637 = vrot.lane.b32.xlu1 %v1604_v50, %s4777_s4  ;;  %1415 = vrot.lane.b32.xlu0 %v1382_v61, %s4777_s4  ;;  %v1853_v50 = vcombine.high %v1835_v48, %v7856_v8  ;;  %v1767_v61 = vrot.slane %v1753_v62, %v4863_v24  ;;  %v1573_v48 = vcombine.high %v5573_v20, %v5583_v30 }
 0x1a9   :  { %v5673_v55 = vrot.slane %v1087_v12, %v4861_v23  ;;  %v1504_v12 = vcombine.low %v5659_v46, %v5662_v19  ;;  %v1351_v62 = vcombine.high %v5598_v47, %v5590_v34  ;;  %7924 = vst [vmem:[#allocation13_spill] sm:$0xff] %v5706_v17 }
 0x1aa   :  { %v5679_v43 = vpop.permute.xlu1 %3867  ;;  %v5681_v54 = vpop.permute.xlu0 %3863  ;;  %v5724_v47 = vrot.slane %v1573_v48, %v4863_v24  ;;  %v1086_v48 = vcombine.low %v5628_v13, %v993_v36  ;;  %v1489_v36 = vcombine.high %v5234_v1, %v5247_v11  ;;  %v1070_v13 = vcombine.low %v5608_v60, %v5626_v40 }
 0x1ab   :  { %v3950_v26 = vcombine.high %v5653_v56, %v5679_v43  ;;  %v5713_v20 = vrot.slane %v1504_v12, %v4863_v24  ;;  %v5736_v10 = vrot.slane %v1351_v62, %v4863_v24  ;;  %v1314_v12 = vcombine.high %v5706_v17, %v7923_v44 }
 0x1ac   :  { %1893 = vrot.lane.b32.xlu1 %v1853_v50, %s4778_s5  ;;  %1861 = vrot.lane.b32.xlu0 %v1767_v61, %s4775_s29  ;;  %v2107_v50 = vcombine.high %v2089_v21, %v7923_v44  ;;  %v1473_v62 = vcombine.high %v5220_v9, %v5229_v7  ;;  %v5771_v9 = vrot.slane %v1086_v48, %v4861_v23 }
 0x1ad   :  { %7925 = vst [vmem:[#allocation14_spill] sm:$0xff] %v5713_v20  ;;  %v5718_v30 = vrot.slane %v3950_v26, %v4861_v23  ;;  %v5741_v26 = vrot.slane %v1789_v31, %v4861_v23  ;;  %v1536_v16 = vcombine.high %v5713_v20, %v7923_v44  ;;  %v5776_v1 = vrot.slane %v2043_v14, %v4861_v23 }
 0x1ae   :  { %v5699_v51 = vpop.permute.xlu1 %4113  ;;  %v5701_v8 = vpop.permute.xlu0 %3871  ;;  %v5782_v11 = vrot.slane %v1473_v62, %v4861_v23  ;;  %v5785_v60 = vrot.slane %v1489_v36, %v4861_v23  ;;  %v5788_v40 = vrot.slane %v1070_v13, %v4861_v23  ;;  %v1283_v36 = vcombine.high %v5665_v15, %v5651_v45 }
 0x1af   :  { %v3966_v25 = vcombine.high %v5681_v54, %v5701_v8  ;;  %v1836_v59 = vcombine.low %v5741_v26, %v5727_v22  ;;  %v2090_v48 = vcombine.low %v5776_v1, %v5764_v0 }
 0x1b0   :  { %2147 = vrot.lane.b32.xlu1 %v2107_v50, %s4778_s5  ;;  %2115 = vrot.lane.b32.xlu0 %v2021_v4, %s4775_s29  ;;  %v1102_v13 = vcombine.low %v5788_v40, %v5771_v9 }
 0x1b1   :  { %v5721_v34 = vrot.slane %v3966_v25, %v4861_v23  ;;  %v5799_v62 = vrot.slane %v1836_v59, %v4863_v24  ;;  %v1737_v59 = vcombine.high %v5484_v32, %v5490_v39  ;;  %v1721_v32 = vcombine.high %v5476_v37, %v5482_v33 }
 0x1b2   :  { %v5731_v21 = vpop.permute.xlu1 %4121  ;;  %v5733_v29 = vpop.permute.xlu0 %4117  ;;  %v2039_v39 = vcombine.high %v2021_v4, %v7923_v44  ;;  %v5834_v15 = vrot.slane %v1102_v13, %v4863_v24  ;;  %v1991_v37 = vcombine.high %v5506_v42, %v5528_v2  ;;  %v3965_v33 = vcombine.low %v5681_v54, %v5701_v8 }
 0x1b3   :  { %v4204_v50 = vcombine.high %v5699_v51, %v5731_v21  ;;  %v5855_v13 = vrot.slane %v1283_v36, %v4863_v24  ;;  %v1975_v8 = vcombine.high %v5488_v38, %v5504_v41  ;;  %v3949_v2 = vcombine.low %v5653_v56, %v5679_v43 }
 0x1b4   :  { %1419 = vrot.lane.b32.xlu1 %v5736_v10, %s4775_s29  ;;  %1387 = vrot.lane.b32.xlu0 %v1314_v12, %s4777_s4  ;;  %7928 = vst [vmem:[#allocation17_spill] sm:$0xff] %v5834_v15  ;;  %v1134_v42 = vcombine.high %v5834_v15, %v7923_v44  ;;  %v5885_v38 = vrot.slane %v1991_v37, %v4861_v23 }
 0x1b5   :  { %v5791_v28 = vrot.slane %v4204_v50, %v4861_v23  ;;  %v5888_v41 = vrot.slane %v3965_v33, %v4861_v23  ;;  %v1383_v37 = vcombine.high %v5736_v10, %v7923_v44  ;;  %v5903_v33 = vrot.slane %v1975_v8, %v4861_v23 }
 0x1b6   :  { %v5766_v31 = vpop.permute.xlu1 %982  ;;  %v5768_v25 = vpop.permute.xlu0 %4125  ;;  %v1605_v10 = vcombine.high %v5724_v47, %v7923_v44 }
 0x1b7   :  { %v4220_v7 = vcombine.high %v5733_v29, %v5768_v25  ;;  %7926 = vst [vmem:[#allocation15_spill] sm:$0xff] %v5791_v28 }
 0x1b8   :  { %1641 = vrot.lane.b32.xlu1 %v5724_v47, %s4775_s29  ;;  %1609 = vrot.lane.b32.xlu0 %v1536_v16, %s4777_s4 }
 0x1b9   :  { %v5794_v12 = vrot.slane %v4220_v7, %v4861_v23  ;;  %v1785_v7 = vcombine.high %v1767_v61, %v7923_v44 }
 0x1ba   :  { %v991_v14 = vpop.permute.xlu1 %990  ;;  %v987_v16 = vpop.permute.xlu0 %986 }
 0x1bb   :  { %7927 = vst [vmem:[#allocation16_spill] sm:$0xff] %v5794_v12  ;;  %v1019_v57 = vcombine.high %v5766_v31, %v991_v14  ;;  %v1003_v20 = vcombine.high %v5442_v27, %v987_v16  ;;  %v5828_v12 = vrot.slane %v2090_v48, %v4863_v24  ;;  %v1018_v56 = vcombine.low %v5766_v31, %v991_v14 }
 0x1bc   :  { %1897 = vrot.lane.b32.xlu1 %v5799_v62, %s4774_s28  ;;  %1865 = vrot.lane.b32.xlu0 %v1785_v7, %s4778_s5  ;;  %v1002_v43 = vcombine.low %v5442_v27, %v987_v16  ;;  %v5906_v31 = vrot.slane %v3949_v2, %v4861_v23  ;;  %v4203_v27 = vcombine.low %v5699_v51, %v5731_v21 }
 0x1bd   :  { %v5818_v17 = vrot.slane %v1019_v57, %v4861_v23  ;;  %v5821_v61 = vrot.slane %v1003_v20, %v4861_v23  ;;  %v1505_v20 = vcombine.high %v5659_v46, %v5662_v19  ;;  %v5843_v57 = vrot.slane %v1737_v59, %v4861_v23 }
 0x1be   :  { %v5823_v50 = vpop.permute.xlu1 %3861  ;;  %v5825_v28 = vpop.permute.xlu0 %3857  ;;  %v5858_v19 = vrot.slane %v1721_v32, %v4861_v23  ;;  %v3981_v14 = vcombine.low %v5906_v31, %v5888_v41  ;;  %v5923_v16 = vrot.slane %v1018_v56, %v4861_v23 }
 0x1bf   :  { %v5873_v54 = vrot.slane %v1505_v20, %v4863_v24 }
 0x1c0   :  { %2151 = vrot.lane.b32.xlu1 %v5828_v12, %s4774_s28  ;;  %2119 = vrot.lane.b32.xlu0 %v2039_v39, %s4778_s5  ;;  %v1768_v36 = vcombine.low %v5858_v19, %v5843_v57 }
 0x1c2   :  { %v5850_v4 = vpop.permute.xlu1 %3869  ;;  %v5852_v48 = vpop.permute.xlu0 %3865 }
 0x1c3   :  { %v3898_v46 = vcombine.high %v5823_v50, %v5850_v4  ;;  %v3882_v7 = vcombine.high %v5825_v28, %v5852_v48 }
 0x1c4   :  { %1391 = vrot.lane.b32.xlu1 %v5855_v13, %s4775_s29  ;;  %1167 = vrot.lane.b32.xlu0 %v1134_v42, %s4777_s4  ;;  %v5926_v42 = vrot.slane %v1002_v43, %v4861_v23 }
 0x1c5   :  { %v5878_v59 = vrot.slane %v3898_v46, %v4861_v23  ;;  %v5881_v32 = vrot.slane %v3882_v7, %v4861_v23  ;;  %v4219_v46 = vcombine.low %v5733_v29, %v5768_v25  ;;  %v5914_v29 = vrot.slane %v1768_v36, %v4863_v24 }
 0x1c6   :  { %v5892_v39 = vpop.permute.xlu1 %4115  ;;  %v5894_v20 = vpop.permute.xlu0 %4111  ;;  %v2022_v25 = vcombine.low %v5903_v33, %v5885_v38  ;;  %v5942_v36 = vrot.slane %v4203_v27, %v4861_v23  ;;  %v5961_v27 = vrot.slane %v3981_v14, %v4863_v24  ;;  %v2108_v14 = vcombine.high %v5828_v12, %v7923_v44 }
 0x1c7   :  { %7929 = vst [vmem:[#allocation18_spill] sm:$0xff] %v5878_v59  ;;  %7930 = vst [vmem:[#allocation19_spill] sm:$0xff] %v5881_v32  ;;  %v5933_v8 = vrot.slane %v4219_v46, %v4861_v23  ;;  %v1034_v46 = vcombine.low %v5926_v42, %v5923_v16  ;;  %v1541_v12 = vcombine.high %v5184_v63, %v5193_v3 }
 0x1c8   :  { %1613 = vrot.lane.b32.xlu1 %v5873_v54, %s4775_s29  ;;  %1423 = vrot.lane.b32.xlu0 %v1383_v37, %s4778_s5  ;;  %v5958_v45 = vrot.slane %v2022_v25, %v4863_v24  ;;  %7933 = vst [vmem:[#allocation22_spill] sm:$0xff] %v5961_v27  ;;  %v4013_v32 = vcombine.high %v5961_v27, %v7923_v44 }
 0x1ca   :  { %v5928_v51 = vpop.permute.xlu1 %4123  ;;  %v5930_v21 = vpop.permute.xlu0 %4119 }
 0x1cb   :  { %v4152_v47 = vcombine.high %v5892_v39, %v5928_v51  ;;  %v4136_v2 = vcombine.high %v5894_v20, %v5930_v21 }
 0x1cc   :  { %1869 = vrot.lane.b32.xlu1 %v5914_v29, %s4774_s28  ;;  %1645 = vrot.lane.b32.xlu0 %v1605_v10, %s4778_s5  ;;  %v1854_v10 = vcombine.high %v5799_v62, %v7923_v44  ;;  %v1335_v62 = vcombine.high %v5544_v53, %v5565_v58  ;;  %v1557_v58 = vcombine.high %v5198_v5, %v5207_v6 }
 0x1cd   :  { %v5945_v56 = vrot.slane %v4152_v47, %v4861_v23  ;;  %v5948_v43 = vrot.slane %v4136_v2, %v4861_v23  ;;  %v4235_v47 = vcombine.low %v5942_v36, %v5933_v8  ;;  %v5981_v2 = vrot.slane %v1034_v46, %v4863_v24 }
 0x1ce   :  { %v5953_v37 = vpop.permute.xlu1 %3393  ;;  %v5955_v7 = vpop.permute.xlu0 %3389  ;;  %v1319_v46 = vcombine.high %v5526_v18, %v5542_v52  ;;  %v6013_v3 = vrot.slane %v1335_v62, %v4861_v23  ;;  %v1103_v18 = vcombine.high %v5788_v40, %v5771_v9  ;;  %v6027_v6 = vrot.slane %v1541_v12, %v4861_v23 }
 0x1cf   :  { %7931 = vst [vmem:[#allocation20_spill] sm:$0xff] %v5945_v56  ;;  %7932 = vst [vmem:[#allocation21_spill] sm:$0xff] %v5948_v43  ;;  %v5990_v56 = vrot.slane %v4235_v47, %v4863_v24  ;;  %v1066_v63 = vcombine.high %v5981_v2, %v7923_v44  ;;  %v3897_v9 = vcombine.low %v5823_v50, %v5850_v4 }
 0x1d0   :  { %2123 = vrot.lane.b32.xlu1 %v5958_v45, %s4774_s28  ;;  %1901 = vrot.lane.b32.xlu0 %v1854_v10, %s4779_s6  ;;  %7934 = vst [vmem:[#allocation23_spill] sm:$0xff] %v5981_v2  ;;  %v6023_v5 = vrot.slane %v1319_v46, %v4861_v23  ;;  %v3881_v40 = vcombine.low %v5825_v28, %v5852_v48 }
 0x1d1   :  { %7935 = vst [vmem:[#allocation24_spill] sm:$0xff] %v5990_v56  ;;  %v1315_v46 = vcombine.high %v5855_v13, %v7923_v44  ;;  %v6049_v50 = vrot.slane %v1103_v18, %v4863_v24  ;;  %v1537_v28 = vcombine.high %v5873_v54, %v7923_v44  ;;  %v6065_v18 = vrot.slane %v3897_v9, %v4861_v23 }
 0x1d2   :  { %v5972_v15 = vpop.permute.xlu1 %3401  ;;  %v5974_v25 = vpop.permute.xlu0 %3397  ;;  %v1366_v12 = vcombine.low %v6023_v5, %v6013_v3  ;;  %v4151_v54 = vcombine.low %v5892_v39, %v5928_v51  ;;  %v2040_v52 = vcombine.high %v5958_v45, %v7923_v44 }
 0x1d3   :  { %v3496_v43 = vcombine.high %v5953_v37, %v5972_v15  ;;  %v3480_v10 = vcombine.high %v5955_v7, %v5974_v25 }
 0x1d4   :  { %4046 = vrot.lane.b32.xlu1 %v4013_v32, %s4777_s4  ;;  %2155 = vrot.lane.b32.xlu0 %v2108_v14, %s4779_s6  ;;  %v6030_v14 = vrot.slane %v1557_v58, %v4861_v23 }
 0x1d5   :  { %v5998_v27 = vrot.slane %v3496_v43, %v4861_v23  ;;  %v6001_v53 = vrot.slane %v3480_v10, %v4861_v23  ;;  %v4267_v43 = vcombine.high %v5990_v56, %v7923_v44  ;;  %v1374_v56 = vrot.slane %v1366_v12, %v4863_v24 }
 0x1d6   :  { %v6006_v47 = vpop.permute.xlu1 %3391  ;;  %v6008_v32 = vpop.permute.xlu0 %3387  ;;  %v1588_v13 = vcombine.low %v6027_v6, %v6030_v14  ;;  %v1786_v12 = vcombine.high %v5914_v29, %v7923_v44 }
 0x1d8   :  { %1139 = vrot.lane.b32.xlu1 %v1066_v63, %s4777_s4  ;;  %4300 = vrot.lane.b32.xlu0 %v4267_v43, %s4777_s4  ;;  %v6068_v43 = vrot.slane %v3881_v40, %v4861_v23  ;;  %v1596_v9 = vrot.slane %v1588_v13, %v4863_v24 }
 0x1da   :  { %v6036_v62 = vpop.permute.xlu1 %3399  ;;  %v6038_v10 = vpop.permute.xlu0 %3395  ;;  %v3913_v39 = vcombine.low %v6068_v43, %v6065_v18 }
 0x1db   :  { %v3428_v58 = vcombine.high %v6006_v47, %v6036_v62  ;;  %v3412_v63 = vcombine.high %v6008_v32, %v6038_v10 }
 0x1dc   :  { %1395 = vrot.lane.b32.xlu1 %v1315_v46, %s4778_s5  ;;  %1171 = vrot.lane.b32.xlu0 %v6049_v50, %s4775_s29  ;;  %v4135_v46 = vcombine.low %v5894_v20, %v5930_v21  ;;  %v6087_v20 = vrot.slane %v4151_v54, %v4861_v23  ;;  %v6111_v2 = vrot.slane %v3913_v39, %v4863_v24 }
 0x1dd   :  { %v6055_v4 = vrot.slane %v3428_v58, %v4861_v23  ;;  %v6058_v48 = vrot.slane %v3412_v63, %v4861_v23  ;;  %v3982_v39 = vcombine.high %v5906_v31, %v5888_v41  ;;  %v1298_v31 = vcombine.low %v5621_v35, %v5624_v49 }
 0x1de   :  { %v6074_v58 = vpop.permute.xlu1 %3145  ;;  %v6076_v63 = vpop.permute.xlu0 %3141  ;;  %v6090_v51 = vrot.slane %v4135_v46, %v4861_v23  ;;  %7943 = vst [vmem:[#allocation32_spill] sm:$0xff] %v6111_v2 }
 0x1df   :  { %7936 = vst [vmem:[#allocation25_spill] sm:$0xff] %v6055_v4  ;;  %7937 = vst [vmem:[#allocation26_spill] sm:$0xff] %v6058_v48  ;;  %v3945_v48 = vcombine.high %v6111_v2, %v7923_v44  ;;  %v4236_v2 = vcombine.high %v5942_v36, %v5933_v8  ;;  %v6143_v41 = vrot.slane %v3982_v39, %v4863_v24 }
 0x1e0   :  { %7938 = vst [vmem:[#allocation27_spill] sm:$0xff] %v6074_v58  ;;  %7939 = vst [vmem:[#allocation28_spill] sm:$0xff] %v6076_v63  ;;  %1617 = vrot.lane.b32.xlu1 %v1537_v28, %s4778_s5  ;;  %1427 = vrot.lane.b32.xlu0 %v1374_v56, %s4774_s28  ;;  %v1837_v28 = vcombine.high %v5741_v26, %v5727_v22  ;;  %v4167_v13 = vcombine.low %v6090_v51, %v6087_v20 }
 0x1e1   :  { %v2091_v22 = vcombine.high %v5776_v1, %v5764_v0  ;;  %v1035_v1 = vcombine.high %v5926_v42, %v5923_v16  ;;  %v6158_v8 = vrot.slane %v4236_v2, %v4863_v24  ;;  %v1520_v36 = vcombine.low %v5782_v11, %v5785_v60 }
 0x1e2   :  { %v6092_v21 = vpop.permute.xlu1 %3153  ;;  %v6094_v40 = vpop.permute.xlu0 %3149  ;;  %v1851_v26 = vrot.slane %v1837_v28, %v4863_v24  ;;  %v6125_v45 = vrot.slane %v4167_v13, %v4863_v24  ;;  %v3479_v39 = vcombine.low %v5955_v7, %v5974_v25  ;;  %v6175_v2 = vrot.slane %v1298_v31, %v4863_v24  ;;  %v4713_v7 = vld [vmem:[%s7848_s0 + $0x82] ss:$48 sps:$4 sm:$0xff]  }
 0x1e3   :  { %7940 = vst [vmem:[#allocation29_spill] sm:$0xff] %v6092_v21  ;;  %7941 = vst [vmem:[#allocation30_spill] sm:$0xff] %v6094_v40  ;;  %v2105_v0 = vrot.slane %v2091_v22, %v4863_v24  ;;  %v3495_v22 = vcombine.low %v5953_v37, %v5972_v15  ;;  %v6182_v4 = vrot.slane %v1520_v36, %v4863_v24  ;;  %v4711_v15 = vld [vmem:[%s7848_s0 + $0x6a] ss:$48 sps:$4 sm:$0xff]  }
 0x1e4   :  { %1873 = vrot.lane.b32.xlu1 %v1786_v12, %s4779_s6  ;;  %1649 = vrot.lane.b32.xlu0 %v1596_v9, %s4774_s28  ;;  %7945 = vst [vmem:[#allocation34_spill] sm:$0xff] %v6125_v45  ;;  %v4199_v13 = vcombine.high %v6125_v45, %v7923_v44  ;;  %v1135_v45 = vcombine.high %v6049_v50, %v7923_v44 }
 0x1e5   :  { %v1769_v37 = vcombine.high %v5858_v19, %v5843_v57  ;;  %v6194_v25 = vrot.slane %v3495_v22, %v4861_v23  ;;  %v6197_v50 = vrot.slane %v3479_v39, %v4861_v23  ;;  %v1384_v36 = vcombine.high %v1374_v56, %v7923_v44 }
 0x1e6   :  { %v6104_v54 = vpop.permute.xlu1 %3143  ;;  %v6106_v46 = vpop.permute.xlu0 %3139  ;;  %v6209_v57 = vrot.slane %v4711_v15, %v4861_v23  ;;  %v6212_v19 = vrot.slane %v4713_v7, %v4861_v23  ;;  %v2023_v22 = vcombine.high %v5903_v33, %v5885_v38 }
 0x1e7   :  { %7942 = vst [vmem:[#allocation31_spill] sm:$0xff] %v6106_v46  ;;  %v3511_v39 = vcombine.low %v6197_v50, %v6194_v25 }
 0x1e8   :  { %2127 = vrot.lane.b32.xlu1 %v2040_v52, %s4779_s6  ;;  %1905 = vrot.lane.b32.xlu0 %v1851_v26, %s4776_s30  ;;  %v6235_v33 = vrot.slane %v2023_v22, %v4863_v24 }
 0x1e9   :  { %v6238_v7 = vrot.slane %v3511_v39, %v4863_v24 }
 0x1ea   :  { %v6118_v29 = vpop.permute.xlu1 %3151  ;;  %v6120_v12 = vpop.permute.xlu0 %3147 }
 0x1eb   :  { %7944 = vst [vmem:[#allocation33_spill] sm:$0xff] %v6120_v12  ;;  %7953 = vst [vmem:[#allocation42_spill] sm:$0xff] %v6238_v7  ;;  %v3543_v39 = vcombine.high %v6238_v7, %v7923_v44 }
 0x1ec   :  { %4018 = vrot.lane.b32.xlu1 %v3945_v48, %s4777_s4  ;;  %2159 = vrot.lane.b32.xlu0 %v2105_v0, %s4776_s30  ;;  %v6155_v48 = vrot.slane %v1035_v1, %v4863_v24 }
 0x1ee   :  { %v6134_v52 = vpop.permute.xlu1 %2421  ;;  %v6136_v28 = vpop.permute.xlu0 %2417 }
 0x1ef   :  { %7946 = vst [vmem:[#allocation35_spill] sm:$0xff] %v6136_v28 }
 0x1f0   :  { %4272 = vrot.lane.b32.xlu1 %v4199_v13, %s4777_s4  ;;  %4050 = vrot.lane.b32.xlu0 %v6143_v41, %s4775_s29 }
 0x1f2   :  { %v6150_v16 = vpop.permute.xlu1 %2429  ;;  %v6152_v42 = vpop.permute.xlu0 %2425 }
 0x1f3   :  { %7947 = vst [vmem:[#allocation36_spill] sm:$0xff] %v6152_v42 }
 0x1f4   :  { %1143 = vrot.lane.b32.xlu1 %v6155_v48, %s4775_s29  ;;  %4304 = vrot.lane.b32.xlu0 %v6158_v8, %s4775_s29 }
 0x1f6   :  { %v6170_v1 = vpop.permute.xlu1 %2675  ;;  %v6172_v13 = vpop.permute.xlu0 %2671 }
 0x1f7   :  { %7948 = vst [vmem:[#allocation37_spill] sm:$0xff] %v6170_v1  ;;  %7949 = vst [vmem:[#allocation38_spill] sm:$0xff] %v6172_v13  ;;  %v1606_v13 = vcombine.high %v1596_v9, %v7923_v44  ;;  %v3733_v9 = vcombine.low %v6209_v57, %v6212_v19 }
 0x1f8   :  { %1399 = vrot.lane.b32.xlu1 %v6175_v2, %s4774_s28  ;;  %1175 = vrot.lane.b32.xlu0 %v1135_v45, %s4778_s5 }
 0x1fa   :  { %v6199_v31 = vpop.permute.xlu1 %2683  ;;  %v6201_v45 = vpop.permute.xlu0 %2679 }
 0x1fb   :  { %7950 = vst [vmem:[#allocation39_spill] sm:$0xff] %v6201_v45 }
 0x1fc   :  { %1621 = vrot.lane.b32.xlu1 %v6182_v4, %s4774_s28  ;;  %1431 = vrot.lane.b32.xlu0 %v1384_v36, %s4779_s6  ;;  %v6223_v36 = vrot.slane %v1769_v37, %v4863_v24  ;;  %v1855_v37 = vcombine.high %v1851_v26, %v7923_v44  ;;  %v2109_v26 = vcombine.high %v2105_v0, %v7923_v44 }
 0x1fe   :  { %v6218_v56 = vpop.permute.xlu1 %2419  ;;  %v6220_v45 = vpop.permute.xlu0 %2415 }
 0x1ff   :  { %7951 = vst [vmem:[#allocation40_spill] sm:$0xff] %v6220_v45  ;;  %v3914_v45 = vcombine.high %v6068_v43, %v6065_v18 }
 0x200   :  { %1877 = vrot.lane.b32.xlu1 %v6223_v36, %s4776_s30  ;;  %1653 = vrot.lane.b32.xlu0 %v1606_v13, %s4779_s6  ;;  %v6245_v13 = vrot.slane %v3733_v9, %v4863_v24 }
 0x202   :  { %v6230_v15 = vpop.permute.xlu1 %2427  ;;  %v6232_v38 = vpop.permute.xlu0 %2423  ;;  %7954 = vst [vmem:[#allocation43_spill] sm:$0xff] %v6245_v13  ;;  %v3765_v9 = vcombine.high %v6245_v13, %v7923_v44 }
 0x203   :  { %7952 = vst [vmem:[#allocation41_spill] sm:$0xff] %v6232_v38 }
 0x204   :  { %2131 = vrot.lane.b32.xlu1 %v6235_v33, %s4776_s30  ;;  %1909 = vrot.lane.b32.xlu0 %v1855_v37, %s4780_s7  ;;  %v4168_v37 = vcombine.high %v6090_v51, %v6087_v20  ;;  %v4014_v20 = vcombine.high %v6143_v41, %v7923_v44  ;;  %v3427_v51 = vcombine.low %v6006_v47, %v6036_v62  ;;  %v7960_v41 = vld [vmem:[#allocation12_spill] sm:$0xff] }
 0x205   :  { %v1118_v7 = vcombine.low %v7960_v41, %v5673_v55  ;;  %v4715_v47 = vld [vmem:[%s7848_s0 + $0x62] ss:$48 sps:$4 sm:$0xff]  }
 0x206   :  { %v6249_v38 = vpop.permute.xlu1 %2673  ;;  %v6251_v22 = vpop.permute.xlu0 %2669  ;;  %v6307_v62 = vrot.slane %v3427_v51, %v4861_v23  ;;  %v6327_v51 = vrot.slane %v4715_v47, %v4861_v23 }
 0x207   :  { %7955 = vst [vmem:[#allocation44_spill] sm:$0xff] %v6249_v38  ;;  %7956 = vst [vmem:[#allocation45_spill] sm:$0xff] %v6251_v22  ;;  %v6267_v22 = vrot.slane %v3914_v45, %v4863_v24  ;;  %v3411_v45 = vcombine.low %v6008_v32, %v6038_v10  ;;  %v4717_v32 = vld [vmem:[%s7848_s0 + $0x7a] ss:$48 sps:$4 sm:$0xff]  }
 0x208   :  { %3576 = vrot.lane.b32.xlu1 %v3543_v39, %s4777_s4  ;;  %2163 = vrot.lane.b32.xlu0 %v2109_v26, %s4780_s7  ;;  %v6277_v26 = vrot.slane %v4168_v37, %v4863_v24  ;;  %v1067_v37 = vcombine.high %v6155_v48, %v7923_v44 }
 0x209   :  { %v6310_v10 = vrot.slane %v3411_v45, %v4861_v23  ;;  %v6330_v45 = vrot.slane %v4717_v32, %v4861_v23 }
 0x20a   :  { %v6262_v18 = vpop.permute.xlu1 %2681  ;;  %v6264_v43 = vpop.permute.xlu0 %2677 }
 0x20b   :  { %7957 = vst [vmem:[#allocation46_spill] sm:$0xff] %v6262_v18  ;;  %7958 = vst [vmem:[#allocation47_spill] sm:$0xff] %v6264_v43  ;;  %v4268_v43 = vcombine.high %v6158_v8, %v7923_v44  ;;  %v3665_v47 = vcombine.low %v6327_v51, %v6330_v45 }
 0x20c   :  { %4022 = vrot.lane.b32.xlu1 %v6267_v22, %s4775_s29  ;;  %3798 = vrot.lane.b32.xlu0 %v3765_v9, %s4777_s4 }
 0x20e   :  { %v6272_v0 = vpop.permute.xlu1 %2139  ;;  %v6274_v39 = vpop.permute.xlu0 %1885 }
 0x210   :  { %4276 = vrot.lane.b32.xlu1 %v6277_v26, %s4775_s29  ;;  %4054 = vrot.lane.b32.xlu0 %v4014_v20, %s4778_s5  ;;  %v1316_v20 = vcombine.high %v6175_v2, %v7923_v44 }
 0x212   :  { %v6288_v9 = vpop.permute.xlu1 %1889  ;;  %v6290_v13 = vpop.permute.xlu0 %1857 }
 0x213   :  { %7959 = vst [vmem:[#allocation48_spill] sm:$0xff] %v6290_v13  ;;  %v6321_v13 = vrot.slane %v1118_v7, %v4863_v24 }
 0x214   :  { %1147 = vrot.lane.b32.xlu1 %v1067_v37, %s4778_s5  ;;  %4308 = vrot.lane.b32.xlu0 %v4268_v43, %s4778_s5  ;;  %v1367_v37 = vcombine.high %v6023_v5, %v6013_v3  ;;  %v1538_v43 = vcombine.high %v6182_v4, %v7923_v44  ;;  %v1589_v3 = vcombine.high %v6027_v6, %v6030_v14 }
 0x215   :  { %v3443_v5 = vcombine.low %v6310_v10, %v6307_v62 }
 0x216   :  { %v6312_v48 = vpop.permute.xlu1 %2143  ;;  %v6314_v8 = vpop.permute.xlu0 %2111  ;;  %v6343_v4 = vrot.slane %v1367_v37, %v4863_v24  ;;  %v6351_v6 = vrot.slane %v1589_v3, %v4863_v24 }
 0x217   :  { %7961 = vst [vmem:[#allocation12_spill] sm:$0xff] %v6314_v8  ;;  %v6360_v37 = vrot.slane %v3443_v5, %v4863_v24  ;;  %v2041_v5 = vcombine.high %v6235_v33, %v7923_v44 }
 0x218   :  { %1403 = vrot.lane.b32.xlu1 %v1316_v20, %s4779_s6  ;;  %1179 = vrot.lane.b32.xlu0 %v6321_v13, %s4774_s28  ;;  %v1787_v20 = vcombine.high %v6223_v36, %v7923_v44  ;;  %v3512_v36 = vcombine.high %v6197_v50, %v6194_v25  ;;  %v4727_v25 = vld [vmem:[%s7848_s0 + $0x6e] ss:$48 sps:$4 sm:$0xff]   ;;  %v4728_v50 = vld [vmem:[%s7848_s0 + $0x86] ss:$48 sps:$4 sm:$0xff]  }
 0x219   :  { %7965 = vst [vmem:[#allocation52_spill] sm:$0xff] %v6360_v37 }
 0x21a   :  { %v6338_v2 = vpop.permute.xlu1 %1637  ;;  %v6340_v7 = vpop.permute.xlu0 %1415  ;;  %v6395_v33 = vrot.slane %v3512_v36, %v4863_v24  ;;  %v6413_v36 = vrot.slane %v4728_v50, %v4861_v23 }
 0x21b   :  { %7962 = vst [vmem:[#allocation49_spill] sm:$0xff] %v6338_v2  ;;  %7963 = vst [vmem:[#allocation50_spill] sm:$0xff] %v6340_v7  ;;  %v3475_v7 = vcombine.high %v6360_v37, %v7923_v44  ;;  %v6410_v37 = vrot.slane %v4727_v25, %v4861_v23  ;;  %v1050_v25 = vcombine.low %v5821_v61, %v5818_v17 }
 0x21c   :  { %1625 = vrot.lane.b32.xlu1 %v1538_v43, %s4779_s6  ;;  %1435 = vrot.lane.b32.xlu0 %v6343_v4, %s4776_s30  ;;  %v6364_v43 = vrot.slane %v3665_v47, %v4863_v24 }
 0x21d   :  { %v6453_v18 = vrot.slane %v1050_v25, %v4863_v24 }
 0x21e   :  { %v6353_v14 = vpop.permute.xlu1 %1893  ;;  %v6355_v32 = vpop.permute.xlu0 %1861  ;;  %7966 = vst [vmem:[#allocation53_spill] sm:$0xff] %v6364_v43  ;;  %v3697_v47 = vcombine.high %v6364_v43, %v7923_v44  ;;  %v4721_v43 = vld [vmem:[%s7848_s0 + $0x81] ss:$48 sps:$4 sm:$0xff]  }
 0x21f   :  { %7964 = vst [vmem:[#allocation51_spill] sm:$0xff] %v6355_v32  ;;  %v6446_v38 = vrot.slane %v4721_v43, %v4861_v23 }
 0x220   :  { %1881 = vrot.lane.b32.xlu1 %v1787_v20, %s4780_s7  ;;  %1657 = vrot.lane.b32.xlu0 %v6351_v6, %s4776_s30  ;;  %v3734_v20 = vcombine.high %v6209_v57, %v6212_v19 }
 0x222   :  { %v6368_v3 = vpop.permute.xlu1 %2147  ;;  %v6370_v2 = vpop.permute.xlu0 %2115  ;;  %v6401_v57 = vrot.slane %v3734_v20, %v4863_v24  ;;  %v4719_v20 = vld [vmem:[%s7848_s0 + $0x69] ss:$48 sps:$4 sm:$0xff]  }
 0x223   :  { %7967 = vst [vmem:[#allocation54_spill] sm:$0xff] %v6370_v2 }
 0x224   :  { %3548 = vrot.lane.b32.xlu1 %v3475_v7, %s4777_s4  ;;  %2135 = vrot.lane.b32.xlu0 %v2041_v5, %s4780_s7  ;;  %v3946_v5 = vcombine.high %v6267_v22, %v7923_v44  ;;  %v6443_v22 = vrot.slane %v4719_v20, %v4861_v23 }
 0x226   :  { %v6384_v2 = vpop.permute.xlu1 %1419  ;;  %v6386_v8 = vpop.permute.xlu0 %1387  ;;  %v3009_v43 = vcombine.low %v6443_v22, %v6446_v38 }
 0x227   :  { %7968 = vst [vmem:[#allocation55_spill] sm:$0xff] %v6384_v2  ;;  %7969 = vst [vmem:[#allocation56_spill] sm:$0xff] %v6386_v8  ;;  %v7973_v8 = vld [vmem:[#allocation15_spill] sm:$0xff] }
 0x228   :  { %3770 = vrot.lane.b32.xlu1 %v3697_v47, %s4777_s4  ;;  %3580 = vrot.lane.b32.xlu0 %v6395_v33, %s4775_s29  ;;  %v3997_v47 = vcombine.low %v5718_v30, %v5721_v34 }
 0x22a   :  { %v6403_v19 = vpop.permute.xlu1 %1641  ;;  %v6405_v7 = vpop.permute.xlu0 %1609  ;;  %v6439_v32 = vrot.slane %v3997_v47, %v4863_v24  ;;  %v3247_v47 = vcombine.low %v6074_v58, %v6092_v21 }
 0x22b   :  { %7970 = vst [vmem:[#allocation57_spill] sm:$0xff] %v6403_v19  ;;  %7971 = vst [vmem:[#allocation58_spill] sm:$0xff] %v6405_v7  ;;  %v7972_v7 = vld [vmem:[#allocation16_spill] sm:$0xff] }
 0x22c   :  { %4026 = vrot.lane.b32.xlu1 %v3946_v5, %s4778_s5  ;;  %3802 = vrot.lane.b32.xlu0 %v6401_v57, %s4775_s29  ;;  %v4200_v5 = vcombine.high %v6277_v26, %v7923_v44  ;;  %v4251_v19 = vcombine.low %v7973_v8, %v7972_v7 }
 0x22e   :  { %v6430_v50 = vpop.permute.xlu1 %1897  ;;  %v6436_v2 = vpop.permute.xlu0 %1865  ;;  %v6462_v20 = vrot.slane %v4251_v19, %v4863_v24  ;;  %v6479_v19 = vrot.slane %v3247_v47, %v4861_v23 }
 0x22f   :  { %7974 = vst [vmem:[#allocation16_spill] sm:$0xff] %v6436_v2 }
 0x230   :  { %4280 = vrot.lane.b32.xlu1 %v4200_v5, %s4778_s5  ;;  %4058 = vrot.lane.b32.xlu0 %v6439_v32, %s4774_s28  ;;  %v3231_v5 = vcombine.low %v6076_v63, %v6094_v40  ;;  %v7977_v63 = vcombine.high %v5621_v35, %v5624_v49  ;;  %v7979_v35 = vcombine.high %v5782_v11, %v5785_v60 }
 0x231   :  { %v1607_v60 = vcombine.high %v6351_v6, %v7923_v44 }
 0x232   :  { %v6450_v26 = vpop.permute.xlu1 %2151  ;;  %v6459_v2 = vpop.permute.xlu0 %2119  ;;  %v6476_v40 = vrot.slane %v7977_v63, %v4863_v24  ;;  %v6482_v58 = vrot.slane %v3231_v5, %v4861_v23  ;;  %v6494_v49 = vrot.slane %v7979_v35, %v4863_v24  ;;  %v6497_v63 = vrot.slane %v3009_v43, %v4863_v24 }
 0x233   :  { %7975 = vst [vmem:[#allocation15_spill] sm:$0xff] %v6459_v2  ;;  %v1136_v2 = vcombine.high %v6321_v13, %v7923_v44 }
 0x234   :  { %1151 = vrot.lane.b32.xlu1 %v6453_v18, %s4774_s28  ;;  %4312 = vrot.lane.b32.xlu0 %v6462_v20, %s4774_s28  ;;  %7980 = vst [vmem:[#allocation61_spill] sm:$0xff] %v6497_v63  ;;  %v3263_v5 = vcombine.low %v6482_v58, %v6479_v19  ;;  %v3041_v11 = vcombine.high %v6497_v63, %v7923_v44 }
 0x235   :  { %v3666_v63 = vcombine.high %v6327_v51, %v6330_v45 }
 0x236   :  { %v6470_v25 = vpop.permute.xlu1 %1391  ;;  %v6484_v21 = vpop.permute.xlu0 %1167 }
 0x237   :  { %7976 = vst [vmem:[#allocation59_spill] sm:$0xff] %v6470_v25  ;;  %7978 = vst [vmem:[#allocation60_spill] sm:$0xff] %v6484_v21  ;;  %v1385_v21 = vcombine.high %v6343_v4, %v7923_v44  ;;  %v6522_v4 = vrot.slane %v3263_v5, %v4863_v24  ;;  %v6546_v45 = vrot.slane %v3666_v63, %v4863_v24  ;;  %v4723_v63 = vld [vmem:[%s7848_s0 + $0x61] ss:$48 sps:$4 sm:$0xff]  }
 0x238   :  { %1407 = vrot.lane.b32.xlu1 %v6476_v40, %s4776_s30  ;;  %1183 = vrot.lane.b32.xlu0 %v1136_v2, %s4779_s6  ;;  %v3444_v2 = vcombine.high %v6310_v10, %v6307_v62  ;;  %v4729_v62 = vld [vmem:[%s7848_s0 + $0x66] ss:$48 sps:$4 sm:$0xff]   ;;  %v4730_v10 = vld [vmem:[%s7848_s0 + $0x7e] ss:$48 sps:$4 sm:$0xff]  }
 0x239   :  { %7985 = vst [vmem:[#allocation66_spill] sm:$0xff] %v6522_v4  ;;  %v3295_v51 = vcombine.high %v6522_v4, %v7923_v44  ;;  %v6557_v25 = vrot.slane %v4730_v10, %v4861_v23  ;;  %v6588_v10 = vrot.slane %v4723_v63, %v4861_v23  ;;  %v4015_v63 = vcombine.high %v6439_v32, %v7923_v44 }
 0x23a   :  { %v6500_v47 = vpop.permute.xlu1 %1613  ;;  %v6504_v13 = vpop.permute.xlu0 %1423  ;;  %v6531_v6 = vrot.slane %v3444_v2, %v4863_v24 }
 0x23b   :  { %7981 = vst [vmem:[#allocation62_spill] sm:$0xff] %v6500_v47  ;;  %7982 = vst [vmem:[#allocation63_spill] sm:$0xff] %v6504_v13  ;;  %v6554_v47 = vrot.slane %v4729_v62, %v4861_v23  ;;  %v4725_v62 = vld [vmem:[%s7848_s0 + $0x79] ss:$48 sps:$4 sm:$0xff]  }
 0x23c   :  { %1629 = vrot.lane.b32.xlu1 %v6494_v49, %s4776_s30  ;;  %1439 = vrot.lane.b32.xlu0 %v1385_v21, %s4780_s7 }
 0x23e   :  { %v6517_v43 = vpop.permute.xlu1 %1869  ;;  %v6519_v35 = vpop.permute.xlu0 %1645 }
 0x23f   :  { %7983 = vst [vmem:[#allocation64_spill] sm:$0xff] %v6517_v43  ;;  %7984 = vst [vmem:[#allocation65_spill] sm:$0xff] %v6519_v35  ;;  %v3544_v35 = vcombine.high %v6395_v33, %v7923_v44  ;;  %v7989_v33 = vld [vmem:[#allocation20_spill] sm:$0xff] }
 0x240   :  { %3074 = vrot.lane.b32.xlu1 %v3041_v11, %s4777_s4  ;;  %1661 = vrot.lane.b32.xlu0 %v1607_v60, %s4780_s7  ;;  %v7987_v11 = vld [vmem:[#allocation19_spill] sm:$0xff] }
 0x241   :  { %v3929_v60 = vcombine.low %v7987_v11, %v5878_v59 }
 0x242   :  { %v6528_v21 = vpop.permute.xlu1 %2123  ;;  %v6539_v5 = vpop.permute.xlu0 %1901 }
 0x243   :  { %7986 = vst [vmem:[#allocation67_spill] sm:$0xff] %v6528_v21  ;;  %v6581_v43 = vrot.slane %v3929_v60, %v4863_v24  ;;  %v3163_v60 = vcombine.low %v6106_v46, %v6120_v12  ;;  %v4269_v46 = vcombine.high %v6462_v20, %v7923_v44  ;;  %v7997_v20 = vcombine.high %v7960_v41, %v5673_v55 }
 0x244   :  { %3552 = vrot.lane.b32.xlu1 %v6531_v6, %s4775_s29  ;;  %3328 = vrot.lane.b32.xlu0 %v3295_v51, %s4777_s4  ;;  %v3766_v51 = vcombine.high %v6401_v57, %v7923_v44  ;;  %v3179_v57 = vcombine.low %v6104_v54, %v6118_v29 }
 0x246   :  { %v6551_v2 = vpop.permute.xlu1 %4046  ;;  %v6559_v4 = vpop.permute.xlu0 %2155 }
 0x247   :  { %7988 = vst [vmem:[#allocation19_spill] sm:$0xff] %v6551_v2  ;;  %v7990_v2 = vld [vmem:[#allocation21_spill] sm:$0xff] }
 0x248   :  { %3774 = vrot.lane.b32.xlu1 %v6546_v45, %s4775_s29  ;;  %3584 = vrot.lane.b32.xlu0 %v3544_v35, %s4778_s5  ;;  %v4183_v13 = vcombine.low %v7990_v2, %v7989_v33  ;;  %v6591_v35 = vrot.slane %v4725_v62, %v4861_v23 }
 0x24a   :  { %v6578_v21 = vpop.permute.xlu1 %1139  ;;  %v6583_v59 = vpop.permute.xlu0 %4300  ;;  %v2941_v62 = vcombine.low %v6588_v10, %v6591_v35 }
 0x24b   :  { %7991 = vst [vmem:[#allocation21_spill] sm:$0xff] %v6578_v21  ;;  %7992 = vst [vmem:[#allocation68_spill] sm:$0xff] %v6583_v59  ;;  %v6601_v59 = vrot.slane %v4183_v13, %v4863_v24 }
 0x24c   :  { %4030 = vrot.lane.b32.xlu1 %v6581_v43, %s4774_s28  ;;  %3806 = vrot.lane.b32.xlu0 %v3766_v51, %s4778_s5  ;;  %v6613_v51 = vrot.slane %v3179_v57, %v4861_v23 }
 0x24e   :  { %v6598_v21 = vpop.permute.xlu1 %1395  ;;  %v6603_v33 = vpop.permute.xlu0 %1171 }
 0x24f   :  { %7993 = vst [vmem:[#allocation69_spill] sm:$0xff] %v6598_v21  ;;  %7994 = vst [vmem:[#allocation70_spill] sm:$0xff] %v6603_v33  ;;  %v6616_v21 = vrot.slane %v3163_v60, %v4861_v23  ;;  %v1068_v33 = vcombine.high %v6453_v18, %v7923_v44  ;;  %v1317_v18 = vcombine.high %v6476_v40, %v7923_v44 }
 0x250   :  { %4284 = vrot.lane.b32.xlu1 %v6601_v59, %s4774_s28  ;;  %4062 = vrot.lane.b32.xlu0 %v4015_v63, %s4779_s6  ;;  %v6628_v63 = vrot.slane %v2941_v62, %v4863_v24  ;;  %v1539_v62 = vcombine.high %v6494_v49, %v7923_v44  ;;  %v3010_v40 = vcombine.high %v6443_v22, %v6446_v38 }
 0x251   :  { %v3195_v57 = vcombine.low %v6616_v21, %v6613_v51  ;;  %v3264_v38 = vcombine.high %v6482_v58, %v6479_v19  ;;  %v3698_v58 = vcombine.high %v6546_v45, %v7923_v44  ;;  %v3749_v19 = vcombine.low %v6410_v37, %v6413_v36 }
 0x252   :  { %v6618_v13 = vpop.permute.xlu1 %1617  ;;  %v6622_v32 = vpop.permute.xlu0 %1427  ;;  %7996 = vst [vmem:[#allocation72_spill] sm:$0xff] %v6628_v63 }
 0x253   :  { %7995 = vst [vmem:[#allocation71_spill] sm:$0xff] %v6618_v13  ;;  %v6657_v55 = vrot.slane %v3195_v57, %v4863_v24  ;;  %v6710_v45 = vrot.slane %v3749_v19, %v4863_v24 }
 0x254   :  { %1155 = vrot.lane.b32.xlu1 %v1068_v33, %s4779_s6  ;;  %4316 = vrot.lane.b32.xlu0 %v4269_v46, %s4779_s6  ;;  %v6643_v33 = vrot.slane %v7997_v20, %v4863_v24  ;;  %v2973_v46 = vcombine.high %v6628_v63, %v7923_v44 }
 0x255   :  { %7998 = vst [vmem:[#allocation73_spill] sm:$0xff] %v6657_v55  ;;  %v3227_v49 = vcombine.high %v6657_v55, %v7923_v44 }
 0x256   :  { %v6633_v60 = vpop.permute.xlu1 %1873  ;;  %v6637_v13 = vpop.permute.xlu0 %1649 }
 0x258   :  { %1411 = vrot.lane.b32.xlu1 %v1317_v18, %s4780_s7  ;;  %1187 = vrot.lane.b32.xlu0 %v6643_v33, %s4776_s30  ;;  %v6664_v18 = vrot.slane %v3010_v40, %v4863_v24 }
 0x25a   :  { %v6654_v12 = vpop.permute.xlu1 %2127  ;;  %v6659_v41 = vpop.permute.xlu0 %1905 }
 0x25c   :  { %3046 = vrot.lane.b32.xlu1 %v2973_v46, %s4777_s4  ;;  %1633 = vrot.lane.b32.xlu0 %v1539_v62, %s4780_s7  ;;  %v3476_v46 = vcombine.high %v6531_v6, %v7923_v44  ;;  %v3527_v62 = vcombine.low %v6001_v53, %v5998_v27  ;;  %v2523_v6 = vcombine.low %v6134_v52, %v6150_v16 }
 0x25e   :  { %v6666_v20 = vpop.permute.xlu1 %4018  ;;  %v6672_v22 = vpop.permute.xlu0 %2159  ;;  %v6713_v55 = vrot.slane %v2523_v6, %v4861_v23 }
 0x25f   :  { %7999 = vst [vmem:[#allocation74_spill] sm:$0xff] %v6666_v20  ;;  %v6686_v20 = vrot.slane %v3264_v38, %v4863_v24 }
 0x260   :  { %3300 = vrot.lane.b32.xlu1 %v3227_v49, %s4777_s4  ;;  %3078 = vrot.lane.b32.xlu0 %v6664_v18, %s4775_s29  ;;  %v2507_v49 = vcombine.low %v6136_v28, %v6152_v42 }
 0x262   :  { %v6677_v57 = vpop.permute.xlu1 %4272  ;;  %v6683_v40 = vpop.permute.xlu0 %4050  ;;  %v6716_v63 = vrot.slane %v2507_v49, %v4861_v23 }
 0x263   :  { %8000 = vst [vmem:[#allocation75_spill] sm:$0xff] %v6677_v57  ;;  %8001 = vst [vmem:[#allocation76_spill] sm:$0xff] %v6683_v40  ;;  %v8005_v40 = vld [vmem:[#allocation38_spill] sm:$0xff] }
 0x264   :  { %3556 = vrot.lane.b32.xlu1 %v3476_v46, %s4778_s5  ;;  %3332 = vrot.lane.b32.xlu0 %v6686_v20, %s4775_s29  ;;  %v6704_v46 = vrot.slane %v3527_v62, %v4863_v24  ;;  %v3947_v62 = vcombine.high %v6581_v43, %v7923_v44  ;;  %v2539_v19 = vcombine.low %v6716_v63, %v6713_v55 }
 0x265   :  { %v4201_v43 = vcombine.high %v6601_v59, %v7923_v44  ;;  %v8009_v59 = vld [vmem:[#allocation6_spill] sm:$0xff] }
 0x266   :  { %v6699_v57 = vpop.permute.xlu1 %1143  ;;  %v6701_v38 = vpop.permute.xlu0 %4304 }
 0x267   :  { %8002 = vst [vmem:[#allocation77_spill] sm:$0xff] %v6699_v57  ;;  %8003 = vst [vmem:[#allocation78_spill] sm:$0xff] %v6701_v38  ;;  %v8004_v38 = vld [vmem:[#allocation39_spill] sm:$0xff] }
 0x268   :  { %3778 = vrot.lane.b32.xlu1 %v3698_v58, %s4778_s5  ;;  %3588 = vrot.lane.b32.xlu0 %v6704_v46, %s4774_s28  ;;  %v2777_v58 = vcombine.low %v6170_v1, %v6199_v31  ;;  %v2761_v28 = vcombine.low %v8005_v40, %v8004_v38 }
 0x26a   :  { %v6718_v57 = vpop.permute.xlu1 %1399  ;;  %v6726_v42 = vpop.permute.xlu0 %1175  ;;  %v6738_v49 = vrot.slane %v2777_v58, %v4861_v23  ;;  %v6741_v40 = vrot.slane %v2761_v28, %v4861_v23  ;;  %v1919_v58 = vsel %vm215_vm0, %v8009_v59, %v6274_v39  ;;  %v8010_v28 = vcombine.high %v5821_v61, %v5818_v17 }
 0x26b   :  { %8006 = vst [vmem:[#allocation79_spill] sm:$0xff] %v6726_v42  ;;  %v8012_v39 = vcombine.high %v7973_v8, %v7972_v7  ;;  %v2942_v61 = vcombine.high %v6588_v10, %v6591_v35 }
 0x26c   :  { %4034 = vrot.lane.b32.xlu1 %v3947_v62, %s4779_s6  ;;  %3810 = vrot.lane.b32.xlu0 %v6710_v45, %s4774_s28  ;;  %v8008_v62 = vcombine.high %v5718_v30, %v5721_v34  ;;  %v6763_v1 = vrot.slane %v8010_v28, %v4863_v24  ;;  %v6766_v30 = vrot.slane %v2539_v19, %v4863_v24  ;;  %v8013_v19 = vld [vmem:[#allocation7_spill] sm:$0xff] }
 0x26d   :  { %v2793_v34 = vcombine.low %v6741_v40, %v6738_v49  ;;  %v6778_v59 = vrot.slane %v8012_v39, %v4863_v24  ;;  %v2173_v8 = vsel %vm215_vm0, %v8013_v19, %v6272_v0  ;;  %v1137_v28 = vcombine.high %v6643_v33, %v7923_v44 }
 0x26e   :  { %v6733_v6 = vpop.permute.xlu1 %1621  ;;  %v6743_v42 = vpop.permute.xlu0 %1431  ;;  %v6749_v38 = vrot.slane %v8008_v62, %v4863_v24  ;;  %8011 = vst [vmem:[#allocation6_spill] sm:$0xff] %v6766_v30  ;;  %v2174_v10 = vsel %vm217_vm1, %v2173_v8, %v6312_v48  ;;  %v6813_v39 = vrot.slane %v2942_v61, %v4863_v24  ;;  %v3196_v33 = vcombine.high %v6616_v21, %v6613_v51  ;;  %v8016_v21 = vld [vmem:[#allocation25_spill] sm:$0xff]  ;;  %v8017_v51 = vld [vmem:[#allocation26_spill] sm:$0xff] }
 0x26f   :  { %8007 = vst [vmem:[#allocation80_spill] sm:$0xff] %v6733_v6  ;;  %v6806_v0 = vrot.slane %v2793_v34, %v4863_v24  ;;  %v3459_v19 = vcombine.low %v8017_v51, %v8016_v21 }
 0x270   :  { %4288 = vrot.lane.b32.xlu1 %v4201_v43, %s4779_s6  ;;  %4066 = vrot.lane.b32.xlu0 %v6749_v38, %s4776_s30  ;;  %v1920_v43 = vsel %vm217_vm1, %v1919_v58, %v6288_v9  ;;  %v2571_v58 = vcombine.high %v6766_v30, %v7923_v44  ;;  %v6839_v8 = vrot.slane %v3196_v33, %v4863_v24  ;;  %v8024_v33 = vld [vmem:[#allocation40_spill] sm:$0xff] }
 0x271   :  { %v1921_v17 = vsel %vm219_vm2, %v1920_v43, %v6353_v14  ;;  %8014 = vst [vmem:[#allocation7_spill] sm:$0xff] %v6806_v0 }
 0x272   :  { %v6757_v6 = vpop.permute.xlu1 %1877  ;;  %v6772_v62 = vpop.permute.xlu0 %1653  ;;  %v1922_v9 = vsel %vm221_vm3, %v1921_v17, %v6430_v50 }
 0x273   :  { %v1923_v7 = vsel %vm223_vm4, %v1922_v9, %v6539_v5  ;;  %v2175_v5 = vsel %vm219_vm2, %v2174_v10, %v6368_v3  ;;  %v2825_v9 = vcombine.high %v6806_v0, %v7923_v44  ;;  %v8036_v0 = vld [vmem:[#allocation20_spill] sm:$0xff] }
 0x274   :  { %1159 = vrot.lane.b32.xlu1 %v6763_v1, %s4776_s30  ;;  %4320 = vrot.lane.b32.xlu0 %v6778_v59, %s4776_s30  ;;  %v1924_v50 = vsel %vm225_vm5, %v1923_v7, %v6659_v41  ;;  %v2176_v48 = vsel %vm221_vm3, %v2175_v5, %v6450_v26  ;;  %v8037_v30 = vcombine.high %v7990_v2, %v8036_v0  ;;  %v8039_v2 = vld [vmem:[#allocation64_spill] sm:$0xff] }
 0x275   :  { %v2177_v34 = vsel %vm223_vm4, %v2176_v48, %v6559_v4  ;;  %v3042_v4 = vcombine.high %v6664_v18, %v7923_v44  ;;  %v6851_v18 = vrot.slane %v3459_v19, %v4863_v24  ;;  %v2455_v48 = vcombine.low %v6218_v56, %v6230_v15  ;;  %v4732_v0 = vld [vmem:[%s7848_s0 + $0x85] ss:$48 sps:$4 sm:$0xff]  }
 0x276   :  { %v6795_v14 = vpop.permute.xlu1 %2131  ;;  %v1910_v35 = vpop.permute.xlu0 %1909  ;;  %v2178_v17 = vsel %vm225_vm5, %v2177_v34, %v6672_v22 }
 0x277   :  { %v1925_v43 = vsel %vm227_vm6, %v1924_v50, %v1910_v35  ;;  %v3296_v35 = vcombine.high %v6686_v20, %v7923_v44 }
 0x278   :  { %2604 = vrot.lane.b32.xlu1 %v2571_v58, %s4777_s4  ;;  %v1929_v41 = vrot.slane %v1925_v43, 4  ;;  %1191 = vrot.lane.b32.xlu0 %v1137_v28, %s4780_s7  ;;  %v3681_v58 = vcombine.low %v6554_v47, %v6557_v25 }
 0x27a   :  { %v6822_v3 = vpop.permute.xlu1 %3576  ;;  %1933 = vst [vmem:[#allocation2 + $0x70] sm:$0xf0] %v1929_v41  ;;  %v2164_v61 = vpop.permute.xlu0 %2163  ;;  %v6860_v5 = vrot.slane %v3681_v58, %v4863_v24  ;;  %v8023_v41 = vld [vmem:[#allocation41_spill] sm:$0xff]  ;;  %v6888_v58 = vrot.slane %v2455_v48, %v4861_v23  ;;  %v8035_v48 = vld [vmem:[#allocation51_spill] sm:$0xff] }
 0x27b   :  { %8015 = vst [vmem:[#allocation81_spill] sm:$0xff] %v6822_v3  ;;  %v2179_v26 = vsel %vm227_vm6, %v2178_v17, %v2164_v61  ;;  %v2439_v34 = vcombine.low %v8024_v33, %v8023_v41  ;;  %v3545_v17 = vcombine.high %v6704_v46, %v7923_v44  ;;  %v3767_v61 = vcombine.high %v6710_v45, %v7923_v44  ;;  %v8031_v3 = vld [vmem:[#allocation45_spill] sm:$0xff] }
 0x27c   :  { %3050 = vrot.lane.b32.xlu1 %v6813_v39, %s4775_s29  ;;  %2181 = vst [vmem:[#allocation2 + $0x78] sm:$0xf] %v2179_v26  ;;  %2858 = vrot.lane.b32.xlu0 %v2825_v9, %s4777_s4  ;;  %v8026_v26 = vld [vmem:[#allocation18_spill] sm:$0xff] }
 0x27d   :  { %v6891_v46 = vrot.slane %v2439_v34, %v4861_v23 }
 0x27e   :  { %v6836_v22 = vpop.permute.xlu1 %4022  ;;  %v6841_v7 = vpop.permute.xlu0 %3798 }
 0x27f   :  { %8018 = vst [vmem:[#allocation25_spill] sm:$0xff] %v6836_v22  ;;  %8019 = vst [vmem:[#allocation26_spill] sm:$0xff] %v6841_v7  ;;  %v8030_v7 = vld [vmem:[#allocation47_spill] sm:$0xff] }
 0x280   :  { %3304 = vrot.lane.b32.xlu1 %v6839_v8, %s4775_s29  ;;  %3082 = vrot.lane.b32.xlu0 %v3042_v4, %s4778_s5  ;;  %v8027_v4 = vcombine.high %v7987_v11, %v8026_v26  ;;  %v2693_v45 = vcombine.low %v8031_v3, %v8030_v7  ;;  %v8033_v11 = vld [vmem:[#allocation48_spill] sm:$0xff]  ;;  %v4270_v7 = vcombine.high %v6778_v59, %v7923_v44 }
 0x281   :  { %v8034_v26 = vld [vmem:[#allocation8_spill] sm:$0xff] }
 0x282   :  { %v6848_v10 = vpop.permute.xlu1 %4276  ;;  %v6853_v50 = vpop.permute.xlu0 %4054  ;;  %v6885_v19 = vrot.slane %v8027_v4, %v4863_v24  ;;  %v1912_v4 = vsel %vm215_vm0, %v8034_v26, %v8033_v11  ;;  %v8038_v26 = vld [vmem:[#allocation16_spill] sm:$0xff] }
 0x283   :  { %8020 = vst [vmem:[#allocation82_spill] sm:$0xff] %v6848_v10  ;;  %8021 = vst [vmem:[#allocation83_spill] sm:$0xff] %v6853_v50  ;;  %v4361_v28 = vld [vmem:[#allocation2 + $0x78] sm:$0xf]  ;;  %v1913_v34 = vsel %vm217_vm1, %v1912_v4, %v8035_v48  ;;  %v2471_v50 = vcombine.low %v6891_v46, %v6888_v58 }
 0x284   :  { %3560 = vrot.lane.b32.xlu1 %v6851_v18, %s4774_s28  ;;  %3336 = vrot.lane.b32.xlu0 %v3296_v35, %s4778_s5  ;;  %v8028_v35 = vld [vmem:[#allocation46_spill] sm:$0xff]  ;;  %v1914_v4 = vsel %vm219_vm2, %v1913_v34, %v8038_v26  ;;  %v2540_v34 = vcombine.high %v6716_v63, %v6713_v55  ;;  %v8040_v26 = vld [vmem:[#allocation12_spill] sm:$0xff] }
 0x285   :  { %4662 = vmatprep.subr.msk.mxu0 %vm4368_vm7, %v4361_v28  ;;  %v8029_v28 = vld [vmem:[#allocation44_spill] sm:$0xff]  ;;  %v6961_v55 = vrot.slane %v2471_v50, %v4863_v24  ;;  %v8048_v50 = vld [vmem:[#allocation30_spill] sm:$0xff] }
 0x286   :  { %v6864_v43 = vpop.permute.xlu1 %1147  ;;  %v6870_v20 = vpop.permute.xlu0 %4308 }
 0x287   :  { %8022 = vst [vmem:[#allocation84_spill] sm:$0xff] %v6864_v43  ;;  %8025 = vst [vmem:[#allocation41_spill] sm:$0xff] %v6870_v20  ;;  %v6913_v20 = vrot.slane %v8037_v30, %v4863_v24  ;;  %v4016_v43 = vcombine.high %v6749_v38, %v7923_v44  ;;  %v1915_v30 = vsel %vm221_vm3, %v1914_v4, %v8039_v2  ;;  %v4731_v38 = vld [vmem:[%s7848_s0 + $0x6d] ss:$48 sps:$4 sm:$0xff]  }
 0x288   :  { %3782 = vrot.lane.b32.xlu1 %v6860_v5, %s4774_s28  ;;  %3592 = vrot.lane.b32.xlu0 %v3545_v17, %s4779_s6  ;;  %v2709_v17 = vcombine.low %v8029_v28, %v8028_v35  ;;  %v8041_v4 = vld [vmem:[#allocation9_spill] sm:$0xff]  ;;  %8043 = vst [vmem:[#allocation18_spill] sm:$0xff] %v6961_v55  ;;  %v6967_v59 = vrot.slane %v4731_v38, %v4861_v23  ;;  %v8049_v35 = vld [vmem:[#allocation28_spill] sm:$0xff] }
 0x289   :  { %v2166_v2 = vsel %vm215_vm0, %v8041_v4, %v8040_v26  ;;  %v8044_v26 = vld [vmem:[#allocation15_spill] sm:$0xff]  ;;  %v6970_v4 = vrot.slane %v4732_v0, %v4861_v23 }
 0x28a   :  { %v6879_v9 = vpop.permute.xlu1 %1403  ;;  %v6897_v22 = vpop.permute.xlu0 %1179  ;;  %v6920_v11 = vrot.slane %v2709_v17, %v4861_v23  ;;  %v1916_v17 = vsel %vm223_vm4, %v1915_v30, %v6633_v60 }
 0x28b   :  { %8032 = vst [vmem:[#allocation40_spill] sm:$0xff] %v6897_v22  ;;  %v1917_v22 = vsel %vm225_vm5, %v1916_v17, %v6757_v6 }
 0x28c   :  { %4038 = vrot.lane.b32.xlu1 %v6885_v19, %s4776_s30  ;;  %3814 = vrot.lane.b32.xlu0 %v3767_v61, %s4779_s6  ;;  %v6923_v61 = vrot.slane %v2693_v45, %v4861_v23  ;;  %v1069_v45 = vcombine.high %v6763_v1, %v7923_v44 }
 0x28e   :  { %v6907_v10 = vpop.permute.xlu1 %1625  ;;  %v6927_v48 = vpop.permute.xlu0 %1435  ;;  %v2725_v60 = vcombine.low %v6923_v61, %v6920_v11 }
 0x290   :  { %4292 = vrot.lane.b32.xlu1 %v6913_v20, %s4776_s30  ;;  %4070 = vrot.lane.b32.xlu0 %v4016_v43, %s4780_s7  ;;  %v8042_v43 = vld [vmem:[#allocation54_spill] sm:$0xff] }
 0x291   :  { %v2167_v1 = vsel %vm217_vm1, %v2166_v2, %v8042_v43  ;;  %v8045_v2 = vld [vmem:[#allocation29_spill] sm:$0xff]  ;;  %v8046_v43 = vld [vmem:[#allocation27_spill] sm:$0xff] }
 0x292   :  { %v1882_v3 = vpop.permute.xlu1 %1881  ;;  %v6958_v63 = vpop.permute.xlu0 %1657  ;;  %v2168_v6 = vsel %vm219_vm2, %v2167_v1, %v8044_v26  ;;  %v3232_v1 = vcombine.high %v8049_v35, %v8048_v50  ;;  %v6993_v35 = vrot.slane %v2725_v60, %v4863_v24 }
 0x293   :  { %v1918_v30 = vsel %vm227_vm6, %v1917_v22, %v1882_v3  ;;  %v3248_v3 = vcombine.high %v8046_v43, %v8045_v2  ;;  %v8047_v22 = vld [vmem:[#allocation67_spill] sm:$0xff]  ;;  %v2974_v43 = vcombine.high %v6813_v39, %v7923_v44  ;;  %v4735_v39 = vld [vmem:[%s7848_s0 + $0x80] ss:$48 sps:$4 sm:$0xff]  }
 0x294   :  { %v1928_v17 = vrot.slane %v1918_v30, 4  ;;  %1163 = vrot.lane.b32.xlu1 %v1069_v45, %s4780_s7  ;;  %v2169_v28 = vsel %vm221_vm3, %v2168_v6, %v8047_v22  ;;  %4324 = vrot.lane.b32.xlu0 %v4270_v7, %s4780_s7  ;;  %v2794_v45 = vcombine.high %v6741_v40, %v6738_v49  ;;  %v6986_v30 = vrot.slane %v2540_v34, %v4863_v24 }
 0x295   :  { %v2170_v38 = vsel %vm223_vm4, %v2169_v28, %v6654_v12  ;;  %v2503_v7 = vcombine.high %v6961_v55, %v7923_v44  ;;  %8051 = vst [vmem:[#allocation8_spill] sm:$0xff] %v6993_v35  ;;  %v3025_v12 = vcombine.low %v6967_v59, %v6970_v4  ;;  %v7002_v49 = vrot.slane %v3248_v3, %v4861_v23 }
 0x296   :  { %1932 = vst [vmem:[#allocation2 + $0x58] sm:$0xf0] %v1928_v17  ;;  %v6983_v0 = vpop.permute.xlu1 %3548  ;;  %v2171_v26 = vsel %vm225_vm5, %v2170_v38, %v6795_v14  ;;  %v2136_v6 = vpop.permute.xlu0 %2135  ;;  %v7005_v14 = vrot.slane %v3232_v1, %v4861_v23  ;;  %v7010_v34 = vrot.slane %v2794_v45, %v4863_v24  ;;  %v2757_v17 = vcombine.high %v6993_v35, %v7923_v44  ;;  %v4733_v45 = vld [vmem:[%s7848_s0 + $0x68] ss:$48 sps:$4 sm:$0xff]  }
 0x297   :  { %8050 = vst [vmem:[#allocation48_spill] sm:$0xff] %v6983_v0  ;;  %v2172_v40 = vsel %vm227_vm6, %v2171_v26, %v2136_v6  ;;  %v7019_v2 = vrot.slane %v3025_v12, %v4863_v24  ;;  %v7056_v12 = vrot.slane %v4735_v39, %v4861_v23 }
 0x298   :  { %2608 = vrot.lane.b32.xlu1 %v6986_v30, %s4775_s29  ;;  %2180 = vst [vmem:[#allocation2 + $0x8] sm:$0xf] %v2172_v40  ;;  %2576 = vrot.lane.b32.xlu0 %v2503_v7, %s4777_s4  ;;  %v3279_v3 = vcombine.low %v7005_v14, %v7002_v49  ;;  %v3228_v7 = vcombine.high %v6839_v8, %v7923_v44 }
 0x299   :  { %v7053_v40 = vrot.slane %v4733_v45, %v4861_v23  ;;  %v8056_v45 = vcombine.high %v6410_v37, %v6413_v36  ;;  %v8060_v36 = vld [vmem:[#allocation63_spill] sm:$0xff] }
 0x29a   :  { %v7007_v28 = vpop.permute.xlu1 %3770  ;;  %v7012_v60 = vpop.permute.xlu0 %3580  ;;  %v7043_v26 = vrot.slane %v3279_v3, %v4863_v24 }
 0x29b   :  { %8052 = vst [vmem:[#allocation51_spill] sm:$0xff] %v7012_v60  ;;  %v7076_v39 = vrot.slane %v8056_v45, %v4863_v24  ;;  %v4738_v45 = vld [vmem:[%s7848_s0 + $0x7d] ss:$48 sps:$4 sm:$0xff]  }
 0x29c   :  { %2862 = vrot.lane.b32.xlu1 %v7010_v34, %s4775_s29  ;;  %2830 = vrot.lane.b32.xlu0 %v2757_v17, %s4777_s4 }
 0x29e   :  { %v7026_v22 = vpop.permute.xlu1 %4026  ;;  %v7028_v50 = vpop.permute.xlu0 %3802 }
 0x29f   :  { %8053 = vst [vmem:[#allocation20_spill] sm:$0xff] %v7026_v22  ;;  %8054 = vst [vmem:[#allocation16_spill] sm:$0xff] %v7028_v50  ;;  %v4360_v1 = vld [vmem:[#allocation2 + $0x8] sm:$0xf] }
 0x2a0   :  { %3086 = vrot.lane.b32.xlu1 %v7019_v2, %s4774_s28  ;;  %3054 = vrot.lane.b32.xlu0 %v2974_v43, %s4778_s5  ;;  %v8055_v43 = vcombine.high %v6001_v53, %v5998_v27  ;;  %v3699_v27 = vcombine.high %v6860_v5, %v7923_v44  ;;  %v2291_v53 = vcombine.low %v7053_v40, %v7056_v12  ;;  %v8059_v50 = vld [vmem:[#allocation55_spill] sm:$0xff] }
 0x2a1   :  { %4663 = vmatpush1.msk.msra.mxu0 %vm4368_vm7, %v4360_v1  ;;  %v3477_v1 = vcombine.high %v6851_v18, %v7923_v44  ;;  %v4737_v5 = vld [vmem:[%s7848_s0 + $0x65] ss:$48 sps:$4 sm:$0xff]  }
 0x2a2   :  { %v7040_v38 = vpop.permute.xlu1 %4280  ;;  %v7045_v6 = vpop.permute.xlu0 %4058  ;;  %v7064_v3 = vrot.slane %v8055_v43, %v4863_v24  ;;  %v8058_v43 = vld [vmem:[#allocation11_spill] sm:$0xff] }
 0x2a4   :  { %3340 = vrot.lane.b32.xlu1 %v7043_v26, %s4774_s28  ;;  %3308 = vrot.lane.b32.xlu0 %v3228_v7, %s4778_s5  ;;  %v8057_v7 = vld [vmem:[#allocation50_spill] sm:$0xff] }
 0x2a5   :  { %v1449_v18 = vsel %vm215_vm0, %v8058_v43, %v8057_v7  ;;  %v8062_v43 = vld [vmem:[#allocation49_spill] sm:$0xff] }
 0x2a6   :  { %v7058_v17 = vpop.permute.xlu1 %1151  ;;  %v7066_v8 = vpop.permute.xlu0 %4312  ;;  %v1450_v60 = vsel %vm217_vm1, %v1449_v18, %v8059_v50  ;;  %v7106_v50 = vrot.slane %v2291_v53, %v4863_v24  ;;  %v8063_v18 = vld [vmem:[#allocation10_spill] sm:$0xff] }
 0x2a8   :  { %3596 = vrot.lane.b32.xlu1 %v7064_v3, %s4776_s30  ;;  %3564 = vrot.lane.b32.xlu0 %v3477_v1, %s4779_s6  ;;  %v1451_v1 = vsel %vm219_vm2, %v1450_v60, %v8060_v36  ;;  %8061 = vst [vmem:[#allocation64_spill] sm:$0xff] %v7106_v50  ;;  %v2472_v60 = vcombine.high %v6891_v46, %v6888_v58  ;;  %v8065_v46 = vld [vmem:[#allocation65_spill] sm:$0xff] }
 0x2a9   :  { %v1452_v7 = vsel %vm221_vm3, %v1451_v1, %v6622_v32  ;;  %v1671_v36 = vsel %vm215_vm0, %v8063_v18, %v8062_v43  ;;  %v4202_v32 = vcombine.high %v6913_v20, %v7923_v44  ;;  %v8064_v1 = vld [vmem:[#allocation57_spill] sm:$0xff]  ;;  %v3948_v58 = vcombine.high %v6885_v19, %v7923_v44 }
 0x2aa   :  { %v7086_v0 = vpop.permute.xlu1 %1407  ;;  %v7090_v37 = vpop.permute.xlu0 %1183  ;;  %v1453_v35 = vsel %vm223_vm4, %v1452_v7, %v6743_v42  ;;  %v7130_v7 = vrot.slane %v4737_v5, %v4861_v23  ;;  %v7133_v20 = vrot.slane %v4738_v45, %v4861_v23  ;;  %v8066_v18 = vld [vmem:[#allocation33_spill] sm:$0xff]  ;;  %v2726_v5 = vcombine.high %v6923_v61, %v6920_v11 }
 0x2ab   :  { %v1454_v53 = vsel %vm225_vm5, %v1453_v35, %v6927_v48  ;;  %v3180_v48 = vcombine.high %v6104_v54, %v6118_v29  ;;  %v7151_v54 = vrot.slane %v2472_v60, %v4863_v24 }
 0x2ac   :  { %3818 = vrot.lane.b32.xlu1 %v7076_v39, %s4776_s30  ;;  %3786 = vrot.lane.b32.xlu0 %v3699_v27, %s4779_s6  ;;  %v1672_v27 = vsel %vm217_vm1, %v1671_v36, %v8064_v1  ;;  %v8067_v36 = vld [vmem:[#allocation31_spill] sm:$0xff]  ;;  %v2957_v11 = vcombine.low %v7130_v7, %v7133_v20  ;;  %v7170_v60 = vrot.slane %v2726_v5, %v4863_v24 }
 0x2ad   :  { %v1673_v43 = vsel %vm219_vm2, %v1672_v27, %v8065_v46 }
 0x2ae   :  { %v7115_v55 = vpop.permute.xlu1 %1629  ;;  %v1440_v22 = vpop.permute.xlu0 %1439  ;;  %v1674_v35 = vsel %vm221_vm3, %v1673_v43, %v6637_v13  ;;  %v7179_v46 = vrot.slane %v2957_v11, %v4863_v24  ;;  %v4739_v43 = vld [vmem:[%s7848_s0 + $0x60] ss:$48 sps:$4 sm:$0xff]  }
 0x2af   :  { %v1455_v42 = vsel %vm227_vm6, %v1454_v53, %v1440_v22  ;;  %v2323_v22 = vcombine.high %v7106_v50, %v7923_v44  ;;  %v1675_v45 = vsel %vm223_vm4, %v1674_v35, %v6772_v62  ;;  %v7162_v62 = vrot.slane %v3180_v48, %v4861_v23 }
 0x2b0   :  { %4296 = vrot.lane.b32.xlu1 %v4202_v32, %s4780_s7  ;;  %v1459_v19 = vrot.slane %v1455_v42, 4  ;;  %4042 = vrot.lane.b32.xlu0 %v3948_v58, %s4780_s7  ;;  %v3164_v32 = vcombine.high %v8067_v36, %v8066_v18  ;;  %v1676_v29 = vsel %vm225_vm5, %v1675_v45, %v6958_v63  ;;  %v2572_v58 = vcombine.high %v6986_v30, %v7923_v44  ;;  %v4741_v42 = vld [vmem:[%s7848_s0 + $0x78] ss:$48 sps:$4 sm:$0xff]  }
 0x2b1   :  { %v7199_v18 = vrot.slane %v4739_v43, %v4861_v23  ;;  %v7202_v36 = vrot.slane %v4741_v42, %v4861_v23  ;;  %v8070_v43 = vcombine.high %v6554_v47, %v6557_v25 }
 0x2b2   :  { %v7148_v1 = vpop.permute.xlu1 %3074  ;;  %1463 = vst [vmem:[#allocation2 + $0x38] sm:$0xf0] %v1459_v19  ;;  %v1662_v13 = vpop.permute.xlu0 %1661  ;;  %v7165_v61 = vrot.slane %v3164_v32, %v4861_v23  ;;  %v2826_v19 = vcombine.high %v7010_v34, %v7923_v44  ;;  %v3043_v32 = vcombine.high %v7019_v2, %v7923_v44  ;;  %v8069_v2 = vcombine.high %v8017_v51, %v8016_v21  ;;  %v8072_v21 = vld [vmem:[#allocation56_spill] sm:$0xff]  ;;  %v8073_v51 = vld [vmem:[#allocation13_spill] sm:$0xff] }
 0x2b3   :  { %v1677_v27 = vsel %vm227_vm6, %v1676_v29, %v1662_v13  ;;  %v2223_v29 = vcombine.low %v7199_v18, %v7202_v36  ;;  %v7237_v42 = vrot.slane %v8070_v43, %v4863_v24  ;;  %v8077_v43 = vld [vmem:[#allocation69_spill] sm:$0xff] }
 0x2b4   :  { %2580 = vrot.lane.b32.xlu1 %v7151_v54, %s4775_s29  ;;  %1679 = vst [vmem:[#allocation2 + $0x70] sm:$0xf] %v1677_v27  ;;  %2356 = vrot.lane.b32.xlu0 %v2323_v22, %s4777_s4  ;;  %v3211_v48 = vcombine.low %v7165_v61, %v7162_v62  ;;  %v7225_v27 = vrot.slane %v8069_v2, %v4863_v24 }
 0x2b6   :  { %v7167_v63 = vpop.permute.xlu1 %3552  ;;  %v7172_v53 = vpop.permute.xlu0 %3328  ;;  %v7210_v34 = vrot.slane %v3211_v48, %v4863_v24  ;;  %v7240_v48 = vrot.slane %v2223_v29, %v4863_v24 }
 0x2b7   :  { %8068 = vst [vmem:[#allocation12_spill] sm:$0xff] %v7167_v63  ;;  %v8076_v63 = vld [vmem:[#allocation59_spill] sm:$0xff] }
 0x2b8   :  { %2834 = vrot.lane.b32.xlu1 %v7170_v60, %s4775_s29  ;;  %2612 = vrot.lane.b32.xlu0 %v2572_v58, %s4778_s5  ;;  %v3297_v58 = vcombine.high %v7043_v26, %v7923_v44  ;;  %8071 = vst [vmem:[#allocation9_spill] sm:$0xff] %v7240_v48  ;;  %v2524_v26 = vcombine.high %v6134_v52, %v6150_v16 }
 0x2b9   :  { %v2255_v52 = vcombine.high %v7240_v48, %v7923_v44  ;;  %v8084_v48 = vld [vmem:[#allocation71_spill] sm:$0xff] }
 0x2ba   :  { %v7190_v30 = vpop.permute.xlu1 %3774  ;;  %v7192_v35 = vpop.permute.xlu0 %3584 }
 0x2bb   :  { %v4357_v22 = vld [vmem:[#allocation2 + $0x70] sm:$0xff] }
 0x2bc   :  { %3058 = vrot.lane.b32.xlu1 %v7179_v46, %s4774_s28  ;;  %2866 = vrot.lane.b32.xlu0 %v2826_v19, %s4778_s5  ;;  %v1442_v19 = vsel %vm215_vm0, %v8073_v51, %v8072_v21  ;;  %v3546_v21 = vcombine.high %v7064_v3, %v7923_v44  ;;  %v2292_v3 = vcombine.high %v7053_v40, %v7056_v12  ;;  %v8083_v12 = vld [vmem:[#allocation62_spill] sm:$0xff] }
 0x2bd   :  { %4405 = vmatprep.subr.mxu0 %v4357_v22  ;;  %v8074_v22 = vld [vmem:[#allocation36_spill] sm:$0xff]  ;;  %v1443_v25 = vsel %vm217_vm1, %v1442_v19, %v8076_v63  ;;  %v3768_v63 = vcombine.high %v7076_v39, %v7923_v44  ;;  %v7274_v51 = vrot.slane %v2524_v26, %v4861_v23  ;;  %v8078_v19 = vld [vmem:[#allocation58_spill] sm:$0xff] }
 0x2be   :  { %v7207_v5 = vpop.permute.xlu1 %4030  ;;  %v7212_v45 = vpop.permute.xlu0 %3806  ;;  %v1444_v29 = vsel %vm219_vm2, %v1443_v25, %v8077_v43  ;;  %v8080_v43 = vld [vmem:[#allocation37_spill] sm:$0xff] }
 0x2bf   :  { %v2778_v39 = vcombine.high %v8080_v43, %v6199_v31  ;;  %v2306_v31 = vrot.slane %v2292_v3, %v4863_v24 }
 0x2c0   :  { %3312 = vrot.lane.b32.xlu1 %v7210_v34, %s4774_s28  ;;  %3090 = vrot.lane.b32.xlu0 %v3043_v32, %s4779_s6  ;;  %v8075_v32 = vld [vmem:[#allocation35_spill] sm:$0xff] }
 0x2c1   :  { %v2508_v2 = vcombine.high %v8075_v32, %v8074_v22  ;;  %v8079_v22 = vld [vmem:[#allocation14_spill] sm:$0xff] }
 0x2c2   :  { %v7219_v13 = vpop.permute.xlu1 %4284  ;;  %v7227_v11 = vpop.permute.xlu0 %4062  ;;  %v1664_v32 = vsel %vm215_vm0, %v8079_v22, %v8078_v19 }
 0x2c3   :  { %v1665_v26 = vsel %vm217_vm1, %v1664_v32, %v8083_v12  ;;  %v3026_v12 = vcombine.high %v6967_v59, %v6970_v4  ;;  %v2440_v59 = vcombine.high %v8024_v33, %v8023_v41  ;;  %v8086_v33 = vld [vmem:[#allocation46_spill] sm:$0xff] }
 0x2c4   :  { %3568 = vrot.lane.b32.xlu1 %v7225_v27, %s4776_s30  ;;  %3344 = vrot.lane.b32.xlu0 %v3297_v58, %s4779_s6  ;;  %v1445_v58 = vsel %vm221_vm3, %v1444_v29, %v6718_v57  ;;  %v7277_v57 = vrot.slane %v2508_v2, %v4861_v23  ;;  %v8081_v29 = vld [vmem:[#allocation39_spill] sm:$0xff]  ;;  %v1666_v19 = vsel %vm219_vm2, %v1665_v26, %v8084_v48 }
 0x2c5   :  { %v1446_v16 = vsel %vm223_vm4, %v1445_v58, %v6879_v9  ;;  %v7364_v41 = vrot.slane %v2440_v59, %v4861_v23  ;;  %v8090_v59 = vld [vmem:[#allocation60_spill] sm:$0xff] }
 0x2c6   :  { %v7252_v47 = vpop.permute.xlu1 %1155  ;;  %v7256_v50 = vpop.permute.xlu0 %4316  ;;  %v1447_v9 = vsel %vm225_vm5, %v1446_v16, %v7086_v0  ;;  %v8085_v0 = vld [vmem:[#allocation80_spill] sm:$0xff]  ;;  %v2555_v48 = vcombine.low %v7277_v57, %v7274_v51 }
 0x2c7   :  { %v1667_v16 = vsel %vm221_vm3, %v1666_v19, %v8085_v0  ;;  %v3229_v0 = vcombine.high %v7210_v34, %v7923_v44  ;;  %v8088_v34 = vld [vmem:[#allocation47_spill] sm:$0xff] }
 0x2c8   :  { %3790 = vrot.lane.b32.xlu1 %v7237_v42, %s4776_s30  ;;  %3600 = vrot.lane.b32.xlu0 %v3546_v21, %s4780_s7  ;;  %v8082_v21 = vld [vmem:[#allocation38_spill] sm:$0xff]  ;;  %v1668_v32 = vsel %vm223_vm4, %v1667_v16, %v6907_v10  ;;  %v3280_v16 = vcombine.high %v7005_v14, %v7002_v49  ;;  %v8087_v49 = vld [vmem:[#allocation44_spill] sm:$0xff] }
 0x2c9   :  { %v2762_v40 = vcombine.high %v8082_v21, %v8081_v29  ;;  %v2710_v14 = vcombine.high %v8087_v49, %v8086_v33  ;;  %v8092_v33 = vld [vmem:[#allocation70_spill] sm:$0xff] }
 0x2ca   :  { %v1412_v25 = vpop.permute.xlu1 %1411  ;;  %v7291_v58 = vpop.permute.xlu0 %1187 }
 0x2cb   :  { %v1448_v2 = vsel %vm227_vm6, %v1447_v9, %v1412_v25  ;;  %v2504_v25 = vcombine.high %v7151_v54, %v7923_v44  ;;  %v7312_v43 = vrot.slane %v2762_v40, %v4861_v23  ;;  %v2975_v40 = vcombine.high %v7179_v46, %v7923_v44 }
 0x2cc   :  { %v1458_v22 = vrot.slane %v1448_v2, 4  ;;  %2328 = vrot.lane.b32.xlu1 %v2255_v52, %s4777_s4  ;;  %3822 = vrot.lane.b32.xlu0 %v3768_v63, %s4780_s7  ;;  %v7309_v52 = vrot.slane %v2778_v39, %v4861_v23  ;;  %v1669_v63 = vsel %vm225_vm5, %v1668_v32, %v7115_v55  ;;  %v2758_v39 = vcombine.high %v7170_v60, %v7923_v44 }
 0x2cd   :  { %v2563_v55 = vrot.slane %v2555_v48, %v4863_v24  ;;  %v2456_v46 = vcombine.high %v6218_v56, %v6230_v15  ;;  %v3478_v56 = vcombine.high %v7225_v27, %v7923_v44  ;;  %v8089_v48 = vld [vmem:[#allocation45_spill] sm:$0xff] }
 0x2ce   :  { %1462 = vst [vmem:[#allocation2 + $0x60] sm:$0xf0] %v1458_v22  ;;  %v7302_v9 = vpop.permute.xlu1 %3046  ;;  %v1634_v3 = vpop.permute.xlu0 %1633  ;;  %v2809_v29 = vcombine.low %v7312_v43, %v7309_v52  ;;  %v3040_v22 = vrot.slane %v3026_v12, %v4863_v24 }
 0x2cf   :  { %v1670_v10 = vsel %vm227_vm6, %v1669_v63, %v1634_v3  ;;  %v7361_v15 = vrot.slane %v2456_v46, %v4861_v23  ;;  %v2694_v63 = vcombine.high %v8089_v48, %v8088_v34  ;;  %v2324_v46 = vcombine.high %v2306_v31, %v7923_v44  ;;  %v8093_v34 = vld [vmem:[#allocation79_spill] sm:$0xff] }
 0x2d0   :  { %2584 = vrot.lane.b32.xlu1 %v2504_v25, %s4778_s5  ;;  %1678 = vst [vmem:[#allocation2 + $0x58] sm:$0xf] %v1670_v10  ;;  %2360 = vrot.lane.b32.xlu0 %v2306_v31, %s4775_s29  ;;  %v2817_v2 = vrot.slane %v2809_v29, %v4863_v24  ;;  %v2224_v25 = vcombine.high %v7199_v18, %v7202_v36 }
 0x2d1   :  { %v3294_v36 = vrot.slane %v3280_v16, %v4863_v24  ;;  %v3700_v10 = vcombine.high %v7237_v42, %v7923_v44  ;;  %v7383_v29 = vrot.slane %v2710_v14, %v4861_v23  ;;  %v2958_v31 = vcombine.high %v7130_v7, %v7133_v20 }
 0x2d2   :  { %v7319_v54 = vpop.permute.xlu1 %3300  ;;  %v7325_v21 = vpop.permute.xlu0 %3078  ;;  %v2238_v27 = vrot.slane %v2224_v25, %v4863_v24 }
 0x2d3   :  { %v2972_v20 = vrot.slane %v2958_v31, %v4863_v24 }
 0x2d4   :  { %2838 = vrot.lane.b32.xlu1 %v2758_v39, %s4778_s5  ;;  %2616 = vrot.lane.b32.xlu0 %v2563_v55, %s4774_s28  ;;  %v2487_v39 = vcombine.low %v7364_v41, %v7361_v15 }
 0x2d6   :  { %v7334_v26 = vpop.permute.xlu1 %3556  ;;  %v7336_v60 = vpop.permute.xlu0 %3332 }
 0x2d7   :  { %v4356_v19 = vld [vmem:[#allocation2 + $0x58] sm:$0xff] }
 0x2d8   :  { %3062 = vrot.lane.b32.xlu1 %v2975_v40, %s4779_s6  ;;  %2870 = vrot.lane.b32.xlu0 %v2817_v2, %s4774_s28  ;;  %v7386_v40 = vrot.slane %v2694_v63, %v4861_v23  ;;  %v8094_v63 = vld [vmem:[#allocation40_spill] sm:$0xff] }
 0x2d9   :  { %4406 = vmatpush1.msra.mxu0 %v4356_v19 }
 0x2da   :  { %v7346_v4 = vpop.permute.xlu1 %3778  ;;  %v7352_v32 = vpop.permute.xlu0 %3588  ;;  %v2741_v42 = vcombine.low %v7386_v40, %v7383_v29 }
 0x2dc   :  { %3316 = vrot.lane.b32.xlu1 %v3229_v0, %s4779_s6  ;;  %3094 = vrot.lane.b32.xlu0 %v3040_v22, %s4776_s30  ;;  %v8091_v0 = vld [vmem:[#allocation17_spill] sm:$0xff] }
 0x2dd   :  { %v1201_v16 = vsel %vm215_vm0, %v8091_v0, %v8090_v59  ;;  %v2749_v0 = vrot.slane %v2741_v42, %v4863_v24 }
 0x2de   :  { %v7370_v3 = vpop.permute.xlu1 %4034  ;;  %v7372_v18 = vpop.permute.xlu0 %3810  ;;  %v1202_v49 = vsel %vm217_vm1, %v1201_v16, %v8092_v33 }
 0x2df   :  { %v1203_v48 = vsel %vm219_vm2, %v1202_v49, %v8093_v34  ;;  %v2573_v49 = vcombine.high %v2563_v55, %v7923_v44  ;;  %v3212_v55 = vcombine.high %v7165_v61, %v7162_v62  ;;  %v2827_v34 = vcombine.high %v2817_v2, %v7923_v44 }
 0x2e0   :  { %3572 = vrot.lane.b32.xlu1 %v3478_v56, %s4780_s7  ;;  %3348 = vrot.lane.b32.xlu0 %v3294_v36, %s4776_s30  ;;  %v2495_v56 = vrot.slane %v2487_v39, %v4863_v24 }
 0x2e1   :  { %v7452_v62 = vrot.slane %v3212_v55, %v4863_v24 }
 0x2e2   :  { %v7388_v12 = vpop.permute.xlu1 %4288  ;;  %v7390_v19 = vpop.permute.xlu0 %4066 }
 0x2e4   :  { %2332 = vrot.lane.b32.xlu1 %v2238_v27, %s4775_s29  ;;  %3794 = vrot.lane.b32.xlu0 %v3700_v10, %s4780_s7  ;;  %v1204_v10 = vsel %vm221_vm3, %v1203_v48, %v8094_v63  ;;  %v3044_v48 = vcombine.high %v3040_v22, %v7923_v44 }
 0x2e5   :  { %v1205_v39 = vsel %vm223_vm4, %v1204_v10, %v7090_v37  ;;  %v4743_v37 = vld [vmem:[%s7848_s0 + $0x6c] ss:$48 sps:$4 sm:$0xff]  }
 0x2e6   :  { %v7400_v25 = vpop.permute.xlu1 %1159  ;;  %v7405_v14 = vpop.permute.xlu0 %4320  ;;  %v1206_v16 = vsel %vm225_vm5, %v1205_v39, %v7291_v58  ;;  %v4744_v58 = vld [vmem:[%s7848_s0 + $0x84] ss:$48 sps:$4 sm:$0xff]   ;;  %v7444_v31 = vrot.slane %v4743_v37, %v4861_v23  ;;  %v2256_v39 = vcombine.high %v2238_v27, %v7923_v44 }
 0x2e7   :  { %v7447_v63 = vrot.slane %v4744_v58, %v4861_v23  ;;  %v4745_v27 = vld [vmem:[%s7848_s0 + $0x64] ss:$48 sps:$4 sm:$0xff]   ;;  %v4746_v58 = vld [vmem:[%s7848_s0 + $0x7c] ss:$48 sps:$4 sm:$0xff]  }
 0x2e8   :  { %2588 = vrot.lane.b32.xlu1 %v2495_v56, %s4774_s28  ;;  %2364 = vrot.lane.b32.xlu0 %v2324_v46, %s4778_s5 }
 0x2e9   :  { %v2307_v22 = vcombine.low %v7444_v31, %v7447_v63 }
 0x2ea   :  { %v7417_v59 = vpop.permute.xlu1 %2604  ;;  %v1192_v33 = vpop.permute.xlu0 %1191 }
 0x2eb   :  { %v1207_v7 = vsel %vm227_vm6, %v1206_v16, %v1192_v33 }
 0x2ec   :  { %2842 = vrot.lane.b32.xlu1 %v2749_v0, %s4774_s28  ;;  %1209 = vst [vmem:[#allocation2 + $0x38] sm:$0xf] %v1207_v7  ;;  %2620 = vrot.lane.b32.xlu0 %v2573_v49, %s4779_s6  ;;  %v3298_v49 = vcombine.high %v3294_v36, %v7923_v44  ;;  %v8096_v7 = vld [vmem:[#allocation53_spill] sm:$0xff]  ;;  %v2315_v36 = vrot.slane %v2307_v22, %v4863_v24 }
 0x2ed   :  { %v3825_v37 = vsel %vm215_vm0, %v8096_v7, %v7007_v28  ;;  %v7496_v22 = vrot.slane %v4746_v58, %v4861_v23  ;;  %v8101_v58 = vld [vmem:[#allocation83_spill] sm:$0xff] }
 0x2ee   :  { %v7435_v46 = vpop.permute.xlu1 %3050  ;;  %v7437_v42 = vpop.permute.xlu0 %2858  ;;  %v3826_v55 = vsel %vm217_vm1, %v3825_v37, %v7190_v30  ;;  %v7493_v30 = vrot.slane %v4745_v27, %v4861_v23  ;;  %v2810_v37 = vcombine.high %v7312_v43, %v7309_v52 }
 0x2ef   :  { %v3827_v28 = vsel %vm219_vm2, %v3826_v55, %v7346_v4  ;;  %v8098_v4 = vld [vmem:[#allocation19_spill] sm:$0xff]  ;;  %v8100_v55 = vld [vmem:[#allocation76_spill] sm:$0xff] }
 0x2f0   :  { %3066 = vrot.lane.b32.xlu1 %v2972_v20, %s4776_s30  ;;  %2874 = vrot.lane.b32.xlu0 %v2827_v34, %s4779_s6 }
 0x2f2   :  { %v7449_v10 = vpop.permute.xlu1 %3304  ;;  %v7454_v61 = vpop.permute.xlu0 %3082 }
 0x2f3   :  { %v4353_v2 = vld [vmem:[#allocation2 + $0x38] sm:$0xff] }
 0x2f4   :  { %3320 = vrot.lane.b32.xlu1 %v7452_v62, %s4776_s30  ;;  %3098 = vrot.lane.b32.xlu0 %v3044_v48, %s4780_s7  ;;  %v2505_v48 = vcombine.high %v2495_v56, %v7923_v44  ;;  %v8099_v56 = vld [vmem:[#allocation22_spill] sm:$0xff] }
 0x2f5   :  { %4407 = vmatprep.subr.mxu0 %v4353_v2  ;;  %v2556_v2 = vcombine.high %v7277_v57, %v7274_v51  ;;  %v2759_v57 = vcombine.high %v2749_v0, %v7923_v44  ;;  %v2239_v0 = vcombine.low %v7493_v30, %v7496_v22 }
 0x2f6   :  { %v7462_v16 = vpop.permute.xlu1 %3560  ;;  %v7464_v33 = vpop.permute.xlu0 %3336 }
 0x2f7   :  { %8095 = vst [vmem:[#allocation54_spill] sm:$0xff] %v7462_v16  ;;  %v2570_v23 = vrot.slane %v2556_v2, %v4863_v24  ;;  %v8104_v2 = vld [vmem:[#allocation68_spill] sm:$0xff] }
 0x2f8   :  { %2336 = vrot.lane.b32.xlu1 %v2256_v39, %s4778_s5  ;;  %3352 = vrot.lane.b32.xlu0 %v3298_v49, %s4780_s7  ;;  %v4080_v49 = vsel %vm215_vm0, %v8099_v56, %v8098_v4  ;;  %v8102_v4 = vld [vmem:[#allocation21_spill] sm:$0xff]  ;;  %v8103_v56 = vld [vmem:[#allocation23_spill] sm:$0xff]  ;;  %s4785_s5 = smov [#allocation3]  }
 0x2f9   :  { %v4081_v27 = vsel %vm217_vm1, %v4080_v49, %v8100_v55  ;;  %v1194_v52 = vsel %vm215_vm0, %v8103_v56, %v8102_v4  ;;  %v8105_v49 = vld [vmem:[#allocation24_spill] sm:$0xff] }
 0x2fa   :  { %v3783_v34 = vpop.permute.xlu1 %3782  ;;  %v7489_v7 = vpop.permute.xlu0 %3592  ;;  %v4334_v55 = vsel %vm215_vm0, %v8105_v49, %v8104_v2  ;;  %v8108_v56 = vld [vmem:[#allocation84_spill] sm:$0xff]  ;;  %v2824_v2 = vrot.slane %v2810_v37, %v4863_v24  ;;  %v8109_v49 = vld [vmem:[#allocation41_spill] sm:$0xff]  ;;  %v2488_v37 = vcombine.high %v7364_v41, %v7361_v15  ;;  %v2742_v41 = vcombine.high %v7386_v40, %v7383_v29 }
 0x2fb   :  { %v7487_v39 = vsel %vm221_vm3, %v3827_v28, %v3783_v34  ;;  %v4082_v34 = vsel %vm219_vm2, %v4081_v27, %v8101_v58  ;;  %v8106_v27 = vld [vmem:[#allocation77_spill] sm:$0xff] }
 0x2fc   :  { %8097 = vst [vmem:[#allocation15_spill] sm:$0xff] %v7487_v39  ;;  %2592 = vrot.lane.b32.xlu1 %v2505_v48, %s4779_s6  ;;  %2368 = vrot.lane.b32.xlu0 %v2315_v36, %s4774_s28  ;;  %v2976_v48 = vcombine.high %v2972_v20, %v7923_v44  ;;  %v4083_v43 = vsel %vm221_vm3, %v4082_v34, %v7045_v6  ;;  %v8107_v39 = vld [vmem:[#allocation78_spill] sm:$0xff] }
 0x2fd   :  { %v4084_v20 = vsel %vm223_vm4, %v4083_v43, %v7227_v11  ;;  %v4335_v4 = vsel %vm217_vm1, %v4334_v55, %v8107_v39  ;;  %v2247_v39 = vrot.slane %v2239_v0, %v4863_v24 }
 0x2fe   :  { %v7502_v51 = vpop.permute.xlu1 %4038  ;;  %v7509_v28 = vpop.permute.xlu0 %3814  ;;  %v4085_v34 = vsel %vm225_vm5, %v4084_v20, %v7390_v19 }
 0x300   :  { %2846 = vrot.lane.b32.xlu1 %v2759_v57, %s4779_s6  ;;  %2624 = vrot.lane.b32.xlu0 %v2570_v23, %s4776_s30  ;;  %v1195_v57 = vsel %vm217_vm1, %v1194_v52, %v8106_v27  ;;  %v4336_v52 = vsel %vm219_vm2, %v4335_v4, %v8109_v49  ;;  %v2574_v49 = vcombine.high %v2570_v23, %v7923_v44 }
 0x301   :  { %v1196_v6 = vsel %vm219_vm2, %v1195_v57, %v8108_v56  ;;  %v4337_v55 = vsel %vm221_vm3, %v4336_v52, %v7066_v8  ;;  %v3230_v57 = vcombine.high %v7452_v62, %v7923_v44  ;;  %v2502_v62 = vrot.slane %v2488_v37, %v4863_v24  ;;  %v8113_v37 = vld [vmem:[#allocation72_spill] sm:$0xff] }
 0x302   :  { %v7531_v58 = vpop.permute.xlu1 %4292  ;;  %v4071_v16 = vpop.permute.xlu0 %4070  ;;  %v1197_v11 = vsel %vm221_vm3, %v1196_v6, %v7058_v17  ;;  %v4338_v17 = vsel %vm223_vm4, %v4337_v55, %v7256_v50  ;;  %v2325_v50 = vcombine.high %v2315_v36, %v7923_v44  ;;  %v8111_v36 = vld [vmem:[#allocation7_spill] sm:$0xff]  ;;  %v2756_v6 = vrot.slane %v2742_v41, %v4863_v24 }
 0x303   :  { %v4086_v43 = vsel %vm227_vm6, %v4085_v34, %v4071_v16  ;;  %v1198_v19 = vsel %vm223_vm4, %v1197_v11, %v7252_v47  ;;  %v4339_v0 = vsel %vm225_vm5, %v4338_v17, %v7405_v14  ;;  %v2892_v29 = vsel %vm215_vm0, %v8111_v36, %v7437_v42  ;;  %v8112_v11 = vld [vmem:[#allocation61_spill] sm:$0xff] }
 0x304   :  { %3070 = vrot.lane.b32.xlu1 %v2976_v48, %s4780_s7  ;;  %v4090_v27 = vrot.slane %v4086_v43, 4  ;;  %2878 = vrot.lane.b32.xlu0 %v2824_v2, %s4776_s30  ;;  %v1199_v16 = vsel %vm225_vm5, %v1198_v19, %v7400_v25  ;;  %v8110_v25 = vld [vmem:[#allocation6_spill] sm:$0xff]  ;;  %v3108_v43 = vsel %vm215_vm0, %v8112_v11, %v7148_v1  ;;  %v2257_v42 = vcombine.high %v2247_v39, %v7923_v44  ;;  %v8119_v11 = vld [vmem:[#allocation32_spill] sm:$0xff] }
 0x305   :  { %v2638_v14 = vsel %vm215_vm0, %v8110_v25, %v7417_v59  ;;  %v3109_v19 = vsel %vm217_vm1, %v3108_v43, %v7325_v21  ;;  %v2308_v23 = vcombine.high %v7444_v31, %v7447_v63  ;;  %v3101_v1 = vsel %vm215_vm0, %v8113_v37, %v7302_v9  ;;  %v8114_v63 = vld [vmem:[#allocation66_spill] sm:$0xff] }
 0x306   :  { %v1164_v48 = vpop.permute.xlu1 %1163  ;;  %4094 = vst [vmem:[#allocation2 + $0x88] sm:$0xf0] %v4090_v27  ;;  %v4325_v47 = vpop.permute.xlu0 %4324  ;;  %v4349_v27 = vld [vmem:[#allocation2 + $0x28] sm:$0xff]  ;;  %v3110_v17 = vsel %vm219_vm2, %v3109_v19, %v7454_v61  ;;  %v3102_v21 = vsel %vm217_vm1, %v3101_v1, %v7435_v46  ;;  %v2828_v31 = vcombine.high %v2824_v2, %v7923_v44  ;;  %v3362_v9 = vsel %vm215_vm0, %v8114_v63, %v7172_v53  ;;  %v7628_v53 = vld [vmem:[%s7849_s1] sm:$0xff]  ;;  %v8121_v19 = vld [vmem:[#allocation25_spill] sm:$0xff] }
 0x307   :  { %v1200_v8 = vsel %vm227_vm6, %v1199_v16, %v1164_v48  ;;  %v4340_v15 = vsel %vm227_vm6, %v4339_v0, %v4325_v47  ;;  %v4348_v16 = vld [vmem:[#allocation2 + $0x10] sm:$0xff]  ;;  %v4344_v47 = vld [vmem:[#allocation2] sm:$0xff]  ;;  %v2240_v46 = vcombine.high %v7493_v30, %v7496_v22  ;;  %v2322_v2 = vrot.slane %v2308_v23, %v4863_v24 }
 0x308   :  { %1208 = vst [vmem:[#allocation2 + $0x60] sm:$0xf] %v1200_v8  ;;  %2340 = vrot.lane.b32.xlu1 %v2247_v39, %s4774_s28  ;;  %4342 = vst [vmem:[#allocation2 + $0x90] sm:$0xf] %v4340_v15  ;;  %3324 = vrot.lane.b32.xlu0 %v3230_v57, %s4780_s7  ;;  %v4345_v8 = vld [vmem:[#allocation2 + $0x68] sm:$0xff]  ;;  %v3363_v57 = vsel %vm217_vm1, %v3362_v9, %v7336_v60  ;;  %v8115_v15 = vld [vmem:[#allocation73_spill] sm:$0xff]  ;;  %v2506_v60 = vcombine.high %v2502_v62, %v7923_v44 }
 0x309   :  { %v3364_v30 = vsel %vm219_vm2, %v3363_v57, %v7464_v33  ;;  %v2760_v36 = vcombine.high %v2756_v6, %v7923_v44  ;;  %v8122_v1 = vld [vmem:[#allocation20_spill] sm:$0xff] }
 0x30a   :  { %v2609_v20 = vpop.permute.xlu1 %2608  ;;  %v7576_v56 = vpop.permute.xlu0 %2576 }
 0x30b   :  { %v7574_v4 = vsel %vm217_vm1, %v2638_v14, %v2609_v20 }
 0x30c   :  { %2596 = vrot.lane.b32.xlu1 %v2502_v62, %s4776_s30  ;;  %2372 = vrot.lane.b32.xlu0 %v2325_v50, %s4779_s6  ;;  %v3355_v50 = vsel %vm215_vm0, %v8115_v15, %v7319_v54  ;;  %v2254_v54 = vrot.slane %v2240_v46, %v4863_v24  ;;  %v8118_v24 = vld [vmem:[#allocation74_spill] sm:$0xff]  ;;  %v8124_v46 = vld [vmem:[#allocation8_spill] sm:$0xff] }
 0x30d   :  { %v3356_v41 = vsel %vm217_vm1, %v3355_v50, %v7449_v10  ;;  %v4073_v43 = vsel %vm215_vm0, %v8119_v11, %v8118_v24  ;;  %v8129_v24 = vld [vmem:[#allocation43_spill] sm:$0xff] }
 0x30e   :  { %v2863_v40 = vpop.permute.xlu1 %2862  ;;  %v7587_v34 = vpop.permute.xlu0 %2830  ;;  %v2258_v10 = vcombine.high %v2254_v54, %v7923_v44 }
 0x30f   :  { %v7585_v59 = vsel %vm217_vm1, %v2892_v29, %v2863_v40  ;;  %v4352_v52 = vld [vmem:[#allocation2 + $0x60] sm:$0xff]  ;;  %v4363_v55 = vld [vmem:[#allocation2 + $0x90] sm:$0xf]  ;;  %v8116_v29 = vld [vmem:[#allocation75_spill] sm:$0xff] }
 0x310   :  { %2850 = vrot.lane.b32.xlu1 %v2756_v6, %s4776_s30  ;;  %4408 = vmatpush1.msra.mxu0 %v4352_v52  ;;  %v8117_v40 = vld [vmem:[#allocation34_spill] sm:$0xff]  ;;  %v2326_v52 = vcombine.high %v2322_v2, %v7923_v44 }
 0x311   :  { %2628 = vrot.lane.b32.xlu0 %v2574_v49, %s4780_s7  ;;  %4665 = vmatprep.subr.msk.mxu1 %vm4368_vm7, %v4363_v55  ;;  %v4327_v49 = vsel %vm215_vm0, %v8117_v40, %v8116_v29  ;;  %v8120_v55 = vld [vmem:[#allocation82_spill] sm:$0xff]  ;;  %v8127_v40 = vld [vmem:[#allocation51_spill] sm:$0xff] }
 0x312   :  { %4409 = vmatprep.subr.mxu0 %v4349_v27  ;;  %v3087_v39 = vpop.permute.xlu1 %3086  ;;  %v3055_v0 = vpop.permute.xlu0 %3054  ;;  %v4074_v27 = vsel %vm217_vm1, %v4073_v43, %v8121_v19 }
 0x313   :  { %v7609_v48 = vsel %vm221_vm3, %v3110_v17, %v3087_v39  ;;  %4410 = vmatpush1.msra.mxu0 %v4348_v16  ;;  %v7616_v61 = vsel %vm219_vm2, %v3102_v21, %v3055_v0  ;;  %v4075_v17 = vsel %vm219_vm2, %v4074_v27, %v8122_v1 }
 0x314   :  { %4411 = vmatprep.subr.mxu0 %v4345_v8  ;;  %2344 = vrot.lane.b32.xlu1 %v2257_v42, %s4779_s6  ;;  %v4328_v42 = vsel %vm217_vm1, %v4327_v49, %v8120_v55  ;;  %v4076_v39 = vsel %vm221_vm3, %v4075_v17, %v7207_v5  ;;  %s4579_s6 = sshll.u32 %s4785_s5, 4  ;;  %s4580_s6 = int_to_ptr.vmem [resolvable:$true] %s4579_s6 }
 0x315   :  { %2882 = vrot.lane.b32.xlu0 %v2828_v31, %s4780_s7  ;;  %4412 = vmatpush1.msra.mxu0 %v4344_v47  ;;  %v4329_v23 = vsel %vm219_vm2, %v4328_v42, %v7040_v38  ;;  %v4077_v38 = vsel %vm223_vm4, %v4076_v39, %v7370_v3  ;;  %v8130_v42 = vld [vmem:[#allocation16_spill] sm:$0xff]  ;;  %p4754_p1 = scmp.lt.s32.totalorder %s4580_s6, %s4580_s6 }
 0x316   :  { %v3341_v22 = vpop.permute.xlu1 %3340  ;;  %4664 = vmatmul.mubr.msk.f32.vlgmr.msra.gmra.mxu0 %vm4364_vm8, %v7628_v53  ;;  %v3309_v14 = vpop.permute.xlu0 %3308  ;;  %v4330_v44 = vsel %vm221_vm3, %v4329_v23, %v7219_v13  ;;  %v4078_v13 = vsel %vm225_vm5, %v4077_v38, %v7502_v51  ;;  %v2885_v51 = vsel %vm215_vm0, %v8124_v46, %v7587_v34 }
 0x317   :  { %v7641_v25 = vsel %vm221_vm3, %v3364_v30, %v3341_v22  ;;  %v3357_v20 = vsel %vm219_vm2, %v3356_v41, %v3309_v14  ;;  %v4331_v16 = vsel %vm223_vm4, %v4330_v44, %v7388_v12  ;;  %v8123_v12 = vld [vmem:[#allocation18_spill] sm:$0xff] }
 0x318   :  { %2600 = vrot.lane.b32.xlu1 %v2506_v60, %s4780_s7  ;;  %v4332_v21 = vsel %vm225_vm5, %v4331_v16, %v7531_v58  ;;  %v2631_v9 = vsel %vm215_vm0, %v8123_v12, %v7576_v56  ;;  %v8132_v12 = vld [vmem:[#allocation48_spill] sm:$0xff] }
 0x319   :  { %2376 = vrot.lane.b32.xlu0 %v2322_v2, %s4776_s30 }
 0x31a   :  { %v3597_v33 = vpop.permute.xlu1 %3596  ;;  %v7647_v62 = vpop.permute.xlu0 %3564 }
 0x31c   :  { %2348 = vrot.lane.b32.xlu1 %v2254_v54, %s4776_s30 }
 0x31d   :  { %2854 = vrot.lane.b32.xlu0 %v2760_v36, %s4780_s7  ;;  %v8126_v36 = vld [vmem:[#allocation42_spill] sm:$0xff] }
 0x31e   :  { %v3819_v6 = vpop.permute.xlu1 %3818  ;;  %v7666_v37 = vpop.permute.xlu0 %3786 }
 0x320   :  { %2352 = vrot.lane.b32.xlu1 %v2258_v10, %s4780_s7 }
 0x321   :  { %2380 = vrot.lane.b32.xlu0 %v2326_v52, %s4780_s7 }
 0x322   :  { %v4297_v0 = vpop.permute.xlu1 %4296  ;;  %v4043_v31 = vpop.permute.xlu0 %4042 }
 0x323   :  { %v4333_v8 = vsel %vm227_vm6, %v4332_v21, %v4297_v0  ;;  %v4079_v5 = vsel %vm227_vm6, %v4078_v13, %v4043_v31 }
 0x324   :  { %4341 = vst [vmem:[#allocation2 + $0x50] sm:$0xf] %v4333_v8  ;;  %v4089_v63 = vrot.slane %v4079_v5, 4 }
 0x326   :  { %v2581_v47 = vpop.permute.xlu1 %2580  ;;  %4093 = vst [vmem:[#allocation2 + $0x40] sm:$0xf0] %v4089_v63  ;;  %v2357_v58 = vpop.permute.xlu0 %2356 }
 0x327   :  { %v2632_v3 = vsel %vm217_vm1, %v2631_v9, %v2581_v47  ;;  %v8133_v9 = vld [vmem:[#allocation52_spill] sm:$0xff] }
 0x328   :  { %v3603_v47 = vsel %vm215_vm0, %v8133_v9, %v8132_v12 }
 0x32a   :  { %v2835_v57 = vpop.permute.xlu1 %2834  ;;  %v2613_v15 = vpop.permute.xlu0 %2612 }
 0x32b   :  { %v2886_v2 = vsel %vm217_vm1, %v2885_v51, %v2835_v57  ;;  %v4362_v50 = vld [vmem:[#allocation2 + $0x50] sm:$0xf]  ;;  %v7696_v30 = vsel %vm219_vm2, %v7574_v4, %v2613_v15  ;;  %v8125_v4 = vld [vmem:[#allocation81_spill] sm:$0xff] }
 0x32c   :  { %4666 = vmatpush1.msk.msra.mxu1 %vm4368_vm7, %v4362_v50  ;;  %v3610_v10 = vsel %vm215_vm0, %v8126_v36, %v8125_v4 }
 0x32e   :  { %v3059_v56 = vpop.permute.xlu1 %3058  ;;  %v2867_v60 = vpop.permute.xlu0 %2866 }
 0x32f   :  { %v7701_v22 = vsel %vm221_vm3, %v7616_v61, %v3059_v56  ;;  %v7705_v34 = vsel %vm219_vm2, %v7585_v59, %v2867_v60  ;;  %v3611_v61 = vsel %vm217_vm1, %v3610_v10, %v8127_v40  ;;  %v8136_v10 = vld [vmem:[#allocation15_spill] sm:$0xff] }
 0x330   :  { %v3612_v59 = vsel %vm219_vm2, %v3611_v61, %v7192_v35  ;;  %v3829_v40 = vsel %vm223_vm4, %v8136_v10, %v7666_v37 }
 0x331   :  { %v3613_v52 = vsel %vm221_vm3, %v3612_v59, %v7352_v32 }
 0x332   :  { %v3313_v41 = vpop.permute.xlu1 %3312  ;;  %v7710_v54 = vpop.permute.xlu0 %3090  ;;  %v3614_v43 = vsel %vm223_vm4, %v3613_v52, %v7489_v7 }
 0x333   :  { %v7708_v14 = vsel %vm221_vm3, %v3357_v20, %v3313_v41  ;;  %v8128_v20 = vld [vmem:[#allocation26_spill] sm:$0xff]  ;;  %v3615_v27 = vsel %vm225_vm5, %v3614_v43, %v3597_v33  ;;  %v3112_v37 = vsel %vm223_vm4, %v7609_v48, %v7710_v54 }
 0x334   :  { %v3832_v11 = vsel %vm215_vm0, %v8129_v24, %v8128_v20 }
 0x335   :  { %v3833_v19 = vsel %vm217_vm1, %v3832_v11, %v8130_v42 }
 0x336   :  { %v3569_v29 = vpop.permute.xlu1 %3568  ;;  %v7717_v49 = vpop.permute.xlu0 %3344  ;;  %v3834_v35 = vsel %vm219_vm2, %v3833_v19, %v7212_v45  ;;  %v8131_v45 = vld [vmem:[#allocation64_spill] sm:$0xff] }
 0x337   :  { %v3835_v32 = vsel %vm221_vm3, %v3834_v35, %v7372_v18  ;;  %v2390_v21 = vsel %vm215_vm0, %v8131_v45, %v2357_v58 }
 0x338   :  { %v3836_v44 = vsel %vm223_vm4, %v3835_v32, %v7509_v28 }
 0x339   :  { %v3837_v39 = vsel %vm225_vm5, %v3836_v44, %v3819_v6 }
 0x33a   :  { %v3791_v55 = vpop.permute.xlu1 %3790  ;;  %v3601_v23 = vpop.permute.xlu0 %3600 }
 0x33b   :  { %v3616_v1 = vsel %vm227_vm6, %v3615_v27, %v3601_v23  ;;  %v3830_v61 = vsel %vm225_vm5, %v3829_v40, %v3791_v55 }
 0x33c   :  { %v3620_v17 = vrot.slane %v3616_v1, 4  ;;  %v3366_v1 = vsel %vm223_vm4, %v7641_v25, %v7717_v49 }
 0x33e   :  { %v7738_v7 = vpop.permute.xlu1 %2328  ;;  %3624 = vst [vmem:[#allocation2 + $0x30] sm:$0xf0] %v3620_v17  ;;  %v3823_v16 = vpop.permute.xlu0 %3822 }
 0x33f   :  { %v3838_v33 = vsel %vm227_vm6, %v3837_v39, %v3823_v16 }
 0x340   :  { %3840 = vst [vmem:[#allocation2 + $0x88] sm:$0xf] %v3838_v33 }
 0x342   :  { %v2585_v38 = vpop.permute.xlu1 %2584  ;;  %v2361_v18 = vpop.permute.xlu0 %2360 }
 0x343   :  { %v7745_v0 = vsel %vm219_vm2, %v2632_v3, %v2585_v38  ;;  %v7748_v13 = vsel %vm217_vm1, %v2390_v21, %v2361_v18  ;;  %v8134_v3 = vld [vmem:[#allocation12_spill] sm:$0xff] }
 0x344   :  { %v3604_v58 = vsel %vm217_vm1, %v3603_v47, %v8134_v3 }
 0x345   :  { %v3605_v51 = vsel %vm219_vm2, %v3604_v58, %v7334_v26 }
 0x346   :  { %v2839_v28 = vpop.permute.xlu1 %2838  ;;  %v7753_v6 = vpop.permute.xlu0 %2616 }
 0x347   :  { %v7751_v8 = vsel %vm219_vm2, %v2886_v2, %v2839_v28  ;;  %v4359_v31 = vld [vmem:[#allocation2 + $0x88] sm:$0xff]  ;;  %v8135_v2 = vld [vmem:[#allocation54_spill] sm:$0xff]  ;;  %v2641_v58 = vsel %vm221_vm3, %v7696_v30, %v7753_v6 }
 0x348   :  { %4476 = vmatprep.subr.mxu1 %v4359_v31  ;;  %v3606_v15 = vsel %vm221_vm3, %v3605_v51, %v8135_v2 }
 0x349   :  { %v3607_v50 = vsel %vm223_vm4, %v3606_v15, %v7647_v62 }
 0x34a   :  { %v3063_v5 = vpop.permute.xlu1 %3062  ;;  %v7755_v63 = vpop.permute.xlu0 %2870  ;;  %v3608_v56 = vsel %vm225_vm5, %v3607_v50, %v3569_v29 }
 0x34b   :  { %v3105_v45 = vsel %vm223_vm4, %v7701_v22, %v3063_v5  ;;  %v2895_v50 = vsel %vm221_vm3, %v7705_v34, %v7755_v63 }
 0x34e   :  { %v3317_v46 = vpop.permute.xlu1 %3316  ;;  %v3095_v57 = vpop.permute.xlu0 %3094 }
 0x34f   :  { %v3113_v55 = vsel %vm225_vm5, %v3112_v37, %v3095_v57  ;;  %v3359_v31 = vsel %vm223_vm4, %v7708_v14, %v3317_v46 }
 0x352   :  { %v3573_v60 = vpop.permute.xlu1 %3572  ;;  %v3349_v4 = vpop.permute.xlu0 %3348 }
 0x353   :  { %v3609_v41 = vsel %vm227_vm6, %v3608_v56, %v3573_v60  ;;  %v3367_v17 = vsel %vm225_vm5, %v3366_v1, %v3349_v4 }
 0x354   :  { %v3619_v36 = vrot.slane %v3609_v41, 4 }
 0x356   :  { %3623 = vst [vmem:[#allocation2 + $0x98] sm:$0xf0] %v3619_v36  ;;  %v7773_v26 = vpop.permute.xlu1 %2332  ;;  %v3795_v59 = vpop.permute.xlu0 %3794 }
 0x357   :  { %v3831_v52 = vsel %vm227_vm6, %v3830_v61, %v3795_v59 }
 0x358   :  { %3839 = vst [vmem:[#allocation2 + $0x40] sm:$0xf] %v3831_v52  ;;  %v8137_v52 = vld [vmem:[#allocation9_spill] sm:$0xff] }
 0x35a   :  { %v2589_v62 = vpop.permute.xlu1 %2588  ;;  %v7777_v29 = vpop.permute.xlu0 %2364 }
 0x35b   :  { %v2634_v4 = vsel %vm221_vm3, %v7745_v0, %v2589_v62 }
 0x35e   :  { %v7779_v20 = vpop.permute.xlu1 %2842  ;;  %v2621_v24 = vpop.permute.xlu0 %2620 }
 0x35f   :  { %v4358_v11 = vld [vmem:[#allocation2 + $0x40] sm:$0xff]  ;;  %v2642_v51 = vsel %vm223_vm4, %v2641_v58, %v2621_v24  ;;  %v2383_v24 = vsel %vm215_vm0, %v8137_v52, %v7738_v7  ;;  %v2888_v0 = vsel %vm221_vm3, %v7751_v8, %v7779_v20  ;;  %v2392_v7 = vsel %vm219_vm2, %v7748_v13, %v7777_v29 }
 0x360   :  { %4477 = vmatpush1.msra.mxu1 %v4358_v11  ;;  %v2384_v62 = vsel %vm217_vm1, %v2383_v24, %v7773_v26 }
 0x362   :  { %v3067_v43 = vpop.permute.xlu1 %3066  ;;  %v2875_v42 = vpop.permute.xlu0 %2874 }
 0x363   :  { %v3106_v21 = vsel %vm225_vm5, %v3105_v45, %v3067_v43  ;;  %v2896_v60 = vsel %vm223_vm4, %v2895_v50, %v2875_v42 }
 0x366   :  { %v3321_v19 = vpop.permute.xlu1 %3320  ;;  %v3099_v27 = vpop.permute.xlu0 %3098 }
 0x367   :  { %v3114_v23 = vsel %vm227_vm6, %v3113_v55, %v3099_v27  ;;  %v3360_v9 = vsel %vm225_vm5, %v3359_v31, %v3321_v19 }
 0x368   :  { %v3118_v35 = vrot.slane %v3114_v23, 4 }
 0x36a   :  { %v2337_v32 = vpop.permute.xlu1 %2336  ;;  %3122 = vst [vmem:[#allocation2 + $0x20] sm:$0xf0] %v3118_v35  ;;  %v3353_v44 = vpop.permute.xlu0 %3352 }
 0x36b   :  { %v3368_v39 = vsel %vm227_vm6, %v3367_v17, %v3353_v44  ;;  %v2385_v42 = vsel %vm219_vm2, %v2384_v62, %v2337_v32 }
 0x36c   :  { %3370 = vst [vmem:[#allocation2 + $0x30] sm:$0xf] %v3368_v39 }
 0x36e   :  { %v2593_v48 = vpop.permute.xlu1 %2592  ;;  %v2369_v54 = vpop.permute.xlu0 %2368 }
 0x36f   :  { %v2635_v10 = vsel %vm223_vm4, %v2634_v4, %v2593_v48  ;;  %v2393_v26 = vsel %vm221_vm3, %v2392_v7, %v2369_v54 }
 0x372   :  { %v2847_v16 = vpop.permute.xlu1 %2846  ;;  %v2625_v33 = vpop.permute.xlu0 %2624 }
 0x373   :  { %v4355_v38 = vld [vmem:[#allocation2 + $0x30] sm:$0xff]  ;;  %v2643_v2 = vsel %vm225_vm5, %v2642_v51, %v2625_v33  ;;  %v2889_v11 = vsel %vm223_vm4, %v2888_v0, %v2847_v16 }
 0x374   :  { %4478 = vmatprep.subr.mxu1 %v4355_v38 }
 0x376   :  { %v3071_v25 = vpop.permute.xlu1 %3070  ;;  %v2879_v18 = vpop.permute.xlu0 %2878 }
 0x377   :  { %v3107_v49 = vsel %vm227_vm6, %v3106_v21, %v3071_v25  ;;  %v2897_v30 = vsel %vm225_vm5, %v2896_v60, %v2879_v18 }
 0x378   :  { %v3117_v28 = vrot.slane %v3107_v49, 4 }
 0x37a   :  { %3121 = vst [vmem:[#allocation2 + $0x18] sm:$0xf0] %v3117_v28  ;;  %v2341_v12 = vpop.permute.xlu1 %2340  ;;  %v3325_v47 = vpop.permute.xlu0 %3324 }
 0x37b   :  { %v3361_v3 = vsel %vm227_vm6, %v3360_v9, %v3325_v47  ;;  %v2386_v55 = vsel %vm221_vm3, %v2385_v42, %v2341_v12 }
 0x37c   :  { %3369 = vst [vmem:[#allocation2 + $0x98] sm:$0xf] %v3361_v3 }
 0x37e   :  { %v2597_v22 = vpop.permute.xlu1 %2596  ;;  %v2373_v5 = vpop.permute.xlu0 %2372 }
 0x37f   :  { %v2636_v40 = vsel %vm225_vm5, %v2635_v10, %v2597_v22  ;;  %v2394_v23 = vsel %vm223_vm4, %v2393_v26, %v2373_v5 }
 0x382   :  { %v2851_v57 = vpop.permute.xlu1 %2850 }
 0x383   :  { %v2629_v14 = vpop.permute.xlu0 %2628  ;;  %v4354_v15 = vld [vmem:[#allocation2 + $0x98] sm:$0xff]  ;;  %v2890_v37 = vsel %vm225_vm5, %v2889_v11, %v2851_v57  ;;  %v4783_v57 = vmov 0  }
 0x384   :  { %v2644_v46 = vsel %vm227_vm6, %v2643_v2, %v2629_v14  ;;  %4479 = vmatpush1.msra.mxu1 %v4354_v15  ;;  %4684 = vset.pattern.permute.xlu0 %v4783_v57  ;;  %v4543_v2 = vld [vmem:[%s7850_s2] sm:$0xff]  ;;  %v4784_v14 = vmov 1   ;;  %s4749_s2 = scalar_lea.vmem %s4580_s6, 512 }
 0x385   :  { %v2648_v56 = vrot.slane %v2644_v46, 4  ;;  %4685 = vset.pattern.permute.xlu1 %v4784_v14  ;;  %p4750_p0 = scmp.ne.s32.totalorder %s4580_s6, %s4749_s2  ;;  %p4755_p2 = scmp.lt.s32.totalorder %s4749_s2, %s4749_s2 }
 0x386   :  { %v2345_v41 = vpop.permute.xlu1 %2344 }
 0x387   :  { %2652 = vst [vmem:[#allocation2 + $0x80] sm:$0xf0] %v2648_v56  ;;  %v2883_v6 = vpop.permute.xlu0 %2882  ;;  %v2387_v27 = vsel %vm223_vm4, %v2386_v55, %v2345_v41  ;;  %p4756_p3 = por %p4755_p2, %p4754_p1 }
 0x388   :  { %v2898_v36 = vsel %vm227_vm6, %v2897_v30, %v2883_v6 }
 0x389   :  { %2900 = vst [vmem:[#allocation2 + $0x20] sm:$0xf] %v2898_v36  ;;  %p4757_p4 = pnand %p4756_p3, %p4750_p0 }
 0x38a   :  { %v2601_v34 = vpop.permute.xlu1 %2600 }
 0x38b   :  { %v2637_v63 = vsel %vm227_vm6, %v2636_v40, %v2601_v34  ;;  %v2377_v61 = vpop.permute.xlu0 %2376 }
 0x38c   :  { %v2647_v59 = vrot.slane %v2637_v63, 4  ;;  %v2395_v32 = vsel %vm225_vm5, %v2394_v23, %v2377_v61 }
 0x38e   :  { %2651 = vst [vmem:[#allocation2 + $0x48] sm:$0xf0] %v2647_v59  ;;  %v2349_v43 = vpop.permute.xlu1 %2348 }
 0x38f   :  { %v2855_v19 = vpop.permute.xlu0 %2854  ;;  %v2388_v35 = vsel %vm225_vm5, %v2387_v27, %v2349_v43 }
 0x390   :  { %v2891_v8 = vsel %vm227_vm6, %v2890_v37, %v2855_v19  ;;  %v4351_v20 = vld [vmem:[#allocation2 + $0x20] sm:$0xff] }
 0x391   :  { %2899 = vst [vmem:[#allocation2 + $0x18] sm:$0xf] %v2891_v8  ;;  %4480 = vmatprep.subr.mxu1 %v4351_v20 }
 0x392   :  { %v2353_v1 = vpop.permute.xlu1 %2352 }
 0x393   :  { %v2389_v13 = vsel %vm227_vm6, %v2388_v35, %v2353_v1  ;;  %v2381_v29 = vpop.permute.xlu0 %2380 }
 0x394   :  { %2397 = vst [vmem:[#allocation2 + $0x48] sm:$0xf] %v2389_v13  ;;  %v2396_v17 = vsel %vm227_vm6, %v2395_v32, %v2381_v29 }
 0x395   :  { %2398 = vst [vmem:[#allocation2 + $0x80] sm:$0xf] %v2396_v17 }
 0x398   :  { %v4350_v44 = vld [vmem:[#allocation2 + $0x18] sm:$0xff] }
 0x399   :  { %4481 = vmatpush1.msra.mxu1 %v4350_v44 }
 0x39b   :  { %v4346_v39 = vld [vmem:[#allocation2 + $0x48] sm:$0xff] }
 0x39c   :  { %v4347_v48 = vld [vmem:[#allocation2 + $0x80] sm:$0xff] }
 0x39d   :  { %4482 = vmatprep.subr.mxu1 %v4347_v48 }
 0x39e   :  { %4483 = vmatpush1.msra.mxu1 %v4346_v39 }
 0x39f   :  { %4667 = vmatmul.mubr.msk.f32.vlgmr.msra.gmra.mxu1 %vm4364_vm8, %v7628_v53 }
 0x3d6   :  { %v4447_v54 = vpop.f32.mrf.mxu0 }
 0x3d8   :  { %v4449_v16 = vpop.f32.mrf.mxu0 }
 0x3d9   :  { %v4523_v33 = vadd.f32 %v4449_v16, %v4447_v54 }
 0x45f   :  { %v4518_v38 = vpop.f32.mrf.mxu1 }
 0x460   :  { %v4524_v45 = vadd.f32 %v4523_v33, %v4518_v38 }
 0x461   :  { %v4520_v21 = vpop.f32.mrf.mxu1 }
 0x462   :  { %v4525_v25 = vadd.f32 %v4524_v45, %v4520_v21 }
 0x464   :  { %4526 = vadd.xlane.f32.xlu0 %v4525_v25 }
 0x4ed   :  { %v4527_v49 = vpop.xlane.xlu0 %4526 }
 0x4ee   :  { %v4528_v18 = vmul.f32 0.001953125, %v4527_v49 }
 0x4f0   :  { %v4529_v28 = vsub.f32 %v4447_v54, %v4528_v18  ;;  %v4530_v31 = vsub.f32 %v4449_v16, %v4528_v18  ;;  %v4531_v12 = vsub.f32 %v4518_v38, %v4528_v18  ;;  %v4532_v9 = vsub.f32 %v4520_v21, %v4528_v18 }
 0x4f2   :  { %v4533_v47 = vmul.f32 %v4529_v28, %v4529_v28  ;;  %v4534_v3 = vmul.f32 %v4530_v31, %v4530_v31  ;;  %v4535_v22 = vmul.f32 %v4531_v12, %v4531_v12  ;;  %v4536_v58 = vmul.f32 %v4532_v9, %v4532_v9 }
 0x4f4   :  { %v4537_v5 = vadd.f32 %v4534_v3, %v4533_v47 }
 0x4f6   :  { %v4538_v53 = vadd.f32 %v4537_v5, %v4535_v22 }
 0x4f8   :  { %v4539_v51 = vadd.f32 %v4538_v53, %v4536_v58 }
 0x4fa   :  { %4540 = vadd.xlane.f32.xlu1 %v4539_v51 }
 0x50b   :  { %4558 = vperm.xlu1 %4685, %v4543_v2  }
 0x583   :  { %v4541_v46 = vpop.xlane.xlu1 %4540 }
 0x584   :  { %v4542_v15 = vmul.f32 0.001953125, %v4541_v46 }
 0x586   :  { %v4544_v50 = vadd.f32 1e-05, %v4542_v15 }
 0x587   :  { %v4559_v30 = vpop.permute.xlu1 %4558 }
 0x588   :  { %4747 = vrsqrt.f32 %v4544_v50 }
 0x595   :  { %v4748_v56 = vpop.eup %4747 }
 0x596   :  { %v4546_v60 = vmul.f32 %v4748_v56, %v4543_v2 }
 0x598   :  { %4549 = vperm.xlu0 %4684, %v4546_v60  }
 0x59c   :  { %4686 = vset.pattern.permute.xlu0 %v4784_v14 }
 0x613   :  { %v4550_v41 = vpop.permute.xlu0 %4549 }
 0x614   :  { %v4552_v6 = vmul.f32 %v4550_v41, %v4529_v28  ;;  %v4553_v4 = vmul.f32 %v4550_v41, %v4530_v31  ;;  %v4554_v36 = vmul.f32 %v4550_v41, %v4531_v12  ;;  %v4555_v10 = vmul.f32 %v4550_v41, %v4532_v9 }
 0x616   :  { %v4561_v40 = vadd.f32 %v4559_v30, %v4552_v6  ;;  %v4562_v34 = vadd.f32 %v4559_v30, %v4553_v4  ;;  %v4563_v63 = vadd.f32 %v4559_v30, %v4554_v36  ;;  %v4564_v61 = vadd.f32 %v4559_v30, %v4555_v10 }
 0x618   :  { %v4565_v59 = vmax.f32 %v4561_v40, 0.0  ;;  %v4566_v52 = vmax.f32 %v4562_v34, 0.0  ;;  %v4567_v24 = vmax.f32 %v4563_v63, 0.0  ;;  %v4568_v0 = vmax.f32 %v4564_v61, 0.0 }
 0x61a   :  { %4569 = vst [vmem:[#allocation3] sm:$0xff] %v4565_v59  ;;  %4570 = vst [vmem:[#allocation3 + $0x8] sm:$0xff] %v4566_v52 }
 0x61b   :  { %4572 = vst [vmem:[#allocation3 + $0x10] sm:$0xff] %v4567_v24  ;;  %4573 = vst [vmem:[#allocation3 + $0x18] sm:$0xff] %v4568_v0 }
 0x61c   :  { %4760 = shalt.err (!%p4757_p4)
}
 0x61d   :  { %s4786_s7 = smov 256  }
 0x61e   :  { %4585 = dma.vmem_to_hbm [thread:$0]  %s4580_s6, 512, %s7851_s3, [#allocation4], %s4786_s7, %s4786_s7, %s4777_s4  }
 0x61f   :  { %4769 = dma.done.wait [#allocation4], 512  }
 0x620   :  { %4770 = vsyncadd [#allocation4], 4294966784 }
 0x621   :  { %4589 = vsyncpa [#allocation4], 1 }

</bundles_post_ra>
